<compile_context>
chip_gen: v5e
topology: v5e:2x2
jax: 0.10.0
libtpu: 0.0.40
codegen_flags: <defaults>
</compile_context>

<pallas_src>
import functools

import jax
import jax.numpy as jnp
from jax import lax
from jax.experimental import pallas as pl
from jax.experimental.pallas import tpu as pltpu


def _round_up(x, m):
    return (x + m - 1) // m * m


_TPU_VMEM_CAP = None


def _vmem_capacity_bytes():
    """Physical per-core VMEM, queried once (generation-aware tiling)."""
    global _TPU_VMEM_CAP
    if _TPU_VMEM_CAP is None:
        try:
            _TPU_VMEM_CAP = int(pltpu.get_tpu_info().vmem_capacity_bytes)
        except Exception:
            _TPU_VMEM_CAP = 64 << 20      # conservative (v7x per-core size)
    return _TPU_VMEM_CAP


# --------------------------------------------------------------------------
# Kernels
# --------------------------------------------------------------------------
def _proj_fullk_kernel(x_ref, w_ref, b_ref, o_ref):
    """Single-K-step projection: o = bias + x @ w (one store, no RMW)."""
    o_ref[...] = b_ref[...] + jnp.dot(
        x_ref[...], w_ref[...], preferred_element_type=jnp.float32)


def _proj_ktiled_kernel(x_ref, w_ref, b_ref, o_ref):
    """Fallback K-tiled projection accumulating into the resident f32 block."""
    k = pl.program_id(1)
    part = jnp.dot(x_ref[...], w_ref[...], preferred_element_type=jnp.float32)

    @pl.when(k == 0)
    def _():
        o_ref[...] = b_ref[...] + part          # bias + first partial, 1 store

    @pl.when(k > 0)
    def _():
        o_ref[...] += part


# --------------------------------------------------------------------------
# Tiling plan
# --------------------------------------------------------------------------
def _plan_tiling(M, K, E):
    """Pick (tm, tk).  tk == K means the K axis is collapsed: the weight is
    streamed from HBM exactly once and held VMEM-resident (single-buffered)
    across all M tiles."""
    cap = _vmem_capacity_bytes()
    budget = (cap * 7) // 10                    # leave headroom for compiler

    M16 = _round_up(M, 16)                      # bf16: 16 sublanes per vreg
    tm_limit = 512
    if M16 >= 512:
        # Guarantee >= 2 M tiles at production M so v7x megacore can split
        # the leading grid axis across its two TensorCores.
        tm_limit = min(512, (M16 // 2) // 16 * 16)

    def fullk_bytes(tm):
        return (2 * tm * K * 2                  # double-buffered bf16 x
                + K * E * 2                     # weight, single-buffered
                + 2 * tm * E * 4                # double-buffered f32 out
                + 2 * E * 4)                    # bias

    for cand in (512, 256, 128, 64, 32, 16):
        tm = min(cand, M16)
        if tm > tm_limit:
            continue
        if fullk_bytes(tm) <= budget:
            return tm, K

    # Fallback: K-tiled accumulation (only for very large K on small VMEM).
    tm = min(256, M16, tm_limit)
    if K % 128 != 0:
        # TODO(synk): pad K for patch layouts whose C*p*p is not a multiple of
        # 128 (cannot happen for the patch_size=16 layouts of this module).
        return tm, K
    tk = 128
    kcap = max(128, (budget - 2 * tm * E * 4) // (2 * (tm + E) * 2))
    for d in range(128, min(K, kcap) + 1, 128):
        if K % d == 0:
            tk = d
    return tm, tk


# --------------------------------------------------------------------------
# PatchEmbed forward
# --------------------------------------------------------------------------
@functools.partial(jax.jit, static_argnames=("patch_size",))
def patch_embed_pallas(x, wm, bm, patch_size):
    """PatchEmbed forward: Conv2d(k=p, s=p) -> flatten(2) -> transpose(1, 2).

    x:  [B, C, H, W]   (NCHW, like PyTorch)
    wm: [K, E]         pre-flattened/pre-transposed Conv2d weight (bf16),
                       K = C*p*p, lane order (c, ph, pw)
    bm: [1, E]         bias (f32)
    returns [B, (H//p)*(W//p), E] float32
    """
    B, C, H, W = x.shape
    p = patch_size
    K, E = wm.shape
    assert H % p == 0 and W % p == 0 and K == C * p * p
    nH, nW = H // p, W // p
    nP = nH * nW
    M = B * nP

    # Glue: patchify NCHW -> one bf16 row per patch (lane order (c, ph, pw)).
    # allow_input_fusion below lets XLA fuse this transpose/cast into the
    # pallas_call input instead of materializing a second activation copy.
    xp = x.reshape(B, C, nH, p, nW, p)
    xp = xp.transpose(0, 2, 4, 1, 3, 5).reshape(M, K).astype(jnp.bfloat16)

    tm, tk = _plan_tiling(M, K, E)
    M_pad = _round_up(M, tm)
    if M_pad != M:
        xp = jnp.pad(xp, ((0, M_pad - M), (0, 0)))
    m_tiles = M_pad // tm

    # CORE_PARALLEL splits the M axis across v7x's two TensorCores; with a
    # single M tile (demo shapes) fall back to plain PARALLEL.
    m_sem = pltpu.CORE_PARALLEL if m_tiles >= 2 else pltpu.PARALLEL

    if tk == K:
        # K collapsed: weight fetched from HBM exactly once, VMEM-resident and
        # single-buffered (it never changes across the grid).
        grid = (m_tiles,)
        in_specs = [
            pl.BlockSpec((tm, K), lambda m: (m, 0)),
            pl.BlockSpec((K, E), lambda m: (0, 0),
                         pipeline_mode=pl.Buffered(1)),
            pl.BlockSpec((1, E), lambda m: (0, 0)),
        ]
        out_specs = pl.BlockSpec((tm, E), lambda m: (m, 0))
        kernel = _proj_fullk_kernel
        semantics = (m_sem,)
        weight_reads = 1
    else:
        grid = (m_tiles, K // tk)
        in_specs = [
            pl.BlockSpec((tm, tk), lambda m, k: (m, k)),
            pl.BlockSpec((tk, E), lambda m, k: (k, 0)),
            pl.BlockSpec((1, E), lambda m, k: (0, 0)),
        ]
        out_specs = pl.BlockSpec((tm, E), lambda m, k: (m, 0))
        kernel = _proj_ktiled_kernel
        semantics = (m_sem, pltpu.ARBITRARY)
        weight_reads = m_tiles          # weight block index wraps per M tile

    # vmem_limit sized for the chosen blocks (worst case: double-buffered
    # weight) plus headroom, never above physical capacity.
    cap = _vmem_capacity_bytes()
    est = (2 * tm * tk * 2 + 2 * tk * E * 2 + 2 * tm * E * 4 + 2 * E * 4)
    vmem_limit = int(min(cap, max(est + (16 << 20), 32 << 20)))

    cost = pl.CostEstimate(
        flops=2 * M_pad * K * E,
        transcendentals=0,
        bytes_accessed=(M_pad * K * 2 + weight_reads * K * E * 2
                        + M_pad * E * 4 + E * 4),
    )

    out = pl.pallas_call(
        kernel,
        out_shape=jax.ShapeDtypeStruct((M_pad, E), jnp.float32),
        grid_spec=pltpu.PrefetchScalarGridSpec(
            num_scalar_prefetch=0,
            grid=grid,
            in_specs=in_specs,
            out_specs=out_specs,
        ),
        compiler_params=pltpu.CompilerParams(
            dimension_semantics=semantics,
            vmem_limit_bytes=vmem_limit,
            allow_input_fusion=[True, False, False],
        ),
        cost_estimate=cost,
    )(xp, wm, bm)

    return out[:M].reshape(B, nP, E)


def patch_embed_ref(x, weight, bias, p):
    """Pure-JAX reference: Conv2d(k=p, s=p) -> flatten -> transpose, with the
    same bf16 rounding of inputs/weights the kernel applies (f32 accumulate)."""
    y = lax.conv_general_dilated(
        x.astype(jnp.bfloat16).astype(jnp.float32),
        weight.astype(jnp.bfloat16).astype(jnp.float32),
        window_strides=(p, p), padding="VALID",
        dimension_numbers=("NCHW", "OIHW", "NCHW"))
    y = y + bias.reshape(1, -1, 1, 1)
    B, E, nH, nW = y.shape
    return y.reshape(B, E, nH * nW).transpose(0, 2, 1)


class SeCoFusionPallas:
    """JAX/Pallas port of SeCoFusion's implementable forward path."""

    def __init__(self, resolution=32, use_tv_constract=True, seed=0):
        self.resolution = resolution
        self.use_tv_constract = use_tv_constract
        self.patch_size = 16
        p = self.patch_size

        # Deterministic parameter init (shapes from the module __init__).
        key = jax.random.PRNGKey(seed)
        k1, k2, k3, k4 = jax.random.split(key, 4)
        # patchembed_img: Conv2d(48 -> 128, k=16, s=16)
        self.w_img = jax.random.normal(k1, (128, 48, p, p), jnp.float32) * 0.02
        self.b_img = jax.random.normal(k2, (128,), jnp.float32) * 0.02
        # patchembed_tv: Conv2d(96 -> 256, k=16, s=16)
        self.w_tv = jax.random.normal(k3, (256, 96, p, p), jnp.float32) * 0.02
        self.b_tv = jax.random.normal(k4, (256,), jnp.float32) * 0.02

        # Kernel-ready weights, computed ONCE (hoisted out of forward):
        # OIHW -> [K, E] bf16; bias -> [1, E] f32.
        self.wm_img = (self.w_img.reshape(128, 48 * p * p).T
                       .astype(jnp.bfloat16))
        self.bm_img = self.b_img.reshape(1, 128)
        self.wm_tv = (self.w_tv.reshape(256, 96 * p * p).T
                      .astype(jnp.bfloat16))
        self.bm_tv = self.b_tv.reshape(1, 256)

    def forward(self, cat_in, vis_enc, inf_enc):
        """Mirrors SeCoFusion.forward after the (unavailable) experts_encoder.

        cat_in:  [B, 96, R, R]
        vis_enc: [B, 48, R, R]
        inf_enc: [B, 48, R, R]
        """
        B = vis_enc.shape[0]
        # vis / inf embeds share patchembed_img -> fuse into one kernel call
        # so the img weight is streamed from HBM once, not twice.
        vi_inf = jnp.concatenate([vis_enc, inf_enc], axis=0)
        emb = patch_embed_pallas(vi_inf, self.wm_img, self.bm_img,
                                 self.patch_size)
        vi_emb, inf_emb = emb[:B], emb[B:]

        img_emb = None
        if self.use_tv_constract:
            img_emb = patch_embed_pallas(cat_in, self.wm_tv, self.bm_tv,
                                         self.patch_size)
        # TODO(synk): optimal_transport_dist(vi_emb, inf_emb) not provided in
        # the reference source; pa_loss is not computed.
        return vi_emb, inf_emb, img_emb


if __name__ == "__main__":
    B = 2
    R = 32  # config.resolution (small); patch_size=16 -> 2x2 = 4 patches

    model = SeCoFusionPallas(resolution=R, use_tv_constract=True, seed=0)

    key = jax.random.PRNGKey(0)
    kv, ki, kc = jax.random.split(key, 3)
    vis_enc = jax.random.normal(kv, (B, 48, R, R), jnp.float32)
    inf_enc = jax.random.normal(ki, (B, 48, R, R), jnp.float32)
    cat_in = jax.random.normal(kc, (B, 96, R, R), jnp.float32)

    vi_emb, inf_emb, img_emb = model.forward(cat_in, vis_enc, inf_enc)
    jax.block_until_ready((vi_emb, inf_emb, img_emb))

    # Correctness check against the conv-based reference (same bf16 rounding
    # of inputs/weights, f32 accumulation).
    vi_ref = patch_embed_ref(vis_enc, model.w_img, model.b_img, 16)
    inf_ref = patch_embed_ref(inf_enc, model.w_img, model.b_img, 16)
    img_ref = patch_embed_ref(cat_in, model.w_tv, model.b_tv, 16)

    assert vi_emb.shape == (B, 4, 128)
    assert inf_emb.shape == (B, 4, 128)
    assert img_emb.shape == (B, 4, 256)
    assert jnp.allclose(vi_emb, vi_ref, atol=2e-3, rtol=2e-3)
    assert jnp.allclose(inf_emb, inf_ref, atol=2e-3, rtol=2e-3)
    assert jnp.allclose(img_emb, img_ref, atol=2e-3, rtol=2e-3)

    print("KERNEL_OK")
</pallas_src>

<mosaic_0001>
module attributes {stable_mosaic.version = 11 : i64} {
  func.func @_proj_fullk_kernel(%arg0: i32, %arg1: memref<16x12288xbf16, #tpu.memory_space<vmem>>, %arg2: memref<12288x128xbf16, #tpu.memory_space<vmem>>, %arg3: memref<1x128xf32, #tpu.memory_space<vmem>>, %arg4: memref<16x128xf32, #tpu.memory_space<vmem>>) attributes {dimension_semantics = [#tpu.dimension_semantics<parallel>], iteration_bounds = array<i64: 1>, scalar_prefetch = 0 : i64, scratch_operands = 0 : i64, tpu.core_type = #tpu.core_type<tc>, window_params = [{transform_indices = @transform_0, window_bounds = array<i64: 16, 12288>}, {pipeline_mode = #tpu.pipeline_mode<synchronous>, transform_indices = @transform_1, window_bounds = array<i64: 12288, 128>}, {pipeline_mode = #tpu.pipeline_mode<synchronous>, transform_indices = @transform_2, window_bounds = array<i64: 1, 128>}, {transform_indices = @transform_3, window_bounds = array<i64: 16, 128>}]} {
    %c0 = arith.constant 0 : index
    %c0_0 = arith.constant 0 : index
    %0 = vector.load %arg3[%c0, %c0_0] : memref<1x128xf32, #tpu.memory_space<vmem>>, vector<1x128xf32>
    %c0_1 = arith.constant 0 : index
    %c0_2 = arith.constant 0 : index
    %1 = vector.load %arg1[%c0_1, %c0_2] : memref<16x12288xbf16, #tpu.memory_space<vmem>>, vector<16x12288xbf16>
    %c0_3 = arith.constant 0 : index
    %c0_4 = arith.constant 0 : index
    %2 = vector.load %arg2[%c0_3, %c0_4] : memref<12288x128xbf16, #tpu.memory_space<vmem>>, vector<12288x128xbf16>
    %cst = arith.constant dense<0.000000e+00> : vector<16x128xf32>
    %3 = tpu.matmul %1, %2, %cst {dimension_numbers = #tpu.dot_dimension_numbers<[1], [0], [0], [1], [0, 0, 1, 1], [], []>} : vector<16x12288xbf16>, vector<12288x128xbf16>, vector<16x128xf32> -> vector<16x128xf32>
    %4 = vector.broadcast %0 : vector<1x128xf32> to vector<16x128xf32>
    %5 = arith.addf %4, %3 : vector<16x128xf32>
    %c0_5 = arith.constant 0 : index
    %c0_6 = arith.constant 0 : index
    %6 = vector.load %arg4[%c0_5, %c0_6] : memref<16x128xf32, #tpu.memory_space<vmem>>, vector<16x128xf32>
    tpu.vector_store %arg4[%c0_5, %c0_6], %5 {strides = array<i32>} : memref<16x128xf32, #tpu.memory_space<vmem>>, vector<16x128xf32>,
    return
  }
  func.func @transform_0(%arg0: i32) -> (i32, i32) {
    %c0_i32 = arith.constant 0 : i32
    %c0_i32_0 = arith.constant 0 : i32
    return %arg0, %c0_i32 : i32, i32
  }
  func.func @transform_1(%arg0: i32) -> (i32, i32) {
    %c0_i32 = arith.constant 0 : i32
    %c0_i32_0 = arith.constant 0 : i32
    %c0_i32_1 = arith.constant 0 : i32
    return %c0_i32, %c0_i32_0 : i32, i32
  }
  func.func @transform_2(%arg0: i32) -> (i32, i32) {
    %c0_i32 = arith.constant 0 : i32
    %c0_i32_0 = arith.constant 0 : i32
    %c0_i32_1 = arith.constant 0 : i32
    return %c0_i32, %c0_i32_0 : i32, i32
  }
  func.func @transform_3(%arg0: i32) -> (i32, i32) {
    %c0_i32 = arith.constant 0 : i32
    %c0_i32_0 = arith.constant 0 : i32
    return %arg0, %c0_i32 : i32, i32
  }
}

</mosaic_0001>

<bundles_post_ra>
// kernel: patch_embed_pallas.1
= control target key start
LH: loop header
LB: loop body
LE: loop exit
PB: predicated region body
PF: predicated region fallthrough
CT: control target
= control target key end

     0   :  { %s15556_s0 = inlined_call_operand.vmem [shape: bf16[16,12288], index: 0, kind: input, shape index: {}]   ;;  %s15557_s1 = inlined_call_operand.vmem [shape: bf16[12288,128], index: 1, kind: input, shape index: {}]   ;;  %s15558_s2 = inlined_call_operand.vmem [shape: f32[1,128], index: 2, kind: input, shape index: {}]   ;;  %s15559_s3 = inlined_call_operand.hbm [shape: f32[16,128], index: 3, kind: output, shape index: {}]  }
   0x1   :  { %v11664_v0 = vld [vmem:[%s15557_s1 + $0x38] sm:$0xff]  ;;  %v11663_v4 = vld [vmem:[%s15557_s1 + $0x30] sm:$0xff]  ;;  %v11662_v8 = vld [vmem:[%s15557_s1 + $0x28] sm:$0xff] }
   0x2   :  { %v11672_v1 = vld [vmem:[%s15557_s1 + $0x78] sm:$0xff]  ;;  %6736 = vmatpush.bf16.msra.mxu0 %v11664_v0  ;;  %v11671_v5 = vld [vmem:[%s15557_s1 + $0x70] sm:$0xff]  ;;  %v11670_v9 = vld [vmem:[%s15557_s1 + $0x68] sm:$0xff] }
   0x3   :  { %v11680_v2 = vld [vmem:[%s15557_s1 + $0xb8] sm:$0xff]  ;;  %6750 = vmatpush.bf16.msra.mxu1 %v11672_v1  ;;  %v11679_v6 = vld [vmem:[%s15557_s1 + $0xb0] sm:$0xff]  ;;  %v11678_v10 = vld [vmem:[%s15557_s1 + $0xa8] sm:$0xff] }
   0x4   :  { %v11688_v3 = vld [vmem:[%s15557_s1 + $0xf8] sm:$0xff]  ;;  %6764 = vmatpush.bf16.msra.mxu2 %v11680_v2  ;;  %v11687_v7 = vld [vmem:[%s15557_s1 + $0xf0] sm:$0xff]  ;;  %v11686_v11 = vld [vmem:[%s15557_s1 + $0xe8] sm:$0xff] }
   0x5   :  { %6778 = vmatpush.bf16.msra.mxu3 %v11688_v3  ;;  %v11661_v12 = vld [vmem:[%s15557_s1 + $0x20] sm:$0xff]  ;;  %v11660_v16 = vld [vmem:[%s15557_s1 + $0x18] sm:$0xff]  ;;  %v11659_v20 = vld [vmem:[%s15557_s1 + $0x10] sm:$0xff] }
   0x6   :  { %6737 = vmatpush.bf16.msra.mxu0 %v11663_v4  ;;  %v11669_v13 = vld [vmem:[%s15557_s1 + $0x60] sm:$0xff]  ;;  %v11668_v17 = vld [vmem:[%s15557_s1 + $0x58] sm:$0xff]  ;;  %v11667_v21 = vld [vmem:[%s15557_s1 + $0x50] sm:$0xff] }
   0x7   :  { %6751 = vmatpush.bf16.msra.mxu1 %v11671_v5  ;;  %v11677_v14 = vld [vmem:[%s15557_s1 + $0xa0] sm:$0xff]  ;;  %v11676_v18 = vld [vmem:[%s15557_s1 + $0x98] sm:$0xff]  ;;  %v11675_v22 = vld [vmem:[%s15557_s1 + $0x90] sm:$0xff] }
   0x8   :  { %6765 = vmatpush.bf16.msra.mxu2 %v11679_v6  ;;  %v11685_v15 = vld [vmem:[%s15557_s1 + $0xe0] sm:$0xff]  ;;  %v11684_v19 = vld [vmem:[%s15557_s1 + $0xd8] sm:$0xff]  ;;  %v11683_v23 = vld [vmem:[%s15557_s1 + $0xd0] sm:$0xff] }
   0x9   :  { %6779 = vmatpush.bf16.msra.mxu3 %v11687_v7  ;;  %v11658_v24 = vld [vmem:[%s15557_s1 + $0x8] sm:$0xff] }
   0xa   :  { %6738 = vmatpush.bf16.msra.mxu0 %v11662_v8  ;;  %v11666_v25 = vld [vmem:[%s15557_s1 + $0x48] sm:$0xff] }
   0xb   :  { %6752 = vmatpush.bf16.msra.mxu1 %v11670_v9 }
   0xc   :  { %6766 = vmatpush.bf16.msra.mxu2 %v11678_v10 }
   0xd   :  { %6780 = vmatpush.bf16.msra.mxu3 %v11686_v11 }
   0xe   :  { %6739 = vmatpush.bf16.msra.mxu0 %v11661_v12 }
   0xf   :  { %6753 = vmatpush.bf16.msra.mxu1 %v11669_v13 }
  0x10   :  { %6767 = vmatpush.bf16.msra.mxu2 %v11677_v14 }
  0x11   :  { %6781 = vmatpush.bf16.msra.mxu3 %v11685_v15 }
  0x12   :  { %6740 = vmatpush.bf16.msra.mxu0 %v11660_v16 }
  0x13   :  { %6754 = vmatpush.bf16.msra.mxu1 %v11668_v17 }
  0x14   :  { %6768 = vmatpush.bf16.msra.mxu2 %v11676_v18 }
  0x15   :  { %6782 = vmatpush.bf16.msra.mxu3 %v11684_v19 }
  0x16   :  { %6741 = vmatpush.bf16.msra.mxu0 %v11659_v20 }
  0x17   :  { %6755 = vmatpush.bf16.msra.mxu1 %v11667_v21 }
  0x18   :  { %8 = vsyncpa [#allocation3], 0  ;;  %6769 = vmatpush.bf16.msra.mxu2 %v11675_v22  ;;  %v11674_v26 = vld [vmem:[%s15557_s1 + $0x88] sm:$0xff]  ;;  %v11657_v28 = vld [vmem:[%s15557_s1] sm:$0xff]  ;;  %s12455_s15 = smov [#allocation2]   ;;  %s8093_s19 = sshll.u32 %s15559_s3, 4  ;;  %s8094_s19 = int_to_ptr.hbm [resolvable:$true] %s8093_s19 }
  0x19   :  { %6783 = vmatpush.bf16.msra.mxu3 %v11683_v23  ;;  %v11682_v27 = vld [vmem:[%s15557_s1 + $0xc8] sm:$0xff]  ;;  %v11665_v29 = vld [vmem:[%s15557_s1 + $0x40] sm:$0xff]  ;;  %v11696_v32 = vld [vmem:[%s15557_s1 + $0x138] sm:$0xff]  ;;  %s8091_s16 = sshll.u32 %s12455_s15, 4  ;;  %s12457_s20 = smov 8   ;;  %s8092_s16 = int_to_ptr.vmem [resolvable:$true] %s8091_s16 }
  0x1a   :  { %v11673_v30 = vld [vmem:[%s15557_s1 + $0x80] sm:$0xff]  ;;  %6742 = vmatpush.bf16.msra.mxu0 %v11658_v24  ;;  %v11704_v33 = vld [vmem:[%s15557_s1 + $0x178] sm:$0xff]  ;;  %v8115_v36 = vld [vmem:[%s15556_s0 + $0x8] sm:$0xf] }
  0x1b   :  { %v11681_v31 = vld [vmem:[%s15557_s1 + $0xc0] sm:$0xff]  ;;  %6756 = vmatpush.bf16.msra.mxu1 %v11666_v25  ;;  %v11610_v37 = vld [vmem:[%s15556_s0 + $0x184] sm:$0xf0]  ;;  %v11562_v40 = vld [vmem:[%s15556_s0 + $0xc] sm:$0xf] }
  0x1c   :  { %v8107_v34 = vld [vmem:[%s15556_s0] sm:$0xf]  ;;  %6770 = vmatpush.bf16.msra.mxu2 %v11674_v26  ;;  %v11561_v38 = vld [vmem:[%s15556_s0 + $0x4] sm:$0xf]  ;;  %v8117_v41 = vld [vmem:[%s15556_s0 + $0x188] sm:$0xf0]  ;;  %v8116_v45 = vor.u32 %v11610_v37, %v8115_v36 }
  0x1d   :  { %v11609_v35 = vld [vmem:[%s15556_s0 + $0x17c] sm:$0xf0]  ;;  %6784 = vmatpush.bf16.msra.mxu3 %v11682_v27  ;;  %v8109_v39 = vld [vmem:[%s15556_s0 + $0x180] sm:$0xf0]  ;;  %v11712_v42 = vld [vmem:[%s15557_s1 + $0x1b8] sm:$0xff]  ;;  %v8120_v47 = vor.u32 %v11562_v40, %v8117_v41 }
  0x1e   :  { %v11720_v43 = vld [vmem:[%s15557_s1 + $0x1f8] sm:$0xff]  ;;  %6743 = vmatpush.bf16.msra.mxu0 %v11657_v28  ;;  %v8108_v44 = vor.u32 %v11609_v35, %v8107_v34  ;;  %v8112_v46 = vor.u32 %v11561_v38, %v8109_v39  ;;  %v11695_v48 = vld [vmem:[%s15557_s1 + $0x130] sm:$0xff]  ;;  %v11694_v52 = vld [vmem:[%s15557_s1 + $0x128] sm:$0xff] }
  0x1f   :  { %6757 = vmatpush.bf16.msra.mxu1 %v11665_v29  ;;  %v11703_v49 = vld [vmem:[%s15557_s1 + $0x170] sm:$0xff]  ;;  %v11702_v53 = vld [vmem:[%s15557_s1 + $0x168] sm:$0xff]  ;;  %v11693_v56 = vld [vmem:[%s15557_s1 + $0x120] sm:$0xff] }
  0x20   :  { %6771 = vmatpush.bf16.msra.mxu2 %v11673_v30  ;;  %v11711_v50 = vld [vmem:[%s15557_s1 + $0x1b0] sm:$0xff]  ;;  %v11710_v54 = vld [vmem:[%s15557_s1 + $0x1a8] sm:$0xff]  ;;  %v11701_v57 = vld [vmem:[%s15557_s1 + $0x160] sm:$0xff] }
  0x21   :  { %6785 = vmatpush.bf16.msra.mxu3 %v11681_v31  ;;  %v11719_v51 = vld [vmem:[%s15557_s1 + $0x1f0] sm:$0xff]  ;;  %6744 = vmatmul.bf16.vlgmr.msra.gmra.mxu0 %v8108_v44  ;;  %v11718_v55 = vld [vmem:[%s15557_s1 + $0x1e8] sm:$0xff]  ;;  %v11709_v58 = vld [vmem:[%s15557_s1 + $0x1a0] sm:$0xff] }
  0x22   :  { %6792 = vmatpush.bf16.msrb.mxu0 %v11696_v32  ;;  %6758 = vmatmul.bf16.vlgmr.msra.gmra.mxu1 %v8112_v46  ;;  %v11717_v59 = vld [vmem:[%s15557_s1 + $0x1e0] sm:$0xff]  ;;  %v11692_v60 = vld [vmem:[%s15557_s1 + $0x118] sm:$0xff]  ;;  %v11691_v0 = vld [vmem:[%s15557_s1 + $0x110] sm:$0xff] }
  0x23   :  { %6806 = vmatpush.bf16.msrb.mxu1 %v11704_v33  ;;  %6772 = vmatmul.bf16.vlgmr.msra.gmra.mxu2 %v8116_v45  ;;  %v11700_v61 = vld [vmem:[%s15557_s1 + $0x158] sm:$0xff]  ;;  %v11699_v1 = vld [vmem:[%s15557_s1 + $0x150] sm:$0xff]  ;;  %v11690_v4 = vld [vmem:[%s15557_s1 + $0x108] sm:$0xff] }
  0x24   :  { %6820 = vmatpush.bf16.msrb.mxu2 %v11712_v42  ;;  %6786 = vmatmul.bf16.vlgmr.msra.gmra.mxu3 %v8120_v47  ;;  %v11708_v62 = vld [vmem:[%s15557_s1 + $0x198] sm:$0xff]  ;;  %v11707_v2 = vld [vmem:[%s15557_s1 + $0x190] sm:$0xff]  ;;  %v11698_v5 = vld [vmem:[%s15557_s1 + $0x148] sm:$0xff] }
  0x25   :  { %6834 = vmatpush.bf16.msrb.mxu3 %v11720_v43  ;;  %v11716_v63 = vld [vmem:[%s15557_s1 + $0x1d8] sm:$0xff]  ;;  %v11715_v3 = vld [vmem:[%s15557_s1 + $0x1d0] sm:$0xff]  ;;  %v11706_v6 = vld [vmem:[%s15557_s1 + $0x188] sm:$0xff] }
  0x26   :  { %6793 = vmatpush.bf16.msrb.mxu0 %v11695_v48  ;;  %v11714_v7 = vld [vmem:[%s15557_s1 + $0x1c8] sm:$0xff]  ;;  %v11689_v8 = vld [vmem:[%s15557_s1 + $0x100] sm:$0xff]  ;;  %v11728_v12 = vld [vmem:[%s15557_s1 + $0x238] sm:$0xff] }
  0x27   :  { %6807 = vmatpush.bf16.msrb.mxu1 %v11703_v49  ;;  %v11697_v9 = vld [vmem:[%s15557_s1 + $0x140] sm:$0xff]  ;;  %v11736_v13 = vld [vmem:[%s15557_s1 + $0x278] sm:$0xff]  ;;  %v8123_v14 = vld [vmem:[%s15556_s0 + $0x10] sm:$0xf] }
  0x28   :  { %6821 = vmatpush.bf16.msrb.mxu2 %v11711_v50  ;;  %v11705_v10 = vld [vmem:[%s15557_s1 + $0x180] sm:$0xff]  ;;  %v11611_v15 = vld [vmem:[%s15556_s0 + $0x18c] sm:$0xf0]  ;;  %v8131_v16 = vld [vmem:[%s15556_s0 + $0x18] sm:$0xf] }
  0x29   :  { %6835 = vmatpush.bf16.msrb.mxu3 %v11719_v51  ;;  %v11713_v11 = vld [vmem:[%s15557_s1 + $0x1c0] sm:$0xff]  ;;  %v11612_v17 = vld [vmem:[%s15556_s0 + $0x194] sm:$0xf0]  ;;  %v11563_v18 = vld [vmem:[%s15556_s0 + $0x14] sm:$0xf]  ;;  %v8124_v24 = vor.u32 %v11611_v15, %v8123_v14 }
  0x2a   :  { %6794 = vmatpush.bf16.msrb.mxu0 %v11694_v52  ;;  %v8125_v19 = vld [vmem:[%s15556_s0 + $0x190] sm:$0xf0]  ;;  %v11564_v20 = vld [vmem:[%s15556_s0 + $0x1c] sm:$0xf]  ;;  %v8132_v25 = vor.u32 %v11612_v17, %v8131_v16  ;;  %v11726_v32 = vld [vmem:[%s15557_s1 + $0x228] sm:$0xff] }
  0x2b   :  { %6808 = vmatpush.bf16.msrb.mxu1 %v11702_v53  ;;  %v8133_v21 = vld [vmem:[%s15556_s0 + $0x198] sm:$0xf0]  ;;  %v8128_v26 = vor.u32 %v11563_v18, %v8125_v19  ;;  %v11727_v28 = vld [vmem:[%s15557_s1 + $0x230] sm:$0xff]  ;;  %v11734_v33 = vld [vmem:[%s15557_s1 + $0x268] sm:$0xff] }
  0x2c   :  { %6822 = vmatpush.bf16.msrb.mxu2 %v11710_v54  ;;  %v11744_v22 = vld [vmem:[%s15557_s1 + $0x2b8] sm:$0xff]  ;;  %v8136_v27 = vor.u32 %v11564_v20, %v8133_v21  ;;  %v11735_v29 = vld [vmem:[%s15557_s1 + $0x270] sm:$0xff]  ;;  %v11742_v34 = vld [vmem:[%s15557_s1 + $0x2a8] sm:$0xff] }
  0x2d   :  { %6836 = vmatpush.bf16.msrb.mxu3 %v11718_v55  ;;  %v11752_v23 = vld [vmem:[%s15557_s1 + $0x2f8] sm:$0xff]  ;;  %v11743_v30 = vld [vmem:[%s15557_s1 + $0x2b0] sm:$0xff]  ;;  %v11750_v35 = vld [vmem:[%s15557_s1 + $0x2e8] sm:$0xff] }
  0x2e   :  { %6795 = vmatpush.bf16.msrb.mxu0 %v11693_v56  ;;  %v11751_v31 = vld [vmem:[%s15557_s1 + $0x2f0] sm:$0xff]  ;;  %v11725_v36 = vld [vmem:[%s15557_s1 + $0x220] sm:$0xff]  ;;  %v11724_v40 = vld [vmem:[%s15557_s1 + $0x218] sm:$0xff] }
  0x2f   :  { %6809 = vmatpush.bf16.msrb.mxu1 %v11701_v57  ;;  %v11733_v37 = vld [vmem:[%s15557_s1 + $0x260] sm:$0xff]  ;;  %v11732_v41 = vld [vmem:[%s15557_s1 + $0x258] sm:$0xff]  ;;  %v11723_v44 = vld [vmem:[%s15557_s1 + $0x210] sm:$0xff] }
  0x30   :  { %6823 = vmatpush.bf16.msrb.mxu2 %v11709_v58  ;;  %v11741_v38 = vld [vmem:[%s15557_s1 + $0x2a0] sm:$0xff]  ;;  %v11740_v42 = vld [vmem:[%s15557_s1 + $0x298] sm:$0xff]  ;;  %v11731_v45 = vld [vmem:[%s15557_s1 + $0x250] sm:$0xff] }
  0x31   :  { %6837 = vmatpush.bf16.msrb.mxu3 %v11717_v59  ;;  %v11749_v39 = vld [vmem:[%s15557_s1 + $0x2e0] sm:$0xff]  ;;  %v11748_v43 = vld [vmem:[%s15557_s1 + $0x2d8] sm:$0xff]  ;;  %v11739_v46 = vld [vmem:[%s15557_s1 + $0x290] sm:$0xff] }
  0x32   :  { %6796 = vmatpush.bf16.msrb.mxu0 %v11692_v60  ;;  %v11747_v47 = vld [vmem:[%s15557_s1 + $0x2d0] sm:$0xff]  ;;  %v11722_v48 = vld [vmem:[%s15557_s1 + $0x208] sm:$0xff]  ;;  %v11721_v52 = vld [vmem:[%s15557_s1 + $0x200] sm:$0xff] }
  0x33   :  { %6810 = vmatpush.bf16.msrb.mxu1 %v11700_v61  ;;  %v11730_v49 = vld [vmem:[%s15557_s1 + $0x248] sm:$0xff]  ;;  %v11729_v53 = vld [vmem:[%s15557_s1 + $0x240] sm:$0xff]  ;;  %v11760_v56 = vld [vmem:[%s15557_s1 + $0x338] sm:$0xff] }
  0x34   :  { %6824 = vmatpush.bf16.msrb.mxu2 %v11708_v62  ;;  %v11738_v50 = vld [vmem:[%s15557_s1 + $0x288] sm:$0xff]  ;;  %v11737_v54 = vld [vmem:[%s15557_s1 + $0x280] sm:$0xff]  ;;  %v11768_v57 = vld [vmem:[%s15557_s1 + $0x378] sm:$0xff] }
  0x35   :  { %6838 = vmatpush.bf16.msrb.mxu3 %v11716_v63  ;;  %v11746_v51 = vld [vmem:[%s15557_s1 + $0x2c8] sm:$0xff]  ;;  %v11745_v55 = vld [vmem:[%s15557_s1 + $0x2c0] sm:$0xff]  ;;  %v11756_v20 = vld [vmem:[%s15557_s1 + $0x318] sm:$0xff] }
  0x36   :  { %6797 = vmatpush.bf16.msrb.mxu0 %v11691_v0  ;;  %v8139_v58 = vld [vmem:[%s15556_s0 + $0x20] sm:$0xf]  ;;  %v8147_v60 = vld [vmem:[%s15556_s0 + $0x28] sm:$0xf]  ;;  %v11565_v62 = vld [vmem:[%s15556_s0 + $0x24] sm:$0xf] }
  0x37   :  { %6811 = vmatpush.bf16.msrb.mxu1 %v11699_v1  ;;  %v11613_v59 = vld [vmem:[%s15556_s0 + $0x19c] sm:$0xf0]  ;;  %v11614_v61 = vld [vmem:[%s15556_s0 + $0x1a4] sm:$0xf0]  ;;  %v8141_v63 = vld [vmem:[%s15556_s0 + $0x1a0] sm:$0xf0] }
  0x38   :  { %6825 = vmatpush.bf16.msrb.mxu2 %v11707_v2  ;;  %v11566_v0 = vld [vmem:[%s15556_s0 + $0x2c] sm:$0xf]  ;;  %v11776_v2 = vld [vmem:[%s15557_s1 + $0x3b8] sm:$0xff]  ;;  %v11757_v16 = vld [vmem:[%s15557_s1 + $0x320] sm:$0xff] }
  0x39   :  { %6839 = vmatpush.bf16.msrb.mxu3 %v11715_v3  ;;  %v8149_v1 = vld [vmem:[%s15556_s0 + $0x1a8] sm:$0xf0]  ;;  %v11784_v3 = vld [vmem:[%s15557_s1 + $0x3f8] sm:$0xff]  ;;  %v11765_v17 = vld [vmem:[%s15557_s1 + $0x360] sm:$0xff] }
  0x3a   :  { %6798 = vmatpush.bf16.msrb.mxu0 %v11690_v4  ;;  %v8140_v4 = vor.u32 %v11613_v59, %v8139_v58  ;;  %v11774_v14 = vld [vmem:[%s15557_s1 + $0x3a8] sm:$0xff]  ;;  %v11773_v18 = vld [vmem:[%s15557_s1 + $0x3a0] sm:$0xff]  ;;  %v11764_v21 = vld [vmem:[%s15557_s1 + $0x358] sm:$0xff] }
  0x3b   :  { %6812 = vmatpush.bf16.msrb.mxu1 %v11698_v5  ;;  %v8148_v5 = vor.u32 %v11614_v61, %v8147_v60  ;;  %v11782_v15 = vld [vmem:[%s15557_s1 + $0x3e8] sm:$0xff]  ;;  %v11781_v19 = vld [vmem:[%s15557_s1 + $0x3e0] sm:$0xff] }
  0x3c   :  { %6826 = vmatpush.bf16.msrb.mxu2 %v11706_v6  ;;  %v8144_v6 = vor.u32 %v11565_v62, %v8141_v63  ;;  %v11806_v58 = vld [vmem:[%s15557_s1 + $0x4a8] sm:$0xff]  ;;  %v11789_v60 = vld [vmem:[%s15557_s1 + $0x420] sm:$0xff] }
  0x3d   :  { %6840 = vmatpush.bf16.msrb.mxu3 %v11714_v7  ;;  %v8152_v7 = vor.u32 %v11566_v0, %v8149_v1  ;;  %v11814_v59 = vld [vmem:[%s15557_s1 + $0x4e8] sm:$0xff]  ;;  %v11797_v61 = vld [vmem:[%s15557_s1 + $0x460] sm:$0xff]  ;;  %v11788_v0 = vld [vmem:[%s15557_s1 + $0x418] sm:$0xff] }
  0x3e   :  { %6799 = vmatpush.bf16.msrb.mxu0 %v11689_v8  ;;  %v11759_v8 = vld [vmem:[%s15557_s1 + $0x330] sm:$0xff]  ;;  %v11805_v62 = vld [vmem:[%s15557_s1 + $0x4a0] sm:$0xff]  ;;  %v11796_v1 = vld [vmem:[%s15557_s1 + $0x458] sm:$0xff] }
  0x3f   :  { %6813 = vmatpush.bf16.msrb.mxu1 %v11697_v9  ;;  %v11767_v9 = vld [vmem:[%s15557_s1 + $0x370] sm:$0xff]  ;;  %v11813_v63 = vld [vmem:[%s15557_s1 + $0x4e0] sm:$0xff] }
  0x40   :  { %6827 = vmatpush.bf16.msrb.mxu2 %v11705_v10  ;;  %v11775_v10 = vld [vmem:[%s15557_s1 + $0x3b0] sm:$0xff] }
  0x41   :  { %6841 = vmatpush.bf16.msrb.mxu3 %v11713_v11  ;;  %6800 = vmatmul.bf16.vlgmr.msrb.gmra.mxu0 %v8124_v24  ;;  %v11783_v11 = vld [vmem:[%s15557_s1 + $0x3f0] sm:$0xff] }
  0x42   :  { %6848 = vmatpush.bf16.msra.mxu0 %v11728_v12  ;;  %6814 = vmatmul.bf16.vlgmr.msrb.gmra.mxu1 %v8128_v26  ;;  %v11758_v12 = vld [vmem:[%s15557_s1 + $0x328] sm:$0xff]  ;;  %v11755_v24 = vld [vmem:[%s15557_s1 + $0x310] sm:$0xff] }
  0x43   :  { %6862 = vmatpush.bf16.msra.mxu1 %v11736_v13  ;;  %6828 = vmatmul.bf16.vlgmr.msrb.gmra.mxu2 %v8132_v25  ;;  %v11766_v13 = vld [vmem:[%s15557_s1 + $0x368] sm:$0xff]  ;;  %v11763_v25 = vld [vmem:[%s15557_s1 + $0x350] sm:$0xff] }
  0x44   :  { %6876 = vmatpush.bf16.msra.mxu2 %v11744_v22  ;;  %6842 = vmatmul.bf16.vlgmr.msrb.gmra.mxu3 %v8136_v27  ;;  %v11772_v22 = vld [vmem:[%s15557_s1 + $0x398] sm:$0xff]  ;;  %v11771_v26 = vld [vmem:[%s15557_s1 + $0x390] sm:$0xff] }
  0x45   :  { %6890 = vmatpush.bf16.msra.mxu3 %v11752_v23  ;;  %v11780_v23 = vld [vmem:[%s15557_s1 + $0x3d8] sm:$0xff]  ;;  %v11779_v27 = vld [vmem:[%s15557_s1 + $0x3d0] sm:$0xff] }
  0x46   :  { %6849 = vmatpush.bf16.msra.mxu0 %v11727_v28  ;;  %v11754_v28 = vld [vmem:[%s15557_s1 + $0x308] sm:$0xff] }
  0x47   :  { %6863 = vmatpush.bf16.msra.mxu1 %v11735_v29  ;;  %v11762_v29 = vld [vmem:[%s15557_s1 + $0x348] sm:$0xff] }
  0x48   :  { %6877 = vmatpush.bf16.msra.mxu2 %v11743_v30  ;;  %v11770_v30 = vld [vmem:[%s15557_s1 + $0x388] sm:$0xff] }
  0x49   :  { %6891 = vmatpush.bf16.msra.mxu3 %v11751_v31  ;;  %v11778_v31 = vld [vmem:[%s15557_s1 + $0x3c8] sm:$0xff] }
  0x4a   :  { %6850 = vmatpush.bf16.msra.mxu0 %v11726_v32  ;;  %v11753_v32 = vld [vmem:[%s15557_s1 + $0x300] sm:$0xff] }
  0x4b   :  { %6864 = vmatpush.bf16.msra.mxu1 %v11734_v33  ;;  %v11761_v33 = vld [vmem:[%s15557_s1 + $0x340] sm:$0xff] }
  0x4c   :  { %6878 = vmatpush.bf16.msra.mxu2 %v11742_v34  ;;  %v11769_v34 = vld [vmem:[%s15557_s1 + $0x380] sm:$0xff] }
  0x4d   :  { %6892 = vmatpush.bf16.msra.mxu3 %v11750_v35  ;;  %v11777_v35 = vld [vmem:[%s15557_s1 + $0x3c0] sm:$0xff] }
  0x4e   :  { %6851 = vmatpush.bf16.msra.mxu0 %v11725_v36  ;;  %v11792_v36 = vld [vmem:[%s15557_s1 + $0x438] sm:$0xff] }
  0x4f   :  { %6865 = vmatpush.bf16.msra.mxu1 %v11733_v37  ;;  %v11800_v37 = vld [vmem:[%s15557_s1 + $0x478] sm:$0xff] }
  0x50   :  { %6879 = vmatpush.bf16.msra.mxu2 %v11741_v38  ;;  %v8155_v38 = vld [vmem:[%s15556_s0 + $0x30] sm:$0xf] }
  0x51   :  { %6893 = vmatpush.bf16.msra.mxu3 %v11749_v39  ;;  %v11615_v39 = vld [vmem:[%s15556_s0 + $0x1ac] sm:$0xf0] }
  0x52   :  { %6852 = vmatpush.bf16.msra.mxu0 %v11724_v40  ;;  %v8163_v40 = vld [vmem:[%s15556_s0 + $0x38] sm:$0xf] }
  0x53   :  { %6866 = vmatpush.bf16.msra.mxu1 %v11732_v41  ;;  %v11616_v41 = vld [vmem:[%s15556_s0 + $0x1b4] sm:$0xf0] }
  0x54   :  { %6880 = vmatpush.bf16.msra.mxu2 %v11740_v42  ;;  %v11567_v42 = vld [vmem:[%s15556_s0 + $0x34] sm:$0xf] }
  0x55   :  { %6894 = vmatpush.bf16.msra.mxu3 %v11748_v43  ;;  %v8157_v43 = vld [vmem:[%s15556_s0 + $0x1b0] sm:$0xf0] }
  0x56   :  { %6853 = vmatpush.bf16.msra.mxu0 %v11723_v44  ;;  %v11568_v44 = vld [vmem:[%s15556_s0 + $0x3c] sm:$0xf] }
  0x57   :  { %6867 = vmatpush.bf16.msra.mxu1 %v11731_v45  ;;  %v8165_v45 = vld [vmem:[%s15556_s0 + $0x1b8] sm:$0xf0] }
  0x58   :  { %6881 = vmatpush.bf16.msra.mxu2 %v11739_v46  ;;  %v11808_v46 = vld [vmem:[%s15557_s1 + $0x4b8] sm:$0xff] }
  0x59   :  { %6895 = vmatpush.bf16.msra.mxu3 %v11747_v47  ;;  %v11816_v47 = vld [vmem:[%s15557_s1 + $0x4f8] sm:$0xff] }
  0x5a   :  { %6854 = vmatpush.bf16.msra.mxu0 %v11722_v48  ;;  %v8156_v48 = vor.u32 %v11615_v39, %v8155_v38  ;;  %v11838_v38 = vld [vmem:[%s15557_s1 + $0x5a8] sm:$0xff] }
  0x5b   :  { %6868 = vmatpush.bf16.msra.mxu1 %v11730_v49  ;;  %v8164_v49 = vor.u32 %v11616_v41, %v8163_v40  ;;  %v11846_v39 = vld [vmem:[%s15557_s1 + $0x5e8] sm:$0xff]  ;;  %v11821_v40 = vld [vmem:[%s15557_s1 + $0x520] sm:$0xff] }
  0x5c   :  { %6882 = vmatpush.bf16.msra.mxu2 %v11738_v50  ;;  %v8160_v50 = vor.u32 %v11567_v42, %v8157_v43  ;;  %v11829_v41 = vld [vmem:[%s15557_s1 + $0x560] sm:$0xff] }
  0x5d   :  { %6896 = vmatpush.bf16.msra.mxu3 %v11746_v51  ;;  %v8168_v51 = vor.u32 %v11568_v44, %v8165_v45  ;;  %v11837_v44 = vld [vmem:[%s15557_s1 + $0x5a0] sm:$0xff] }
  0x5e   :  { %6855 = vmatpush.bf16.msra.mxu0 %v11721_v52  ;;  %v11791_v52 = vld [vmem:[%s15557_s1 + $0x430] sm:$0xff]  ;;  %v11845_v45 = vld [vmem:[%s15557_s1 + $0x5e0] sm:$0xff] }
  0x5f   :  { %6869 = vmatpush.bf16.msra.mxu1 %v11729_v53  ;;  %v11799_v53 = vld [vmem:[%s15557_s1 + $0x470] sm:$0xff] }
  0x60   :  { %6883 = vmatpush.bf16.msra.mxu2 %v11737_v54  ;;  %v11807_v54 = vld [vmem:[%s15557_s1 + $0x4b0] sm:$0xff] }
  0x61   :  { %6897 = vmatpush.bf16.msra.mxu3 %v11745_v55  ;;  %6856 = vmatmul.bf16.vlgmr.msra.gmra.mxu0 %v8140_v4  ;;  %v11815_v55 = vld [vmem:[%s15557_s1 + $0x4f0] sm:$0xff] }
  0x62   :  { %6904 = vmatpush.bf16.msrb.mxu0 %v11760_v56  ;;  %6870 = vmatmul.bf16.vlgmr.msra.gmra.mxu1 %v8144_v6  ;;  %v11790_v56 = vld [vmem:[%s15557_s1 + $0x428] sm:$0xff]  ;;  %v11787_v4 = vld [vmem:[%s15557_s1 + $0x410] sm:$0xff] }
  0x63   :  { %6918 = vmatpush.bf16.msrb.mxu1 %v11768_v57  ;;  %6884 = vmatmul.bf16.vlgmr.msra.gmra.mxu2 %v8148_v5  ;;  %v11798_v57 = vld [vmem:[%s15557_s1 + $0x468] sm:$0xff]  ;;  %v11795_v5 = vld [vmem:[%s15557_s1 + $0x450] sm:$0xff] }
  0x64   :  { %6932 = vmatpush.bf16.msrb.mxu2 %v11776_v2  ;;  %6898 = vmatmul.bf16.vlgmr.msra.gmra.mxu3 %v8152_v7  ;;  %v11804_v2 = vld [vmem:[%s15557_s1 + $0x498] sm:$0xff]  ;;  %v11803_v6 = vld [vmem:[%s15557_s1 + $0x490] sm:$0xff] }
  0x65   :  { %6946 = vmatpush.bf16.msrb.mxu3 %v11784_v3  ;;  %v11812_v3 = vld [vmem:[%s15557_s1 + $0x4d8] sm:$0xff]  ;;  %v11811_v7 = vld [vmem:[%s15557_s1 + $0x4d0] sm:$0xff] }
  0x66   :  { %6905 = vmatpush.bf16.msrb.mxu0 %v11759_v8  ;;  %v11786_v8 = vld [vmem:[%s15557_s1 + $0x408] sm:$0xff] }
  0x67   :  { %6919 = vmatpush.bf16.msrb.mxu1 %v11767_v9  ;;  %v11794_v9 = vld [vmem:[%s15557_s1 + $0x448] sm:$0xff] }
  0x68   :  { %6933 = vmatpush.bf16.msrb.mxu2 %v11775_v10  ;;  %v11802_v10 = vld [vmem:[%s15557_s1 + $0x488] sm:$0xff] }
  0x69   :  { %6947 = vmatpush.bf16.msrb.mxu3 %v11783_v11  ;;  %v11810_v11 = vld [vmem:[%s15557_s1 + $0x4c8] sm:$0xff] }
  0x6a   :  { %6906 = vmatpush.bf16.msrb.mxu0 %v11758_v12  ;;  %v11785_v12 = vld [vmem:[%s15557_s1 + $0x400] sm:$0xff] }
  0x6b   :  { %6920 = vmatpush.bf16.msrb.mxu1 %v11766_v13  ;;  %v11793_v13 = vld [vmem:[%s15557_s1 + $0x440] sm:$0xff] }
  0x6c   :  { %6934 = vmatpush.bf16.msrb.mxu2 %v11774_v14  ;;  %v11801_v14 = vld [vmem:[%s15557_s1 + $0x480] sm:$0xff] }
  0x6d   :  { %6948 = vmatpush.bf16.msrb.mxu3 %v11782_v15  ;;  %v11809_v15 = vld [vmem:[%s15557_s1 + $0x4c0] sm:$0xff] }
  0x6e   :  { %6907 = vmatpush.bf16.msrb.mxu0 %v11757_v16  ;;  %v11824_v16 = vld [vmem:[%s15557_s1 + $0x538] sm:$0xff] }
  0x6f   :  { %6921 = vmatpush.bf16.msrb.mxu1 %v11765_v17  ;;  %v11832_v17 = vld [vmem:[%s15557_s1 + $0x578] sm:$0xff] }
  0x70   :  { %6935 = vmatpush.bf16.msrb.mxu2 %v11773_v18  ;;  %v8171_v18 = vld [vmem:[%s15556_s0 + $0x40] sm:$0xf] }
  0x71   :  { %6949 = vmatpush.bf16.msrb.mxu3 %v11781_v19  ;;  %v11617_v19 = vld [vmem:[%s15556_s0 + $0x1bc] sm:$0xf0] }
  0x72   :  { %6908 = vmatpush.bf16.msrb.mxu0 %v11756_v20  ;;  %v8179_v20 = vld [vmem:[%s15556_s0 + $0x48] sm:$0xf] }
  0x73   :  { %6922 = vmatpush.bf16.msrb.mxu1 %v11764_v21  ;;  %v11618_v21 = vld [vmem:[%s15556_s0 + $0x1c4] sm:$0xf0] }
  0x74   :  { %6936 = vmatpush.bf16.msrb.mxu2 %v11772_v22  ;;  %v11569_v22 = vld [vmem:[%s15556_s0 + $0x44] sm:$0xf] }
  0x75   :  { %6950 = vmatpush.bf16.msrb.mxu3 %v11780_v23  ;;  %v8173_v23 = vld [vmem:[%s15556_s0 + $0x1c0] sm:$0xf0] }
  0x76   :  { %6909 = vmatpush.bf16.msrb.mxu0 %v11755_v24  ;;  %v11570_v24 = vld [vmem:[%s15556_s0 + $0x4c] sm:$0xf] }
  0x77   :  { %6923 = vmatpush.bf16.msrb.mxu1 %v11763_v25  ;;  %v8181_v25 = vld [vmem:[%s15556_s0 + $0x1c8] sm:$0xf0] }
  0x78   :  { %6937 = vmatpush.bf16.msrb.mxu2 %v11771_v26  ;;  %v11840_v26 = vld [vmem:[%s15557_s1 + $0x5b8] sm:$0xff] }
  0x79   :  { %6951 = vmatpush.bf16.msrb.mxu3 %v11779_v27  ;;  %v11848_v27 = vld [vmem:[%s15557_s1 + $0x5f8] sm:$0xff] }
  0x7a   :  { %6910 = vmatpush.bf16.msrb.mxu0 %v11754_v28  ;;  %v8172_v28 = vor.u32 %v11617_v19, %v8171_v18 }
  0x7b   :  { %6924 = vmatpush.bf16.msrb.mxu1 %v11762_v29  ;;  %v8180_v29 = vor.u32 %v11618_v21, %v8179_v20  ;;  %v11855_v21 = vld [vmem:[%s15557_s1 + $0x630] sm:$0xff] }
  0x7c   :  { %6938 = vmatpush.bf16.msrb.mxu2 %v11770_v30  ;;  %v8176_v30 = vor.u32 %v11569_v22, %v8173_v23  ;;  %v11863_v22 = vld [vmem:[%s15557_s1 + $0x670] sm:$0xff] }
  0x7d   :  { %6952 = vmatpush.bf16.msrb.mxu3 %v11778_v31  ;;  %v8184_v31 = vor.u32 %v11570_v24, %v8181_v25  ;;  %v11871_v23 = vld [vmem:[%s15557_s1 + $0x6b0] sm:$0xff] }
  0x7e   :  { %6911 = vmatpush.bf16.msrb.mxu0 %v11753_v32  ;;  %v11823_v32 = vld [vmem:[%s15557_s1 + $0x530] sm:$0xff] }
  0x7f   :  { %6925 = vmatpush.bf16.msrb.mxu1 %v11761_v33  ;;  %v11831_v33 = vld [vmem:[%s15557_s1 + $0x570] sm:$0xff] }
  0x80   :  { %6939 = vmatpush.bf16.msrb.mxu2 %v11769_v34  ;;  %v11839_v34 = vld [vmem:[%s15557_s1 + $0x5b0] sm:$0xff] }
  0x81   :  { %6953 = vmatpush.bf16.msrb.mxu3 %v11777_v35  ;;  %6912 = vmatmul.bf16.vlgmr.msrb.gmra.mxu0 %v8156_v48  ;;  %v11847_v35 = vld [vmem:[%s15557_s1 + $0x5f0] sm:$0xff]  ;;  %v11828_v48 = vld [vmem:[%s15557_s1 + $0x558] sm:$0xff] }
  0x82   :  { %6960 = vmatpush.bf16.msra.mxu0 %v11792_v36  ;;  %6926 = vmatmul.bf16.vlgmr.msrb.gmra.mxu1 %v8160_v50  ;;  %v11822_v36 = vld [vmem:[%s15557_s1 + $0x528] sm:$0xff]  ;;  %v11844_v50 = vld [vmem:[%s15557_s1 + $0x5d8] sm:$0xff]  ;;  %v11879_v24 = vld [vmem:[%s15557_s1 + $0x6f0] sm:$0xff] }
  0x83   :  { %6974 = vmatpush.bf16.msra.mxu1 %v11800_v37  ;;  %6940 = vmatmul.bf16.vlgmr.msrb.gmra.mxu2 %v8164_v49  ;;  %v11830_v37 = vld [vmem:[%s15557_s1 + $0x568] sm:$0xff]  ;;  %v11836_v49 = vld [vmem:[%s15557_s1 + $0x598] sm:$0xff] }
  0x84   :  { %6988 = vmatpush.bf16.msra.mxu2 %v11808_v46  ;;  %6954 = vmatmul.bf16.vlgmr.msrb.gmra.mxu3 %v8168_v51 }
  0x85   :  { %7002 = vmatpush.bf16.msra.mxu3 %v11816_v47  ;;  %v11820_v47 = vld [vmem:[%s15557_s1 + $0x518] sm:$0xff] }
  0x86   :  { %6961 = vmatpush.bf16.msra.mxu0 %v11791_v52 }
  0x87   :  { %6975 = vmatpush.bf16.msra.mxu1 %v11799_v53 }
  0x88   :  { %6989 = vmatpush.bf16.msra.mxu2 %v11807_v54  ;;  %v11819_v54 = vld [vmem:[%s15557_s1 + $0x510] sm:$0xff] }
  0x89   :  { %7003 = vmatpush.bf16.msra.mxu3 %v11815_v55  ;;  %v11827_v55 = vld [vmem:[%s15557_s1 + $0x550] sm:$0xff] }
  0x8a   :  { %6962 = vmatpush.bf16.msra.mxu0 %v11790_v56 }
  0x8b   :  { %6976 = vmatpush.bf16.msra.mxu1 %v11798_v57  ;;  %v11835_v57 = vld [vmem:[%s15557_s1 + $0x590] sm:$0xff] }
  0x8c   :  { %6990 = vmatpush.bf16.msra.mxu2 %v11806_v58  ;;  %v11843_v58 = vld [vmem:[%s15557_s1 + $0x5d0] sm:$0xff] }
  0x8d   :  { %7004 = vmatpush.bf16.msra.mxu3 %v11814_v59  ;;  %v11818_v59 = vld [vmem:[%s15557_s1 + $0x508] sm:$0xff] }
  0x8e   :  { %6963 = vmatpush.bf16.msra.mxu0 %v11789_v60  ;;  %v11826_v60 = vld [vmem:[%s15557_s1 + $0x548] sm:$0xff] }
  0x8f   :  { %6977 = vmatpush.bf16.msra.mxu1 %v11797_v61  ;;  %v11834_v61 = vld [vmem:[%s15557_s1 + $0x588] sm:$0xff] }
  0x90   :  { %6991 = vmatpush.bf16.msra.mxu2 %v11805_v62  ;;  %v11842_v62 = vld [vmem:[%s15557_s1 + $0x5c8] sm:$0xff] }
  0x91   :  { %7005 = vmatpush.bf16.msra.mxu3 %v11813_v63  ;;  %v11817_v63 = vld [vmem:[%s15557_s1 + $0x500] sm:$0xff] }
  0x92   :  { %6964 = vmatpush.bf16.msra.mxu0 %v11788_v0  ;;  %v11825_v0 = vld [vmem:[%s15557_s1 + $0x540] sm:$0xff] }
  0x93   :  { %6978 = vmatpush.bf16.msra.mxu1 %v11796_v1  ;;  %v11833_v1 = vld [vmem:[%s15557_s1 + $0x580] sm:$0xff] }
  0x94   :  { %6992 = vmatpush.bf16.msra.mxu2 %v11804_v2  ;;  %v11841_v2 = vld [vmem:[%s15557_s1 + $0x5c0] sm:$0xff] }
  0x95   :  { %7006 = vmatpush.bf16.msra.mxu3 %v11812_v3  ;;  %v11856_v3 = vld [vmem:[%s15557_s1 + $0x638] sm:$0xff] }
  0x96   :  { %6965 = vmatpush.bf16.msra.mxu0 %v11787_v4  ;;  %v11864_v4 = vld [vmem:[%s15557_s1 + $0x678] sm:$0xff] }
  0x97   :  { %6979 = vmatpush.bf16.msra.mxu1 %v11795_v5  ;;  %v8187_v5 = vld [vmem:[%s15556_s0 + $0x50] sm:$0xf] }
  0x98   :  { %6993 = vmatpush.bf16.msra.mxu2 %v11803_v6  ;;  %v11619_v6 = vld [vmem:[%s15556_s0 + $0x1cc] sm:$0xf0] }
  0x99   :  { %7007 = vmatpush.bf16.msra.mxu3 %v11811_v7  ;;  %v8195_v7 = vld [vmem:[%s15556_s0 + $0x58] sm:$0xf] }
  0x9a   :  { %6966 = vmatpush.bf16.msra.mxu0 %v11786_v8  ;;  %v11620_v8 = vld [vmem:[%s15556_s0 + $0x1d4] sm:$0xf0] }
  0x9b   :  { %6980 = vmatpush.bf16.msra.mxu1 %v11794_v9  ;;  %v11571_v9 = vld [vmem:[%s15556_s0 + $0x54] sm:$0xf] }
  0x9c   :  { %6994 = vmatpush.bf16.msra.mxu2 %v11802_v10  ;;  %v8189_v10 = vld [vmem:[%s15556_s0 + $0x1d0] sm:$0xf0] }
  0x9d   :  { %7008 = vmatpush.bf16.msra.mxu3 %v11810_v11  ;;  %v11572_v11 = vld [vmem:[%s15556_s0 + $0x5c] sm:$0xf]  ;;  %v8192_v18 = vor.u32 %v11571_v9, %v8189_v10 }
  0x9e   :  { %6967 = vmatpush.bf16.msra.mxu0 %v11785_v12  ;;  %v6745_v42 = vpop.f32.mrf.mxu0  ;;  %v8197_v12 = vld [vmem:[%s15556_s0 + $0x1d8] sm:$0xf0] }
  0x9f   :  { %6981 = vmatpush.bf16.msra.mxu1 %v11793_v13  ;;  %v6759_v43 = vpop.f32.mrf.mxu1  ;;  %v11872_v13 = vld [vmem:[%s15557_s1 + $0x6b8] sm:$0xff]  ;;  %v8200_v19 = vor.u32 %v11572_v11, %v8197_v12 }
  0xa0   :  { %6995 = vmatpush.bf16.msra.mxu2 %v11801_v14  ;;  %v6760_v46 = vadd.f32 %v6759_v43, %v6745_v42  ;;  %v11880_v14 = vld [vmem:[%s15557_s1 + $0x6f8] sm:$0xff] }
  0xa1   :  { %7009 = vmatpush.bf16.msra.mxu3 %v11809_v15  ;;  %6968 = vmatmul.bf16.vlgmr.msra.gmra.mxu0 %v8172_v28  ;;  %v11870_v28 = vld [vmem:[%s15557_s1 + $0x6a8] sm:$0xff]  ;;  %v11876_v42 = vld [vmem:[%s15557_s1 + $0x6d8] sm:$0xff] }
  0xa2   :  { %7016 = vmatpush.bf16.msrb.mxu0 %v11824_v16  ;;  %6982 = vmatmul.bf16.vlgmr.msra.gmra.mxu1 %v8176_v30  ;;  %v8188_v16 = vor.u32 %v11619_v6, %v8187_v5  ;;  %v11904_v5 = vld [vmem:[%s15557_s1 + $0x7b8] sm:$0xff] }
  0xa3   :  { %7030 = vmatpush.bf16.msrb.mxu1 %v11832_v17  ;;  %6996 = vmatmul.bf16.vlgmr.msra.gmra.mxu2 %v8180_v29  ;;  %v8196_v17 = vor.u32 %v11620_v8, %v8195_v7  ;;  %v11878_v29 = vld [vmem:[%s15557_s1 + $0x6e8] sm:$0xff]  ;;  %v11912_v6 = vld [vmem:[%s15557_s1 + $0x7f8] sm:$0xff] }
  0xa4   :  { %7044 = vmatpush.bf16.msrb.mxu2 %v11840_v26  ;;  %7010 = vmatmul.bf16.vlgmr.msra.gmra.mxu3 %v8184_v31  ;;  %v11854_v26 = vld [vmem:[%s15557_s1 + $0x628] sm:$0xff] }
  0xa5   :  { %7058 = vmatpush.bf16.msrb.mxu3 %v11848_v27  ;;  %v11862_v27 = vld [vmem:[%s15557_s1 + $0x668] sm:$0xff] }
  0xa6   :  { %7017 = vmatpush.bf16.msrb.mxu0 %v11823_v32  ;;  %v6773_v51 = vpop.f32.mrf.mxu2  ;;  %v13212_v15 = vpop.f32.mrf.mxu0 }
  0xa7   :  { %7031 = vmatpush.bf16.msrb.mxu1 %v11831_v33  ;;  %v6774_v52 = vadd.f32 %v6773_v51, %v6760_v46  ;;  %v6787_v53 = vpop.f32.mrf.mxu3  ;;  %v13214_v20 = vpop.f32.mrf.mxu1  ;;  %v11853_v33 = vld [vmem:[%s15557_s1 + $0x620] sm:$0xff]  ;;  %v11850_v51 = vld [vmem:[%s15557_s1 + $0x608] sm:$0xff] }
  0xa8   :  { %7045 = vmatpush.bf16.msrb.mxu2 %v11839_v34  ;;  %v11861_v34 = vld [vmem:[%s15557_s1 + $0x660] sm:$0xff] }
  0xa9   :  { %7059 = vmatpush.bf16.msrb.mxu3 %v11847_v35  ;;  %v13144_v56 = vadd.f32 %v6787_v53, %v6774_v52  ;;  %v11869_v35 = vld [vmem:[%s15557_s1 + $0x6a0] sm:$0xff]  ;;  %v11858_v52 = vld [vmem:[%s15557_s1 + $0x648] sm:$0xff] }
  0xaa   :  { %7018 = vmatpush.bf16.msrb.mxu0 %v11822_v36  ;;  %v11877_v36 = vld [vmem:[%s15557_s1 + $0x6e0] sm:$0xff]  ;;  %v11866_v53 = vld [vmem:[%s15557_s1 + $0x688] sm:$0xff] }
  0xab   :  { %7032 = vmatpush.bf16.msrb.mxu1 %v11830_v37 }
  0xac   :  { %7046 = vmatpush.bf16.msrb.mxu2 %v11838_v38 }
  0xad   :  { %7060 = vmatpush.bf16.msrb.mxu3 %v11846_v39  ;;  %v11852_v39 = vld [vmem:[%s15557_s1 + $0x618] sm:$0xff] }
  0xae   :  { %7019 = vmatpush.bf16.msrb.mxu0 %v11821_v40  ;;  %v13228_v25 = vpop.f32.mrf.mxu2  ;;  %v11860_v40 = vld [vmem:[%s15557_s1 + $0x658] sm:$0xff] }
  0xaf   :  { %7033 = vmatpush.bf16.msrb.mxu1 %v11829_v41  ;;  %v13242_v30 = vpop.f32.mrf.mxu3  ;;  %v11868_v41 = vld [vmem:[%s15557_s1 + $0x698] sm:$0xff] }
  0xb0   :  { %7047 = vmatpush.bf16.msrb.mxu2 %v11837_v44 }
  0xb1   :  { %7061 = vmatpush.bf16.msrb.mxu3 %v11845_v45 }
  0xb2   :  { %7020 = vmatpush.bf16.msrb.mxu0 %v11820_v47  ;;  %v11851_v47 = vld [vmem:[%s15557_s1 + $0x610] sm:$0xff] }
  0xb3   :  { %7034 = vmatpush.bf16.msrb.mxu1 %v11828_v48  ;;  %v11859_v48 = vld [vmem:[%s15557_s1 + $0x650] sm:$0xff] }
  0xb4   :  { %7048 = vmatpush.bf16.msrb.mxu2 %v11836_v49  ;;  %v11867_v49 = vld [vmem:[%s15557_s1 + $0x690] sm:$0xff] }
  0xb5   :  { %7062 = vmatpush.bf16.msrb.mxu3 %v11844_v50  ;;  %v11875_v50 = vld [vmem:[%s15557_s1 + $0x6d0] sm:$0xff] }
  0xb6   :  { %7021 = vmatpush.bf16.msrb.mxu0 %v11819_v54  ;;  %v11874_v54 = vld [vmem:[%s15557_s1 + $0x6c8] sm:$0xff] }
  0xb7   :  { %7035 = vmatpush.bf16.msrb.mxu1 %v11827_v55  ;;  %v11849_v55 = vld [vmem:[%s15557_s1 + $0x600] sm:$0xff] }
  0xb8   :  { %7049 = vmatpush.bf16.msrb.mxu2 %v11835_v57  ;;  %v11865_v57 = vld [vmem:[%s15557_s1 + $0x680] sm:$0xff] }
  0xb9   :  { %7063 = vmatpush.bf16.msrb.mxu3 %v11843_v58  ;;  %v11873_v58 = vld [vmem:[%s15557_s1 + $0x6c0] sm:$0xff] }
  0xba   :  { %7022 = vmatpush.bf16.msrb.mxu0 %v11818_v59  ;;  %v11888_v59 = vld [vmem:[%s15557_s1 + $0x738] sm:$0xff] }
  0xbb   :  { %7036 = vmatpush.bf16.msrb.mxu1 %v11826_v60  ;;  %v11896_v60 = vld [vmem:[%s15557_s1 + $0x778] sm:$0xff] }
  0xbc   :  { %7050 = vmatpush.bf16.msrb.mxu2 %v11834_v61  ;;  %v8203_v61 = vld [vmem:[%s15556_s0 + $0x60] sm:$0xf] }
  0xbd   :  { %7064 = vmatpush.bf16.msrb.mxu3 %v11842_v62  ;;  %v11621_v62 = vld [vmem:[%s15556_s0 + $0x1dc] sm:$0xf0] }
  0xbe   :  { %7023 = vmatpush.bf16.msrb.mxu0 %v11817_v63  ;;  %v6801_v31 = vpop.f32.mrf.mxu0  ;;  %v8211_v63 = vld [vmem:[%s15556_s0 + $0x68] sm:$0xf]  ;;  %v8204_v7 = vor.u32 %v11621_v62, %v8203_v61  ;;  %v11575_v61 = vld [vmem:[%s15556_s0 + $0x74] sm:$0xf] }
  0xbf   :  { %7037 = vmatpush.bf16.msrb.mxu1 %v11825_v0  ;;  %v6802_v32 = vadd.f32 %v6801_v31, %v13144_v56  ;;  %v6815_v37 = vpop.f32.mrf.mxu1  ;;  %v11857_v56 = vld [vmem:[%s15557_s1 + $0x640] sm:$0xff]  ;;  %v11622_v0 = vld [vmem:[%s15556_s0 + $0x1e4] sm:$0xf0]  ;;  %v8221_v62 = vld [vmem:[%s15556_s0 + $0x1f0] sm:$0xf0] }
  0xc0   :  { %7051 = vmatpush.bf16.msrb.mxu2 %v11833_v1  ;;  %v11573_v1 = vld [vmem:[%s15556_s0 + $0x64] sm:$0xf]  ;;  %v8212_v8 = vor.u32 %v11622_v0, %v8211_v63  ;;  %v11576_v63 = vld [vmem:[%s15556_s0 + $0x7c] sm:$0xf] }
  0xc1   :  { %7065 = vmatpush.bf16.msrb.mxu3 %v11841_v2  ;;  %7024 = vmatmul.bf16.vlgmr.msrb.gmra.mxu0 %v8188_v16  ;;  %v6816_v38 = vadd.f32 %v6815_v37, %v6802_v32  ;;  %v8205_v2 = vld [vmem:[%s15556_s0 + $0x1e0] sm:$0xf0]  ;;  %v11903_v16 = vld [vmem:[%s15557_s1 + $0x7b0] sm:$0xff]  ;;  %v11900_v37 = vld [vmem:[%s15557_s1 + $0x798] sm:$0xff] }
  0xc2   :  { %7072 = vmatpush.bf16.msra.mxu0 %v11856_v3  ;;  %7038 = vmatmul.bf16.vlgmr.msrb.gmra.mxu1 %v8192_v18  ;;  %v11574_v3 = vld [vmem:[%s15556_s0 + $0x6c] sm:$0xf]  ;;  %v8208_v10 = vor.u32 %v11573_v1, %v8205_v2  ;;  %v11901_v32 = vld [vmem:[%s15557_s1 + $0x7a0] sm:$0xff]  ;;  %v8229_v0 = vld [vmem:[%s15556_s0 + $0x1f8] sm:$0xf0] }
  0xc3   :  { %7086 = vmatpush.bf16.msra.mxu1 %v11864_v4  ;;  %7052 = vmatmul.bf16.vlgmr.msrb.gmra.mxu2 %v8196_v17  ;;  %v8213_v4 = vld [vmem:[%s15556_s0 + $0x1e8] sm:$0xf0]  ;;  %v11911_v17 = vld [vmem:[%s15557_s1 + $0x7f0] sm:$0xff]  ;;  %v11936_v1 = vld [vmem:[%s15557_s1 + $0x8b8] sm:$0xff] }
  0xc4   :  { %7100 = vmatpush.bf16.msra.mxu2 %v11872_v13  ;;  %7066 = vmatmul.bf16.vlgmr.msrb.gmra.mxu3 %v8200_v19  ;;  %v8216_v11 = vor.u32 %v11574_v3, %v8213_v4  ;;  %v11887_v13 = vld [vmem:[%s15557_s1 + $0x730] sm:$0xff]  ;;  %v11886_v18 = vld [vmem:[%s15557_s1 + $0x728] sm:$0xff]  ;;  %v11944_v2 = vld [vmem:[%s15557_s1 + $0x8f8] sm:$0xff] }
  0xc5   :  { %7114 = vmatpush.bf16.msra.mxu3 %v11880_v14  ;;  %v11895_v14 = vld [vmem:[%s15557_s1 + $0x770] sm:$0xff]  ;;  %v11894_v19 = vld [vmem:[%s15557_s1 + $0x768] sm:$0xff] }
  0xc6   :  { %7073 = vmatpush.bf16.msra.mxu0 %v11855_v21  ;;  %v6829_v43 = vpop.f32.mrf.mxu2  ;;  %v13343_v9 = vpop.f32.mrf.mxu0 }
  0xc7   :  { %7087 = vmatpush.bf16.msra.mxu1 %v11863_v22  ;;  %v6830_v44 = vadd.f32 %v6829_v43, %v6816_v38  ;;  %v6843_v45 = vpop.f32.mrf.mxu3  ;;  %v13345_v12 = vpop.f32.mrf.mxu1  ;;  %v11902_v22 = vld [vmem:[%s15557_s1 + $0x7a8] sm:$0xff]  ;;  %v11908_v38 = vld [vmem:[%s15557_s1 + $0x7d8] sm:$0xff]  ;;  %v11883_v43 = vld [vmem:[%s15557_s1 + $0x710] sm:$0xff] }
  0xc8   :  { %7101 = vmatpush.bf16.msra.mxu2 %v11871_v23  ;;  %v11910_v23 = vld [vmem:[%s15557_s1 + $0x7e8] sm:$0xff] }
  0xc9   :  { %7115 = vmatpush.bf16.msra.mxu3 %v11879_v24  ;;  %v13269_v46 = vadd.f32 %v6843_v45, %v6830_v44  ;;  %v11891_v44 = vld [vmem:[%s15557_s1 + $0x750] sm:$0xff] }
  0xca   :  { %7074 = vmatpush.bf16.msra.mxu0 %v11854_v26  ;;  %v11899_v45 = vld [vmem:[%s15557_s1 + $0x790] sm:$0xff] }
  0xcb   :  { %7088 = vmatpush.bf16.msra.mxu1 %v11862_v27 }
  0xcc   :  { %7102 = vmatpush.bf16.msra.mxu2 %v11870_v28  ;;  %v11885_v28 = vld [vmem:[%s15557_s1 + $0x720] sm:$0xff] }
  0xcd   :  { %7116 = vmatpush.bf16.msra.mxu3 %v11878_v29  ;;  %v11893_v29 = vld [vmem:[%s15557_s1 + $0x760] sm:$0xff] }
  0xce   :  { %7075 = vmatpush.bf16.msra.mxu0 %v11853_v33  ;;  %v13365_v21 = vpop.f32.mrf.mxu2  ;;  %v11909_v33 = vld [vmem:[%s15557_s1 + $0x7e0] sm:$0xff] }
  0xcf   :  { %7089 = vmatpush.bf16.msra.mxu1 %v11861_v34  ;;  %v13373_v24 = vpop.f32.mrf.mxu3 }
  0xd0   :  { %7103 = vmatpush.bf16.msra.mxu2 %v11869_v35  ;;  %v11884_v35 = vld [vmem:[%s15557_s1 + $0x718] sm:$0xff] }
  0xd1   :  { %7117 = vmatpush.bf16.msra.mxu3 %v11877_v36  ;;  %v11892_v36 = vld [vmem:[%s15557_s1 + $0x758] sm:$0xff] }
  0xd2   :  { %7076 = vmatpush.bf16.msra.mxu0 %v11852_v39 }
  0xd3   :  { %7090 = vmatpush.bf16.msra.mxu1 %v11860_v40 }
  0xd4   :  { %7104 = vmatpush.bf16.msra.mxu2 %v11868_v41 }
  0xd5   :  { %7118 = vmatpush.bf16.msra.mxu3 %v11876_v42 }
  0xd6   :  { %7077 = vmatpush.bf16.msra.mxu0 %v11851_v47  ;;  %v11882_v47 = vld [vmem:[%s15557_s1 + $0x708] sm:$0xff] }
  0xd7   :  { %7091 = vmatpush.bf16.msra.mxu1 %v11859_v48  ;;  %v11890_v48 = vld [vmem:[%s15557_s1 + $0x748] sm:$0xff] }
  0xd8   :  { %7105 = vmatpush.bf16.msra.mxu2 %v11867_v49  ;;  %v11898_v49 = vld [vmem:[%s15557_s1 + $0x788] sm:$0xff] }
  0xd9   :  { %7119 = vmatpush.bf16.msra.mxu3 %v11875_v50  ;;  %v11906_v50 = vld [vmem:[%s15557_s1 + $0x7c8] sm:$0xff] }
  0xda   :  { %7078 = vmatpush.bf16.msra.mxu0 %v11850_v51  ;;  %v11881_v51 = vld [vmem:[%s15557_s1 + $0x700] sm:$0xff] }
  0xdb   :  { %7092 = vmatpush.bf16.msra.mxu1 %v11858_v52  ;;  %v11889_v52 = vld [vmem:[%s15557_s1 + $0x740] sm:$0xff] }
  0xdc   :  { %7106 = vmatpush.bf16.msra.mxu2 %v11866_v53  ;;  %v11897_v53 = vld [vmem:[%s15557_s1 + $0x780] sm:$0xff] }
  0xdd   :  { %7120 = vmatpush.bf16.msra.mxu3 %v11874_v54  ;;  %v11905_v54 = vld [vmem:[%s15557_s1 + $0x7c0] sm:$0xff] }
  0xde   :  { %7079 = vmatpush.bf16.msra.mxu0 %v11849_v55  ;;  %v6857_v26 = vpop.f32.mrf.mxu0  ;;  %v11920_v55 = vld [vmem:[%s15557_s1 + $0x838] sm:$0xff] }
  0xdf   :  { %7093 = vmatpush.bf16.msra.mxu1 %v11857_v56  ;;  %v6858_v27 = vadd.f32 %v6857_v26, %v13269_v46  ;;  %v6871_v31 = vpop.f32.mrf.mxu1  ;;  %v11907_v46 = vld [vmem:[%s15557_s1 + $0x7d0] sm:$0xff]  ;;  %v11928_v56 = vld [vmem:[%s15557_s1 + $0x878] sm:$0xff] }
  0xe0   :  { %7107 = vmatpush.bf16.msra.mxu2 %v11865_v57  ;;  %v8219_v57 = vld [vmem:[%s15556_s0 + $0x70] sm:$0xf] }
  0xe1   :  { %7121 = vmatpush.bf16.msra.mxu3 %v11873_v58  ;;  %7080 = vmatmul.bf16.vlgmr.msra.gmra.mxu0 %v8204_v7  ;;  %v6872_v34 = vadd.f32 %v6871_v31, %v6858_v27  ;;  %v11623_v58 = vld [vmem:[%s15556_s0 + $0x1ec] sm:$0xf0]  ;;  %v8232_v7 = vor.u32 %v11576_v63, %v8229_v0  ;;  %v11578_v63 = vld [vmem:[%s15556_s0 + $0x8c] sm:$0xf] }
  0xe2   :  { %7128 = vmatpush.bf16.msrb.mxu0 %v11888_v59  ;;  %7094 = vmatmul.bf16.vlgmr.msra.gmra.mxu1 %v8208_v10  ;;  %v8227_v59 = vld [vmem:[%s15556_s0 + $0x78] sm:$0xf]  ;;  %v8220_v3 = vor.u32 %v11623_v58, %v8219_v57  ;;  %v11919_v10 = vld [vmem:[%s15557_s1 + $0x830] sm:$0xff]  ;;  %v8235_v57 = vld [vmem:[%s15556_s0 + $0x80] sm:$0xf] }
  0xe3   :  { %7142 = vmatpush.bf16.msrb.mxu1 %v11896_v60  ;;  %7108 = vmatmul.bf16.vlgmr.msra.gmra.mxu2 %v8212_v8  ;;  %v11624_v60 = vld [vmem:[%s15556_s0 + $0x1f4] sm:$0xf0]  ;;  %v11625_v58 = vld [vmem:[%s15556_s0 + $0x1fc] sm:$0xf0]  ;;  %v8245_v0 = vld [vmem:[%s15556_s0 + $0x208] sm:$0xf0] }
  0xe4   :  { %7156 = vmatpush.bf16.msrb.mxu2 %v11904_v5  ;;  %7122 = vmatmul.bf16.vlgmr.msra.gmra.mxu3 %v8216_v11  ;;  %v8228_v4 = vor.u32 %v11624_v60, %v8227_v59  ;;  %v11927_v11 = vld [vmem:[%s15557_s1 + $0x870] sm:$0xff]  ;;  %v8243_v59 = vld [vmem:[%s15556_s0 + $0x88] sm:$0xf] }
  0xe5   :  { %7170 = vmatpush.bf16.msrb.mxu3 %v11912_v6  ;;  %v8224_v6 = vor.u32 %v11575_v61, %v8221_v62  ;;  %v11626_v60 = vld [vmem:[%s15556_s0 + $0x204] sm:$0xf0]  ;;  %v11577_v61 = vld [vmem:[%s15556_s0 + $0x84] sm:$0xf] }
  0xe6   :  { %7129 = vmatpush.bf16.msrb.mxu0 %v11887_v13  ;;  %v6885_v39 = vpop.f32.mrf.mxu2  ;;  %v13474_v5 = vpop.f32.mrf.mxu0  ;;  %v11935_v13 = vld [vmem:[%s15557_s1 + $0x8b0] sm:$0xff]  ;;  %v8237_v62 = vld [vmem:[%s15556_s0 + $0x200] sm:$0xf0] }
  0xe7   :  { %7143 = vmatpush.bf16.msrb.mxu1 %v11895_v14  ;;  %v6886_v40 = vadd.f32 %v6885_v39, %v6872_v34  ;;  %v6899_v41 = vpop.f32.mrf.mxu3  ;;  %v13476_v8 = vpop.f32.mrf.mxu1  ;;  %v11943_v14 = vld [vmem:[%s15557_s1 + $0x8f0] sm:$0xff] }
  0xe8   :  { %7157 = vmatpush.bf16.msrb.mxu2 %v11903_v16  ;;  %v11918_v16 = vld [vmem:[%s15557_s1 + $0x828] sm:$0xff] }
  0xe9   :  { %7171 = vmatpush.bf16.msrb.mxu3 %v11911_v17  ;;  %v13400_v42 = vadd.f32 %v6899_v41, %v6886_v40  ;;  %v11926_v17 = vld [vmem:[%s15557_s1 + $0x868] sm:$0xff] }
  0xea   :  { %7130 = vmatpush.bf16.msrb.mxu0 %v11886_v18 }
  0xeb   :  { %7144 = vmatpush.bf16.msrb.mxu1 %v11894_v19  ;;  %v11934_v19 = vld [vmem:[%s15557_s1 + $0x8a8] sm:$0xff] }
  0xec   :  { %7158 = vmatpush.bf16.msrb.mxu2 %v11902_v22  ;;  %v11942_v22 = vld [vmem:[%s15557_s1 + $0x8e8] sm:$0xff] }
  0xed   :  { %7172 = vmatpush.bf16.msrb.mxu3 %v11910_v23 }
  0xee   :  { %7131 = vmatpush.bf16.msrb.mxu0 %v11885_v28  ;;  %v13496_v18 = vpop.f32.mrf.mxu2  ;;  %v11917_v28 = vld [vmem:[%s15557_s1 + $0x820] sm:$0xff] }
  0xef   :  { %7145 = vmatpush.bf16.msrb.mxu1 %v11893_v29  ;;  %v13504_v23 = vpop.f32.mrf.mxu3  ;;  %v11925_v29 = vld [vmem:[%s15557_s1 + $0x860] sm:$0xff] }
  0xf0   :  { %7159 = vmatpush.bf16.msrb.mxu2 %v11901_v32  ;;  %v11933_v32 = vld [vmem:[%s15557_s1 + $0x8a0] sm:$0xff] }
  0xf1   :  { %7173 = vmatpush.bf16.msrb.mxu3 %v11909_v33  ;;  %v11941_v33 = vld [vmem:[%s15557_s1 + $0x8e0] sm:$0xff] }
  0xf2   :  { %7132 = vmatpush.bf16.msrb.mxu0 %v11884_v35  ;;  %v11916_v35 = vld [vmem:[%s15557_s1 + $0x818] sm:$0xff] }
  0xf3   :  { %7146 = vmatpush.bf16.msrb.mxu1 %v11892_v36  ;;  %v11924_v36 = vld [vmem:[%s15557_s1 + $0x858] sm:$0xff] }
  0xf4   :  { %7160 = vmatpush.bf16.msrb.mxu2 %v11900_v37  ;;  %v11932_v37 = vld [vmem:[%s15557_s1 + $0x898] sm:$0xff] }
  0xf5   :  { %7174 = vmatpush.bf16.msrb.mxu3 %v11908_v38  ;;  %v11940_v38 = vld [vmem:[%s15557_s1 + $0x8d8] sm:$0xff] }
  0xf6   :  { %7133 = vmatpush.bf16.msrb.mxu0 %v11883_v43  ;;  %v11915_v43 = vld [vmem:[%s15557_s1 + $0x810] sm:$0xff] }
  0xf7   :  { %7147 = vmatpush.bf16.msrb.mxu1 %v11891_v44  ;;  %v11923_v44 = vld [vmem:[%s15557_s1 + $0x850] sm:$0xff] }
  0xf8   :  { %7161 = vmatpush.bf16.msrb.mxu2 %v11899_v45  ;;  %v11931_v45 = vld [vmem:[%s15557_s1 + $0x890] sm:$0xff] }
  0xf9   :  { %7175 = vmatpush.bf16.msrb.mxu3 %v11907_v46  ;;  %v11939_v46 = vld [vmem:[%s15557_s1 + $0x8d0] sm:$0xff] }
  0xfa   :  { %7134 = vmatpush.bf16.msrb.mxu0 %v11882_v47  ;;  %v11914_v47 = vld [vmem:[%s15557_s1 + $0x808] sm:$0xff] }
  0xfb   :  { %7148 = vmatpush.bf16.msrb.mxu1 %v11890_v48  ;;  %v11922_v48 = vld [vmem:[%s15557_s1 + $0x848] sm:$0xff] }
  0xfc   :  { %7162 = vmatpush.bf16.msrb.mxu2 %v11898_v49  ;;  %v11930_v49 = vld [vmem:[%s15557_s1 + $0x888] sm:$0xff] }
  0xfd   :  { %7176 = vmatpush.bf16.msrb.mxu3 %v11906_v50  ;;  %v11938_v50 = vld [vmem:[%s15557_s1 + $0x8c8] sm:$0xff] }
  0xfe   :  { %7135 = vmatpush.bf16.msrb.mxu0 %v11881_v51  ;;  %v6913_v26 = vpop.f32.mrf.mxu0  ;;  %v11913_v51 = vld [vmem:[%s15557_s1 + $0x800] sm:$0xff] }
  0xff   :  { %7149 = vmatpush.bf16.msrb.mxu1 %v11889_v52  ;;  %v6914_v27 = vadd.f32 %v6913_v26, %v13400_v42  ;;  %v6927_v31 = vpop.f32.mrf.mxu1  ;;  %v11921_v52 = vld [vmem:[%s15557_s1 + $0x840] sm:$0xff] }
 0x100   :  { %7163 = vmatpush.bf16.msrb.mxu2 %v11897_v53  ;;  %v11929_v53 = vld [vmem:[%s15557_s1 + $0x880] sm:$0xff] }
 0x101   :  { %7177 = vmatpush.bf16.msrb.mxu3 %v11905_v54  ;;  %7136 = vmatmul.bf16.vlgmr.msrb.gmra.mxu0 %v8220_v3  ;;  %v6928_v34 = vadd.f32 %v6927_v31, %v6914_v27  ;;  %v11937_v54 = vld [vmem:[%s15557_s1 + $0x8c0] sm:$0xff]  ;;  %v8236_v3 = vor.u32 %v11625_v58, %v8235_v57  ;;  %v11966_v27 = vld [vmem:[%s15557_s1 + $0x9a8] sm:$0xff] }
 0x102   :  { %7184 = vmatpush.bf16.msra.mxu0 %v11920_v55  ;;  %7150 = vmatmul.bf16.vlgmr.msrb.gmra.mxu1 %v8224_v6  ;;  %v11952_v55 = vld [vmem:[%s15557_s1 + $0x938] sm:$0xff]  ;;  %v11961_v57 = vld [vmem:[%s15557_s1 + $0x980] sm:$0xff] }
 0x103   :  { %7198 = vmatpush.bf16.msra.mxu1 %v11928_v56  ;;  %7164 = vmatmul.bf16.vlgmr.msrb.gmra.mxu2 %v8228_v4  ;;  %v11960_v56 = vld [vmem:[%s15557_s1 + $0x978] sm:$0xff]  ;;  %v8244_v4 = vor.u32 %v11626_v60, %v8243_v59  ;;  %v11969_v58 = vld [vmem:[%s15557_s1 + $0x9c0] sm:$0xff] }
 0x104   :  { %7212 = vmatpush.bf16.msra.mxu2 %v11936_v1  ;;  %7178 = vmatmul.bf16.vlgmr.msrb.gmra.mxu3 %v8232_v7  ;;  %v11968_v1 = vld [vmem:[%s15557_s1 + $0x9b8] sm:$0xff]  ;;  %v8240_v7 = vor.u32 %v11577_v61, %v8237_v62  ;;  %v8251_v61 = vld [vmem:[%s15556_s0 + $0x90] sm:$0xf] }
 0x105   :  { %7226 = vmatpush.bf16.msra.mxu3 %v11944_v2  ;;  %v11976_v2 = vld [vmem:[%s15557_s1 + $0x9f8] sm:$0xff]  ;;  %v11627_v62 = vld [vmem:[%s15556_s0 + $0x20c] sm:$0xf0] }
 0x106   :  { %7185 = vmatpush.bf16.msra.mxu0 %v11919_v10  ;;  %v6941_v39 = vpop.f32.mrf.mxu2  ;;  %v13605_v6 = vpop.f32.mrf.mxu0  ;;  %v8248_v10 = vor.u32 %v11578_v63, %v8245_v0  ;;  %v11984_v59 = vld [vmem:[%s15557_s1 + $0xa38] sm:$0xff] }
 0x107   :  { %7199 = vmatpush.bf16.msra.mxu1 %v11927_v11  ;;  %v6942_v40 = vadd.f32 %v6941_v39, %v6928_v34  ;;  %v6955_v41 = vpop.f32.mrf.mxu3  ;;  %v13607_v11 = vpop.f32.mrf.mxu1  ;;  %v11957_v34 = vld [vmem:[%s15557_s1 + $0x960] sm:$0xff]  ;;  %v11948_v39 = vld [vmem:[%s15557_s1 + $0x918] sm:$0xff] }
 0x108   :  { %7213 = vmatpush.bf16.msra.mxu2 %v11935_v13  ;;  %v11951_v13 = vld [vmem:[%s15557_s1 + $0x930] sm:$0xff]  ;;  %v11992_v60 = vld [vmem:[%s15557_s1 + $0xa78] sm:$0xff] }
 0x109   :  { %7227 = vmatpush.bf16.msra.mxu3 %v11943_v14  ;;  %v13531_v42 = vadd.f32 %v6955_v41, %v6942_v40  ;;  %v11959_v14 = vld [vmem:[%s15557_s1 + $0x970] sm:$0xff]  ;;  %v11956_v40 = vld [vmem:[%s15557_s1 + $0x958] sm:$0xff] }
 0x10a   :  { %7186 = vmatpush.bf16.msra.mxu0 %v11918_v16  ;;  %v11967_v16 = vld [vmem:[%s15557_s1 + $0x9b0] sm:$0xff]  ;;  %v11964_v41 = vld [vmem:[%s15557_s1 + $0x998] sm:$0xff] }
 0x10b   :  { %7200 = vmatpush.bf16.msra.mxu1 %v11926_v17  ;;  %v11975_v17 = vld [vmem:[%s15557_s1 + $0x9f0] sm:$0xff]  ;;  %v8259_v63 = vld [vmem:[%s15556_s0 + $0x98] sm:$0xf] }
 0x10c   :  { %7214 = vmatpush.bf16.msra.mxu2 %v11934_v19  ;;  %v11950_v19 = vld [vmem:[%s15557_s1 + $0x928] sm:$0xff]  ;;  %v11628_v0 = vld [vmem:[%s15556_s0 + $0x214] sm:$0xf0] }
 0x10d   :  { %7228 = vmatpush.bf16.msra.mxu3 %v11942_v22  ;;  %v11958_v22 = vld [vmem:[%s15557_s1 + $0x968] sm:$0xff] }
 0x10e   :  { %7187 = vmatpush.bf16.msra.mxu0 %v11917_v28  ;;  %v13627_v26 = vpop.f32.mrf.mxu2  ;;  %v11974_v28 = vld [vmem:[%s15557_s1 + $0x9e8] sm:$0xff] }
 0x10f   :  { %7201 = vmatpush.bf16.msra.mxu1 %v11925_v29  ;;  %v13635_v29 = vpop.f32.mrf.mxu3 }
 0x110   :  { %7215 = vmatpush.bf16.msra.mxu2 %v11933_v32 }
 0x111   :  { %7229 = vmatpush.bf16.msra.mxu3 %v11941_v33  ;;  %v11949_v33 = vld [vmem:[%s15557_s1 + $0x920] sm:$0xff] }
 0x112   :  { %7188 = vmatpush.bf16.msra.mxu0 %v11916_v35 }
 0x113   :  { %7202 = vmatpush.bf16.msra.mxu1 %v11924_v36  ;;  %v11965_v36 = vld [vmem:[%s15557_s1 + $0x9a0] sm:$0xff] }
 0x114   :  { %7216 = vmatpush.bf16.msra.mxu2 %v11932_v37  ;;  %v11973_v37 = vld [vmem:[%s15557_s1 + $0x9e0] sm:$0xff] }
 0x115   :  { %7230 = vmatpush.bf16.msra.mxu3 %v11940_v38 }
 0x116   :  { %7189 = vmatpush.bf16.msra.mxu0 %v11915_v43 }
 0x117   :  { %7203 = vmatpush.bf16.msra.mxu1 %v11923_v44 }
 0x118   :  { %7217 = vmatpush.bf16.msra.mxu2 %v11931_v45 }
 0x119   :  { %7231 = vmatpush.bf16.msra.mxu3 %v11939_v46 }
 0x11a   :  { %7190 = vmatpush.bf16.msra.mxu0 %v11914_v47  ;;  %v11947_v47 = vld [vmem:[%s15557_s1 + $0x910] sm:$0xff] }
 0x11b   :  { %7204 = vmatpush.bf16.msra.mxu1 %v11922_v48  ;;  %v11955_v48 = vld [vmem:[%s15557_s1 + $0x950] sm:$0xff] }
 0x11c   :  { %7218 = vmatpush.bf16.msra.mxu2 %v11930_v49  ;;  %v11963_v49 = vld [vmem:[%s15557_s1 + $0x990] sm:$0xff] }
 0x11d   :  { %7232 = vmatpush.bf16.msra.mxu3 %v11938_v50  ;;  %v11971_v50 = vld [vmem:[%s15557_s1 + $0x9d0] sm:$0xff] }
 0x11e   :  { %7191 = vmatpush.bf16.msra.mxu0 %v11913_v51  ;;  %v6969_v31 = vpop.f32.mrf.mxu0  ;;  %v11946_v51 = vld [vmem:[%s15557_s1 + $0x908] sm:$0xff] }
 0x11f   :  { %7205 = vmatpush.bf16.msra.mxu1 %v11921_v52  ;;  %v6970_v32 = vadd.f32 %v6969_v31, %v13531_v42  ;;  %v6983_v35 = vpop.f32.mrf.mxu1  ;;  %v11972_v42 = vld [vmem:[%s15557_s1 + $0x9d8] sm:$0xff]  ;;  %v11954_v52 = vld [vmem:[%s15557_s1 + $0x948] sm:$0xff]  ;;  %v11999_v31 = vld [vmem:[%s15557_s1 + $0xab0] sm:$0xff] }
 0x120   :  { %7219 = vmatpush.bf16.msra.mxu2 %v11929_v53  ;;  %v11962_v53 = vld [vmem:[%s15557_s1 + $0x988] sm:$0xff] }
 0x121   :  { %7233 = vmatpush.bf16.msra.mxu3 %v11937_v54  ;;  %7192 = vmatmul.bf16.vlgmr.msra.gmra.mxu0 %v8236_v3  ;;  %v6984_v38 = vadd.f32 %v6983_v35, %v6970_v32  ;;  %v11970_v54 = vld [vmem:[%s15557_s1 + $0x9c8] sm:$0xff]  ;;  %v11580_v3 = vld [vmem:[%s15556_s0 + $0x9c] sm:$0xf]  ;;  %v12007_v32 = vld [vmem:[%s15557_s1 + $0xaf0] sm:$0xff] }
 0x122   :  { %7240 = vmatpush.bf16.msrb.mxu0 %v11952_v55  ;;  %7206 = vmatmul.bf16.vlgmr.msra.gmra.mxu1 %v8240_v7  ;;  %v11945_v55 = vld [vmem:[%s15557_s1 + $0x900] sm:$0xff]  ;;  %v12000_v7 = vld [vmem:[%s15557_s1 + $0xab8] sm:$0xff] }
 0x123   :  { %7254 = vmatpush.bf16.msrb.mxu1 %v11960_v56  ;;  %7220 = vmatmul.bf16.vlgmr.msra.gmra.mxu2 %v8244_v4  ;;  %v11953_v56 = vld [vmem:[%s15557_s1 + $0x940] sm:$0xff]  ;;  %v8261_v4 = vld [vmem:[%s15556_s0 + $0x218] sm:$0xf0] }
 0x124   :  { %7268 = vmatpush.bf16.msrb.mxu2 %v11968_v1  ;;  %7234 = vmatmul.bf16.vlgmr.msra.gmra.mxu3 %v8248_v10  ;;  %v11579_v1 = vld [vmem:[%s15556_s0 + $0x94] sm:$0xf]  ;;  %v12008_v10 = vld [vmem:[%s15557_s1 + $0xaf8] sm:$0xff] }
 0x125   :  { %7282 = vmatpush.bf16.msrb.mxu3 %v11976_v2  ;;  %v8253_v2 = vld [vmem:[%s15556_s0 + $0x210] sm:$0xf0] }
 0x126   :  { %7241 = vmatpush.bf16.msrb.mxu0 %v11951_v13  ;;  %v6997_v43 = vpop.f32.mrf.mxu2  ;;  %v8252_v13 = vor.u32 %v11627_v62, %v8251_v61  ;;  %v11994_v61 = vld [vmem:[%s15557_s1 + $0xa88] sm:$0xff] }
 0x127   :  { %7255 = vmatpush.bf16.msrb.mxu1 %v11959_v14  ;;  %v6998_v44 = vadd.f32 %v6997_v43, %v6984_v38  ;;  %v7011_v45 = vpop.f32.mrf.mxu3  ;;  %v8260_v14 = vor.u32 %v11628_v0, %v8259_v63  ;;  %v12002_v62 = vld [vmem:[%s15557_s1 + $0xac8] sm:$0xff]  ;;  %v11977_v63 = vld [vmem:[%s15557_s1 + $0xa00] sm:$0xff] }
 0x128   :  { %7269 = vmatpush.bf16.msrb.mxu2 %v11967_v16  ;;  %v13736_v16 = vpop.f32.mrf.mxu0  ;;  %v11985_v0 = vld [vmem:[%s15557_s1 + $0xa40] sm:$0xff] }
 0x129   :  { %7283 = vmatpush.bf16.msrb.mxu3 %v11975_v17  ;;  %v13662_v46 = vadd.f32 %v7011_v45, %v6998_v44  ;;  %v8256_v17 = vor.u32 %v11579_v1, %v8253_v2  ;;  %v11997_v44 = vld [vmem:[%s15557_s1 + $0xaa0] sm:$0xff] }
 0x12a   :  { %7242 = vmatpush.bf16.msrb.mxu0 %v11950_v19  ;;  %v8264_v19 = vor.u32 %v11580_v3, %v8261_v4  ;;  %v12005_v45 = vld [vmem:[%s15557_s1 + $0xae0] sm:$0xff]  ;;  %v12016_v3 = vld [vmem:[%s15557_s1 + $0xb38] sm:$0xff] }
 0x12b   :  { %7256 = vmatpush.bf16.msrb.mxu1 %v11958_v22  ;;  %v13738_v22 = vpop.f32.mrf.mxu1  ;;  %v11993_v1 = vld [vmem:[%s15557_s1 + $0xa80] sm:$0xff]  ;;  %v12024_v4 = vld [vmem:[%s15557_s1 + $0xb78] sm:$0xff] }
 0x12c   :  { %7270 = vmatpush.bf16.msrb.mxu2 %v11966_v27  ;;  %v11983_v27 = vld [vmem:[%s15557_s1 + $0xa30] sm:$0xff]  ;;  %v12001_v2 = vld [vmem:[%s15557_s1 + $0xac0] sm:$0xff] }
 0x12d   :  { %7284 = vmatpush.bf16.msrb.mxu3 %v11974_v28  ;;  %v11991_v28 = vld [vmem:[%s15557_s1 + $0xa70] sm:$0xff] }
 0x12e   :  { %7243 = vmatpush.bf16.msrb.mxu0 %v11949_v33  ;;  %v11982_v33 = vld [vmem:[%s15557_s1 + $0xa28] sm:$0xff]  ;;  %v13758_v35 = vpop.f32.mrf.mxu2 }
 0x12f   :  { %7257 = vmatpush.bf16.msrb.mxu1 %v11957_v34  ;;  %v11990_v34 = vld [vmem:[%s15557_s1 + $0xa68] sm:$0xff]  ;;  %v13766_v38 = vpop.f32.mrf.mxu3 }
 0x130   :  { %7271 = vmatpush.bf16.msrb.mxu2 %v11965_v36  ;;  %v11998_v36 = vld [vmem:[%s15557_s1 + $0xaa8] sm:$0xff] }
 0x131   :  { %7285 = vmatpush.bf16.msrb.mxu3 %v11973_v37  ;;  %v12006_v37 = vld [vmem:[%s15557_s1 + $0xae8] sm:$0xff] }
 0x132   :  { %7244 = vmatpush.bf16.msrb.mxu0 %v11948_v39 }
 0x133   :  { %7258 = vmatpush.bf16.msrb.mxu1 %v11956_v40 }
 0x134   :  { %7272 = vmatpush.bf16.msrb.mxu2 %v11964_v41  ;;  %v11981_v41 = vld [vmem:[%s15557_s1 + $0xa20] sm:$0xff] }
 0x135   :  { %7286 = vmatpush.bf16.msrb.mxu3 %v11972_v42  ;;  %v11989_v42 = vld [vmem:[%s15557_s1 + $0xa60] sm:$0xff] }
 0x136   :  { %7245 = vmatpush.bf16.msrb.mxu0 %v11947_v47  ;;  %v11980_v47 = vld [vmem:[%s15557_s1 + $0xa18] sm:$0xff] }
 0x137   :  { %7259 = vmatpush.bf16.msrb.mxu1 %v11955_v48  ;;  %v11988_v48 = vld [vmem:[%s15557_s1 + $0xa58] sm:$0xff] }
 0x138   :  { %7273 = vmatpush.bf16.msrb.mxu2 %v11963_v49  ;;  %v11996_v49 = vld [vmem:[%s15557_s1 + $0xa98] sm:$0xff] }
 0x139   :  { %7287 = vmatpush.bf16.msrb.mxu3 %v11971_v50  ;;  %v12004_v50 = vld [vmem:[%s15557_s1 + $0xad8] sm:$0xff] }
 0x13a   :  { %7246 = vmatpush.bf16.msrb.mxu0 %v11946_v51 }
 0x13b   :  { %7260 = vmatpush.bf16.msrb.mxu1 %v11954_v52 }
 0x13c   :  { %7274 = vmatpush.bf16.msrb.mxu2 %v11962_v53 }
 0x13d   :  { %7288 = vmatpush.bf16.msrb.mxu3 %v11970_v54 }
 0x13e   :  { %7247 = vmatpush.bf16.msrb.mxu0 %v11945_v55  ;;  %v7025_v39 = vpop.f32.mrf.mxu0  ;;  %v11979_v55 = vld [vmem:[%s15557_s1 + $0xa10] sm:$0xff] }
 0x13f   :  { %7261 = vmatpush.bf16.msrb.mxu1 %v11953_v56  ;;  %v7026_v40 = vadd.f32 %v7025_v39, %v13662_v46  ;;  %v7039_v43 = vpop.f32.mrf.mxu1  ;;  %v11987_v56 = vld [vmem:[%s15557_s1 + $0xa50] sm:$0xff] }
 0x140   :  { %7275 = vmatpush.bf16.msrb.mxu2 %v11961_v57  ;;  %v11995_v57 = vld [vmem:[%s15557_s1 + $0xa90] sm:$0xff] }
 0x141   :  { %7289 = vmatpush.bf16.msrb.mxu3 %v11969_v58  ;;  %7248 = vmatmul.bf16.vlgmr.msrb.gmra.mxu0 %v8252_v13  ;;  %v7040_v46 = vadd.f32 %v7039_v43, %v7026_v40  ;;  %v12003_v58 = vld [vmem:[%s15557_s1 + $0xad0] sm:$0xff]  ;;  %v8275_v13 = vld [vmem:[%s15556_s0 + $0xa8] sm:$0xf] }
 0x142   :  { %7296 = vmatpush.bf16.msra.mxu0 %v11984_v59  ;;  %7262 = vmatmul.bf16.vlgmr.msrb.gmra.mxu1 %v8256_v17  ;;  %v11978_v59 = vld [vmem:[%s15557_s1 + $0xa08] sm:$0xff]  ;;  %v11581_v17 = vld [vmem:[%s15556_s0 + $0xa4] sm:$0xf]  ;;  %v12031_v43 = vld [vmem:[%s15557_s1 + $0xbb0] sm:$0xff] }
 0x143   :  { %7310 = vmatpush.bf16.msra.mxu1 %v11992_v60  ;;  %7276 = vmatmul.bf16.vlgmr.msrb.gmra.mxu2 %v8260_v14  ;;  %v11986_v60 = vld [vmem:[%s15557_s1 + $0xa48] sm:$0xff] }
 0x144   :  { %7324 = vmatpush.bf16.msra.mxu2 %v12000_v7  ;;  %7290 = vmatmul.bf16.vlgmr.msrb.gmra.mxu3 %v8264_v19  ;;  %v8267_v7 = vld [vmem:[%s15556_s0 + $0xa0] sm:$0xf]  ;;  %v11630_v14 = vld [vmem:[%s15556_s0 + $0x224] sm:$0xf0]  ;;  %v8269_v19 = vld [vmem:[%s15556_s0 + $0x220] sm:$0xf0] }
 0x145   :  { %7338 = vmatpush.bf16.msra.mxu3 %v12008_v10  ;;  %v11629_v10 = vld [vmem:[%s15556_s0 + $0x21c] sm:$0xf0] }
 0x146   :  { %7297 = vmatpush.bf16.msra.mxu0 %v11983_v27  ;;  %v7053_v51 = vpop.f32.mrf.mxu2  ;;  %v11582_v27 = vld [vmem:[%s15556_s0 + $0xac] sm:$0xf] }
 0x147   :  { %7311 = vmatpush.bf16.msra.mxu1 %v11991_v28  ;;  %v7054_v52 = vadd.f32 %v7053_v51, %v7040_v46  ;;  %v7067_v53 = vpop.f32.mrf.mxu3  ;;  %v8277_v28 = vld [vmem:[%s15556_s0 + $0x228] sm:$0xf0]  ;;  %v13869_v40 = vpop.f32.mrf.mxu1 }
 0x148   :  { %7325 = vmatpush.bf16.msra.mxu2 %v11999_v31  ;;  %v12032_v31 = vld [vmem:[%s15557_s1 + $0xbb8] sm:$0xff]  ;;  %v8280_v39 = vor.u32 %v11582_v27, %v8277_v28  ;;  %v12022_v46 = vld [vmem:[%s15557_s1 + $0xb68] sm:$0xff]  ;;  %v12009_v27 = vld [vmem:[%s15557_s1 + $0xb00] sm:$0xff] }
 0x149   :  { %7339 = vmatpush.bf16.msra.mxu3 %v12007_v32  ;;  %v13793_v54 = vadd.f32 %v7067_v53, %v7054_v52  ;;  %v12040_v32 = vld [vmem:[%s15557_s1 + $0xbf8] sm:$0xff]  ;;  %v12013_v53 = vld [vmem:[%s15557_s1 + $0xb20] sm:$0xff] }
 0x14a   :  { %7298 = vmatpush.bf16.msra.mxu0 %v11982_v33  ;;  %v8268_v33 = vor.u32 %v11629_v10, %v8267_v7  ;;  %v12027_v7 = vld [vmem:[%s15557_s1 + $0xb90] sm:$0xff]  ;;  %v12017_v28 = vld [vmem:[%s15557_s1 + $0xb40] sm:$0xff] }
 0x14b   :  { %7312 = vmatpush.bf16.msra.mxu1 %v11990_v34  ;;  %v8276_v34 = vor.u32 %v11630_v14, %v8275_v13  ;;  %v12035_v10 = vld [vmem:[%s15557_s1 + $0xbd0] sm:$0xff]  ;;  %v12010_v13 = vld [vmem:[%s15557_s1 + $0xb08] sm:$0xff] }
 0x14c   :  { %7326 = vmatpush.bf16.msra.mxu2 %v11998_v36  ;;  %v13867_v36 = vpop.f32.mrf.mxu0  ;;  %v12018_v14 = vld [vmem:[%s15557_s1 + $0xb48] sm:$0xff] }
 0x14d   :  { %7340 = vmatpush.bf16.msra.mxu3 %v12006_v37  ;;  %v8272_v37 = vor.u32 %v11581_v17, %v8269_v19  ;;  %v12026_v17 = vld [vmem:[%s15557_s1 + $0xb88] sm:$0xff] }
 0x14e   :  { %7299 = vmatpush.bf16.msra.mxu0 %v11981_v41  ;;  %v12015_v41 = vld [vmem:[%s15557_s1 + $0xb30] sm:$0xff]  ;;  %v12034_v19 = vld [vmem:[%s15557_s1 + $0xbc8] sm:$0xff] }
 0x14f   :  { %7313 = vmatpush.bf16.msra.mxu1 %v11989_v42  ;;  %v12023_v42 = vld [vmem:[%s15557_s1 + $0xb70] sm:$0xff] }
 0x150   :  { %7327 = vmatpush.bf16.msra.mxu2 %v11997_v44  ;;  %v12039_v44 = vld [vmem:[%s15557_s1 + $0xbf0] sm:$0xff] }
 0x151   :  { %7341 = vmatpush.bf16.msra.mxu3 %v12005_v45  ;;  %v12014_v45 = vld [vmem:[%s15557_s1 + $0xb28] sm:$0xff] }
 0x152   :  { %7300 = vmatpush.bf16.msra.mxu0 %v11980_v47  ;;  %v13889_v47 = vpop.f32.mrf.mxu2 }
 0x153   :  { %7314 = vmatpush.bf16.msra.mxu1 %v11988_v48  ;;  %v12030_v48 = vld [vmem:[%s15557_s1 + $0xba8] sm:$0xff] }
 0x154   :  { %7328 = vmatpush.bf16.msra.mxu2 %v11996_v49  ;;  %v12038_v49 = vld [vmem:[%s15557_s1 + $0xbe8] sm:$0xff] }
 0x155   :  { %7342 = vmatpush.bf16.msra.mxu3 %v12004_v50  ;;  %v13897_v50 = vpop.f32.mrf.mxu3 }
 0x156   :  { %7301 = vmatpush.bf16.msra.mxu0 %v11979_v55  ;;  %v12021_v55 = vld [vmem:[%s15557_s1 + $0xb60] sm:$0xff] }
 0x157   :  { %7315 = vmatpush.bf16.msra.mxu1 %v11987_v56 }
 0x158   :  { %7329 = vmatpush.bf16.msra.mxu2 %v11995_v57  ;;  %v12029_v57 = vld [vmem:[%s15557_s1 + $0xba0] sm:$0xff] }
 0x159   :  { %7343 = vmatpush.bf16.msra.mxu3 %v12003_v58  ;;  %v12037_v58 = vld [vmem:[%s15557_s1 + $0xbe0] sm:$0xff] }
 0x15a   :  { %7302 = vmatpush.bf16.msra.mxu0 %v11978_v59  ;;  %v12012_v59 = vld [vmem:[%s15557_s1 + $0xb18] sm:$0xff] }
 0x15b   :  { %7316 = vmatpush.bf16.msra.mxu1 %v11986_v60  ;;  %v12020_v60 = vld [vmem:[%s15557_s1 + $0xb58] sm:$0xff] }
 0x15c   :  { %7330 = vmatpush.bf16.msra.mxu2 %v11994_v61  ;;  %v12028_v61 = vld [vmem:[%s15557_s1 + $0xb98] sm:$0xff] }
 0x15d   :  { %7344 = vmatpush.bf16.msra.mxu3 %v12002_v62  ;;  %v12036_v62 = vld [vmem:[%s15557_s1 + $0xbd8] sm:$0xff] }
 0x15e   :  { %7303 = vmatpush.bf16.msra.mxu0 %v11977_v63  ;;  %v7081_v51 = vpop.f32.mrf.mxu0 }
 0x15f   :  { %7317 = vmatpush.bf16.msra.mxu1 %v11985_v0  ;;  %v7082_v52 = vadd.f32 %v7081_v51, %v13793_v54  ;;  %v7095_v56 = vpop.f32.mrf.mxu1 }
 0x160   :  { %7331 = vmatpush.bf16.msra.mxu2 %v11993_v1 }
 0x161   :  { %7345 = vmatpush.bf16.msra.mxu3 %v12001_v2  ;;  %7304 = vmatmul.bf16.vlgmr.msra.gmra.mxu0 %v8268_v33  ;;  %v7096_v54 = vadd.f32 %v7095_v56, %v7082_v52  ;;  %v12048_v33 = vld [vmem:[%s15557_s1 + $0xc38] sm:$0xff] }
 0x162   :  { %7352 = vmatpush.bf16.msrb.mxu0 %v12016_v3  ;;  %7318 = vmatmul.bf16.vlgmr.msra.gmra.mxu1 %v8272_v37  ;;  %v12011_v3 = vld [vmem:[%s15557_s1 + $0xb10] sm:$0xff] }
 0x163   :  { %7366 = vmatpush.bf16.msrb.mxu1 %v12024_v4  ;;  %7332 = vmatmul.bf16.vlgmr.msra.gmra.mxu2 %v8276_v34  ;;  %v12019_v4 = vld [vmem:[%s15557_s1 + $0xb50] sm:$0xff]  ;;  %v12056_v34 = vld [vmem:[%s15557_s1 + $0xc78] sm:$0xff] }
 0x164   :  { %7380 = vmatpush.bf16.msrb.mxu2 %v12032_v31  ;;  %7346 = vmatmul.bf16.vlgmr.msra.gmra.mxu3 %v8280_v39  ;;  %v12025_v31 = vld [vmem:[%s15557_s1 + $0xb80] sm:$0xff]  ;;  %v8283_v37 = vld [vmem:[%s15556_s0 + $0xb0] sm:$0xf] }
 0x165   :  { %7394 = vmatpush.bf16.msrb.mxu3 %v12040_v32  ;;  %v12033_v32 = vld [vmem:[%s15557_s1 + $0xbc0] sm:$0xff]  ;;  %v11631_v39 = vld [vmem:[%s15556_s0 + $0x22c] sm:$0xf0] }
 0x166   :  { %7353 = vmatpush.bf16.msrb.mxu0 %v12015_v41  ;;  %v7109_v63 = vpop.f32.mrf.mxu2  ;;  %v8291_v41 = vld [vmem:[%s15556_s0 + $0xb8] sm:$0xf]  ;;  %v8284_v51 = vor.u32 %v11631_v39, %v8283_v37 }
 0x167   :  { %7367 = vmatpush.bf16.msrb.mxu1 %v12023_v42  ;;  %v7110_v0 = vadd.f32 %v7109_v63, %v7096_v54  ;;  %v7123_v1 = vpop.f32.mrf.mxu3  ;;  %v11632_v42 = vld [vmem:[%s15556_s0 + $0x234] sm:$0xf0]  ;;  %v12055_v54 = vld [vmem:[%s15557_s1 + $0xc70] sm:$0xff] }
 0x168   :  { %7381 = vmatpush.bf16.msrb.mxu2 %v12031_v43  ;;  %v11583_v43 = vld [vmem:[%s15556_s0 + $0xb4] sm:$0xf]  ;;  %v8292_v52 = vor.u32 %v11632_v42, %v8291_v41 }
 0x169   :  { %7395 = vmatpush.bf16.msrb.mxu3 %v12039_v44  ;;  %v13924_v2 = vadd.f32 %v7123_v1, %v7110_v0  ;;  %v8285_v44 = vld [vmem:[%s15556_s0 + $0x230] sm:$0xf0]  ;;  %v12062_v0 = vld [vmem:[%s15557_s1 + $0xca8] sm:$0xff] }
 0x16a   :  { %7354 = vmatpush.bf16.msrb.mxu0 %v12014_v45  ;;  %v11584_v45 = vld [vmem:[%s15556_s0 + $0xbc] sm:$0xf]  ;;  %v12070_v1 = vld [vmem:[%s15557_s1 + $0xce8] sm:$0xff]  ;;  %v12043_v41 = vld [vmem:[%s15557_s1 + $0xc10] sm:$0xff] }
 0x16b   :  { %7368 = vmatpush.bf16.msrb.mxu1 %v12022_v46  ;;  %v8293_v46 = vld [vmem:[%s15556_s0 + $0x238] sm:$0xf0]  ;;  %v12051_v42 = vld [vmem:[%s15557_s1 + $0xc50] sm:$0xff] }
 0x16c   :  { %7382 = vmatpush.bf16.msrb.mxu2 %v12030_v48  ;;  %v12064_v48 = vld [vmem:[%s15557_s1 + $0xcb8] sm:$0xff]  ;;  %v8296_v56 = vor.u32 %v11584_v45, %v8293_v46  ;;  %v12042_v45 = vld [vmem:[%s15557_s1 + $0xc08] sm:$0xff] }
 0x16d   :  { %7396 = vmatpush.bf16.msrb.mxu3 %v12038_v49  ;;  %v12072_v49 = vld [vmem:[%s15557_s1 + $0xcf8] sm:$0xff]  ;;  %v12050_v46 = vld [vmem:[%s15557_s1 + $0xc48] sm:$0xff] }
 0x16e   :  { %7355 = vmatpush.bf16.msrb.mxu0 %v12013_v53  ;;  %v13998_v53 = vpop.f32.mrf.mxu0  ;;  %v14020_v63 = vpop.f32.mrf.mxu2 }
 0x16f   :  { %7369 = vmatpush.bf16.msrb.mxu1 %v12021_v55  ;;  %v8288_v55 = vor.u32 %v11583_v43, %v8285_v44  ;;  %v12059_v43 = vld [vmem:[%s15557_s1 + $0xc90] sm:$0xff] }
 0x170   :  { %7383 = vmatpush.bf16.msrb.mxu2 %v12029_v57  ;;  %v14000_v57 = vpop.f32.mrf.mxu1  ;;  %v12067_v44 = vld [vmem:[%s15557_s1 + $0xcd0] sm:$0xff] }
 0x171   :  { %7397 = vmatpush.bf16.msrb.mxu3 %v12037_v58  ;;  %v12047_v58 = vld [vmem:[%s15557_s1 + $0xc30] sm:$0xff] }
 0x172   :  { %7356 = vmatpush.bf16.msrb.mxu0 %v12012_v59  ;;  %v12063_v59 = vld [vmem:[%s15557_s1 + $0xcb0] sm:$0xff] }
 0x173   :  { %7370 = vmatpush.bf16.msrb.mxu1 %v12020_v60  ;;  %v12071_v60 = vld [vmem:[%s15557_s1 + $0xcf0] sm:$0xff] }
 0x174   :  { %7384 = vmatpush.bf16.msrb.mxu2 %v12028_v61  ;;  %v12046_v61 = vld [vmem:[%s15557_s1 + $0xc28] sm:$0xff] }
 0x175   :  { %7398 = vmatpush.bf16.msrb.mxu3 %v12036_v62  ;;  %v12054_v62 = vld [vmem:[%s15557_s1 + $0xc68] sm:$0xff] }
 0x176   :  { %7357 = vmatpush.bf16.msrb.mxu0 %v12011_v3  ;;  %v14028_v3 = vpop.f32.mrf.mxu3 }
 0x177   :  { %7371 = vmatpush.bf16.msrb.mxu1 %v12019_v4 }
 0x178   :  { %7385 = vmatpush.bf16.msrb.mxu2 %v12027_v7 }
 0x179   :  { %7399 = vmatpush.bf16.msrb.mxu3 %v12035_v10  ;;  %v12045_v10 = vld [vmem:[%s15557_s1 + $0xc20] sm:$0xff] }
 0x17a   :  { %7358 = vmatpush.bf16.msrb.mxu0 %v12010_v13  ;;  %v12053_v13 = vld [vmem:[%s15557_s1 + $0xc60] sm:$0xff] }
 0x17b   :  { %7372 = vmatpush.bf16.msrb.mxu1 %v12018_v14 }
 0x17c   :  { %7386 = vmatpush.bf16.msrb.mxu2 %v12026_v17  ;;  %v12061_v17 = vld [vmem:[%s15557_s1 + $0xca0] sm:$0xff] }
 0x17d   :  { %7400 = vmatpush.bf16.msrb.mxu3 %v12034_v19  ;;  %v12069_v19 = vld [vmem:[%s15557_s1 + $0xce0] sm:$0xff] }
 0x17e   :  { %7359 = vmatpush.bf16.msrb.mxu0 %v12009_v27  ;;  %v7137_v4 = vpop.f32.mrf.mxu0  ;;  %v12044_v27 = vld [vmem:[%s15557_s1 + $0xc18] sm:$0xff] }
 0x17f   :  { %7373 = vmatpush.bf16.msrb.mxu1 %v12017_v28  ;;  %v7138_v7 = vadd.f32 %v7137_v4, %v13924_v2  ;;  %v7151_v14 = vpop.f32.mrf.mxu1  ;;  %v12052_v28 = vld [vmem:[%s15557_s1 + $0xc58] sm:$0xff]  ;;  %v8309_v4 = vld [vmem:[%s15556_s0 + $0x248] sm:$0xf0] }
 0x180   :  { %7387 = vmatpush.bf16.msrb.mxu2 %v12025_v31  ;;  %v12060_v31 = vld [vmem:[%s15557_s1 + $0xc98] sm:$0xff] }
 0x181   :  { %7401 = vmatpush.bf16.msrb.mxu3 %v12033_v32  ;;  %7360 = vmatmul.bf16.vlgmr.msrb.gmra.mxu0 %v8284_v51  ;;  %v7152_v2 = vadd.f32 %v7151_v14, %v7138_v7  ;;  %v12068_v32 = vld [vmem:[%s15557_s1 + $0xcd8] sm:$0xff]  ;;  %v12041_v51 = vld [vmem:[%s15557_s1 + $0xc00] sm:$0xff] }
 0x182   :  { %7408 = vmatpush.bf16.msra.mxu0 %v12048_v33  ;;  %7374 = vmatmul.bf16.vlgmr.msrb.gmra.mxu1 %v8288_v55  ;;  %v12057_v55 = vld [vmem:[%s15557_s1 + $0xc80] sm:$0xff]  ;;  %v12096_v7 = vld [vmem:[%s15557_s1 + $0xdb8] sm:$0xff] }
 0x183   :  { %7422 = vmatpush.bf16.msra.mxu1 %v12056_v34  ;;  %7388 = vmatmul.bf16.vlgmr.msrb.gmra.mxu2 %v8292_v52  ;;  %v12049_v52 = vld [vmem:[%s15557_s1 + $0xc40] sm:$0xff] }
 0x184   :  { %7436 = vmatpush.bf16.msra.mxu2 %v12064_v48  ;;  %7402 = vmatmul.bf16.vlgmr.msrb.gmra.mxu3 %v8296_v56  ;;  %v12058_v48 = vld [vmem:[%s15557_s1 + $0xc88] sm:$0xff]  ;;  %v12065_v56 = vld [vmem:[%s15557_s1 + $0xcc0] sm:$0xff] }
 0x185   :  { %7450 = vmatpush.bf16.msra.mxu3 %v12072_v49  ;;  %v12066_v49 = vld [vmem:[%s15557_s1 + $0xcc8] sm:$0xff] }
 0x186   :  { %7409 = vmatpush.bf16.msra.mxu0 %v12047_v58  ;;  %v7165_v33 = vpop.f32.mrf.mxu2  ;;  %v6762_v58 = vadd.f32 %v13214_v20, %v13212_v15  ;;  %v8307_v15 = vld [vmem:[%s15556_s0 + $0xc8] sm:$0xf] }
 0x187   :  { %7423 = vmatpush.bf16.msra.mxu1 %v12055_v54  ;;  %v7166_v34 = vadd.f32 %v7165_v33, %v7152_v2  ;;  %v7179_v37 = vpop.f32.mrf.mxu3  ;;  %v12080_v54 = vld [vmem:[%s15557_s1 + $0xd38] sm:$0xff]  ;;  %v11634_v20 = vld [vmem:[%s15556_s0 + $0x244] sm:$0xf0]  ;;  %v12103_v33 = vld [vmem:[%s15557_s1 + $0xdf0] sm:$0xff] }
 0x188   :  { %7437 = vmatpush.bf16.msra.mxu2 %v12063_v59  ;;  %v12088_v59 = vld [vmem:[%s15557_s1 + $0xd78] sm:$0xff] }
 0x189   :  { %7451 = vmatpush.bf16.msra.mxu3 %v12071_v60  ;;  %v14055_v39 = vadd.f32 %v7179_v37, %v7166_v34  ;;  %v8299_v60 = vld [vmem:[%s15556_s0 + $0xc0] sm:$0xf] }
 0x18a   :  { %7410 = vmatpush.bf16.msra.mxu0 %v12046_v61  ;;  %v11633_v61 = vld [vmem:[%s15556_s0 + $0x23c] sm:$0xf0] }
 0x18b   :  { %7424 = vmatpush.bf16.msra.mxu1 %v12054_v62  ;;  %v11585_v62 = vld [vmem:[%s15556_s0 + $0xc4] sm:$0xf]  ;;  %v8300_v14 = vor.u32 %v11633_v61, %v8299_v60 }
 0x18c   :  { %7438 = vmatpush.bf16.msra.mxu2 %v12062_v0  ;;  %v8301_v0 = vld [vmem:[%s15556_s0 + $0x240] sm:$0xf0] }
 0x18d   :  { %7452 = vmatpush.bf16.msra.mxu3 %v12070_v1  ;;  %v11586_v1 = vld [vmem:[%s15556_s0 + $0xcc] sm:$0xf]  ;;  %v8304_v2 = vor.u32 %v11585_v62, %v8301_v0 }
 0x18e   :  { %7411 = vmatpush.bf16.msra.mxu0 %v12045_v10  ;;  %v12104_v10 = vld [vmem:[%s15557_s1 + $0xdf8] sm:$0xff] }
 0x18f   :  { %7425 = vmatpush.bf16.msra.mxu1 %v12053_v13  ;;  %v6776_v13 = vadd.f32 %v13228_v25, %v6762_v58  ;;  %v12087_v25 = vld [vmem:[%s15557_s1 + $0xd70] sm:$0xff]  ;;  %v12076_v58 = vld [vmem:[%s15557_s1 + $0xd18] sm:$0xff] }
 0x190   :  { %7439 = vmatpush.bf16.msra.mxu2 %v12061_v17  ;;  %v8308_v17 = vor.u32 %v11634_v20, %v8307_v15 }
 0x191   :  { %7453 = vmatpush.bf16.msra.mxu3 %v12069_v19  ;;  %v14132_v19 = vpop.f32.mrf.mxu0  ;;  %v6790_v34 = vadd.f32 %v13242_v30, %v6776_v13  ;;  %v12094_v30 = vld [vmem:[%s15557_s1 + $0xda8] sm:$0xff] }
 0x192   :  { %7412 = vmatpush.bf16.msra.mxu0 %v12044_v27  ;;  %v8312_v27 = vor.u32 %v11586_v1, %v8309_v4  ;;  %v12075_v1 = vld [vmem:[%s15557_s1 + $0xd10] sm:$0xff]  ;;  %v12082_v13 = vld [vmem:[%s15557_s1 + $0xd48] sm:$0xff] }
 0x193   :  { %7426 = vmatpush.bf16.msra.mxu1 %v12052_v28  ;;  %v14134_v28 = vpop.f32.mrf.mxu1  ;;  %v6804_v37 = vadd.f32 %v13343_v9, %v6790_v34  ;;  %v12102_v9 = vld [vmem:[%s15557_s1 + $0xde8] sm:$0xff]  ;;  %v12083_v4 = vld [vmem:[%s15557_s1 + $0xd50] sm:$0xff] }
 0x194   :  { %7440 = vmatpush.bf16.msra.mxu2 %v12060_v31  ;;  %v12079_v31 = vld [vmem:[%s15557_s1 + $0xd30] sm:$0xff] }
 0x195   :  { %7454 = vmatpush.bf16.msra.mxu3 %v12068_v32  ;;  %v12095_v32 = vld [vmem:[%s15557_s1 + $0xdb0] sm:$0xff] }
 0x196   :  { %7413 = vmatpush.bf16.msra.mxu0 %v12043_v41  ;;  %v12078_v41 = vld [vmem:[%s15557_s1 + $0xd28] sm:$0xff]  ;;  %v11635_v34 = vld [vmem:[%s15556_s0 + $0x24c] sm:$0xf0] }
 0x197   :  { %7427 = vmatpush.bf16.msra.mxu1 %v12051_v42  ;;  %v12086_v42 = vld [vmem:[%s15557_s1 + $0xd68] sm:$0xff] }
 0x198   :  { %7441 = vmatpush.bf16.msra.mxu2 %v12059_v43  ;;  %v14156_v43 = vpop.f32.mrf.mxu2 }
 0x199   :  { %7455 = vmatpush.bf16.msra.mxu3 %v12067_v44  ;;  %v14164_v44 = vpop.f32.mrf.mxu3 }
 0x19a   :  { %7414 = vmatpush.bf16.msra.mxu0 %v12042_v45 }
 0x19b   :  { %7428 = vmatpush.bf16.msra.mxu1 %v12050_v46  ;;  %v6818_v46 = vadd.f32 %v13345_v12, %v6804_v37  ;;  %v12101_v12 = vld [vmem:[%s15557_s1 + $0xde0] sm:$0xff]  ;;  %v8323_v37 = vld [vmem:[%s15556_s0 + $0xd8] sm:$0xf] }
 0x19c   :  { %7442 = vmatpush.bf16.msra.mxu2 %v12058_v48 }
 0x19d   :  { %7456 = vmatpush.bf16.msra.mxu3 %v12066_v49  ;;  %v12077_v49 = vld [vmem:[%s15557_s1 + $0xd20] sm:$0xff] }
 0x19e   :  { %7415 = vmatpush.bf16.msra.mxu0 %v12041_v51  ;;  %v7193_v45 = vpop.f32.mrf.mxu0  ;;  %v12085_v51 = vld [vmem:[%s15557_s1 + $0xd60] sm:$0xff] }
 0x19f   :  { %7429 = vmatpush.bf16.msra.mxu1 %v12049_v52  ;;  %v7194_v48 = vadd.f32 %v7193_v45, %v14055_v39  ;;  %v7207_v52 = vpop.f32.mrf.mxu1  ;;  %v6832_v39 = vadd.f32 %v13365_v21, %v6818_v46  ;;  %v12100_v21 = vld [vmem:[%s15557_s1 + $0xdd8] sm:$0xff] }
 0x1a0   :  { %7443 = vmatpush.bf16.msra.mxu2 %v12057_v55  ;;  %v12093_v55 = vld [vmem:[%s15557_s1 + $0xda0] sm:$0xff]  ;;  %v11588_v45 = vld [vmem:[%s15556_s0 + $0xdc] sm:$0xf] }
 0x1a1   :  { %7457 = vmatpush.bf16.msra.mxu3 %v12065_v56  ;;  %7416 = vmatmul.bf16.vlgmr.msra.gmra.mxu0 %v8300_v14  ;;  %v7208_v56 = vadd.f32 %v7207_v52, %v7194_v48  ;;  %v6846_v61 = vadd.f32 %v13373_v24, %v6832_v39  ;;  %v12091_v24 = vld [vmem:[%s15557_s1 + $0xd90] sm:$0xff]  ;;  %v12090_v14 = vld [vmem:[%s15557_s1 + $0xd88] sm:$0xff]  ;;  %v8325_v46 = vld [vmem:[%s15556_s0 + $0x258] sm:$0xf0] }
 0x1a2   :  { %7464 = vmatpush.bf16.msrb.mxu0 %v12080_v54  ;;  %7430 = vmatmul.bf16.vlgmr.msra.gmra.mxu1 %v8304_v2  ;;  %v12084_v54 = vld [vmem:[%s15557_s1 + $0xd58] sm:$0xff]  ;;  %v12073_v2 = vld [vmem:[%s15557_s1 + $0xd00] sm:$0xff]  ;;  %v8328_v39 = vor.u32 %v11588_v45, %v8325_v46 }
 0x1a3   :  { %7478 = vmatpush.bf16.msrb.mxu1 %v12088_v59  ;;  %7444 = vmatmul.bf16.vlgmr.msra.gmra.mxu2 %v8308_v17  ;;  %v12092_v59 = vld [vmem:[%s15557_s1 + $0xd98] sm:$0xff]  ;;  %v6860_v62 = vadd.f32 %v13474_v5, %v6846_v61  ;;  %v12099_v5 = vld [vmem:[%s15557_s1 + $0xdd0] sm:$0xff]  ;;  %v12110_v61 = vld [vmem:[%s15557_s1 + $0xe28] sm:$0xff] }
 0x1a4   :  { %7492 = vmatpush.bf16.msrb.mxu2 %v12096_v7  ;;  %7458 = vmatmul.bf16.vlgmr.msra.gmra.mxu3 %v8312_v27  ;;  %v12081_v27 = vld [vmem:[%s15557_s1 + $0xd40] sm:$0xff]  ;;  %v12128_v48 = vld [vmem:[%s15557_s1 + $0xeb8] sm:$0xff] }
 0x1a5   :  { %7506 = vmatpush.bf16.msrb.mxu3 %v12104_v10  ;;  %v6874_v7 = vadd.f32 %v13476_v8, %v6860_v62  ;;  %v12074_v10 = vld [vmem:[%s15557_s1 + $0xd08] sm:$0xff]  ;;  %v12105_v46 = vld [vmem:[%s15557_s1 + $0xe00] sm:$0xff] }
 0x1a6   :  { %7465 = vmatpush.bf16.msrb.mxu0 %v12079_v31  ;;  %v7221_v60 = vpop.f32.mrf.mxu2  ;;  %v12098_v8 = vld [vmem:[%s15557_s1 + $0xdc8] sm:$0xff]  ;;  %v12089_v31 = vld [vmem:[%s15557_s1 + $0xd80] sm:$0xff] }
 0x1a7   :  { %7479 = vmatpush.bf16.msrb.mxu1 %v12087_v25  ;;  %v7222_v15 = vadd.f32 %v7221_v60, %v7208_v56  ;;  %v7235_v20 = vpop.f32.mrf.mxu3  ;;  %v6888_v17 = vadd.f32 %v13496_v18, %v6874_v7  ;;  %v12097_v25 = vld [vmem:[%s15557_s1 + $0xdc0] sm:$0xff]  ;;  %v12112_v18 = vld [vmem:[%s15557_s1 + $0xe38] sm:$0xff]  ;;  %v14275_v56 = vpop.f32.mrf.mxu1 }
 0x1a8   :  { %7493 = vmatpush.bf16.msrb.mxu2 %v12095_v32  ;;  %v12120_v32 = vld [vmem:[%s15557_s1 + $0xe78] sm:$0xff]  ;;  %v12117_v7 = vld [vmem:[%s15557_s1 + $0xe60] sm:$0xff] }
 0x1a9   :  { %7507 = vmatpush.bf16.msrb.mxu3 %v12103_v33  ;;  %v14195_v0 = vadd.f32 %v7235_v20, %v7222_v15  ;;  %v8315_v33 = vld [vmem:[%s15556_s0 + $0xd0] sm:$0xf]  ;;  %v12118_v15 = vld [vmem:[%s15557_s1 + $0xe68] sm:$0xff] }
 0x1aa   :  { %7466 = vmatpush.bf16.msrb.mxu0 %v12078_v41  ;;  %v11636_v41 = vld [vmem:[%s15556_s0 + $0x254] sm:$0xf0] }
 0x1ab   :  { %7480 = vmatpush.bf16.msrb.mxu1 %v12086_v42  ;;  %v11587_v42 = vld [vmem:[%s15556_s0 + $0xd4] sm:$0xf]  ;;  %v8324_v52 = vor.u32 %v11636_v41, %v8323_v37 }
 0x1ac   :  { %7494 = vmatpush.bf16.msrb.mxu2 %v12094_v30  ;;  %v6902_v30 = vadd.f32 %v13504_v23, %v6888_v17  ;;  %v12136_v23 = vld [vmem:[%s15557_s1 + $0xef8] sm:$0xff]  ;;  %v12115_v37 = vld [vmem:[%s15557_s1 + $0xe50] sm:$0xff] }
 0x1ad   :  { %7508 = vmatpush.bf16.msrb.mxu3 %v12102_v9  ;;  %v8317_v9 = vld [vmem:[%s15556_s0 + $0x250] sm:$0xf0]  ;;  %v12116_v17 = vld [vmem:[%s15557_s1 + $0xe58] sm:$0xff] }
 0x1ae   :  { %7467 = vmatpush.bf16.msrb.mxu0 %v12077_v49  ;;  %v6916_v49 = vadd.f32 %v13605_v6, %v6902_v30  ;;  %v12119_v6 = vld [vmem:[%s15557_s1 + $0xe70] sm:$0xff]  ;;  %v14297_v20 = vpop.f32.mrf.mxu2  ;;  %v12114_v30 = vld [vmem:[%s15557_s1 + $0xe48] sm:$0xff] }
 0x1af   :  { %7481 = vmatpush.bf16.msrb.mxu1 %v12085_v51  ;;  %v8316_v51 = vor.u32 %v11635_v34, %v8315_v33  ;;  %v14305_v62 = vpop.f32.mrf.mxu3  ;;  %v12107_v34 = vld [vmem:[%s15557_s1 + $0xe10] sm:$0xff] }
 0x1b0   :  { %7495 = vmatpush.bf16.msrb.mxu2 %v12093_v55  ;;  %v14273_v55 = vpop.f32.mrf.mxu0 }
 0x1b1   :  { %7509 = vmatpush.bf16.msrb.mxu3 %v12101_v12  ;;  %v8320_v12 = vor.u32 %v11587_v42, %v8317_v9  ;;  %v12106_v42 = vld [vmem:[%s15557_s1 + $0xe08] sm:$0xff] }
 0x1b2   :  { %7468 = vmatpush.bf16.msrb.mxu0 %v12076_v58  ;;  %v12111_v58 = vld [vmem:[%s15557_s1 + $0xe30] sm:$0xff]  ;;  %v12122_v9 = vld [vmem:[%s15557_s1 + $0xe88] sm:$0xff] }
 0x1b3   :  { %7482 = vmatpush.bf16.msrb.mxu1 %v12084_v54  ;;  %v12127_v54 = vld [vmem:[%s15557_s1 + $0xeb0] sm:$0xff] }
 0x1b4   :  { %7496 = vmatpush.bf16.msrb.mxu2 %v12092_v59  ;;  %v12135_v59 = vld [vmem:[%s15557_s1 + $0xef0] sm:$0xff] }
 0x1b5   :  { %7510 = vmatpush.bf16.msrb.mxu3 %v12100_v21  ;;  %v6930_v21 = vadd.f32 %v13607_v11, %v6916_v49  ;;  %v12126_v11 = vld [vmem:[%s15557_s1 + $0xea8] sm:$0xff]  ;;  %v12129_v49 = vld [vmem:[%s15557_s1 + $0xec0] sm:$0xff] }
 0x1b6   :  { %7469 = vmatpush.bf16.msrb.mxu0 %v12075_v1 }
 0x1b7   :  { %7483 = vmatpush.bf16.msrb.mxu1 %v12083_v4  ;;  %v6944_v60 = vadd.f32 %v13627_v26, %v6930_v21  ;;  %v12134_v26 = vld [vmem:[%s15557_s1 + $0xee8] sm:$0xff] }
 0x1b8   :  { %7497 = vmatpush.bf16.msrb.mxu2 %v12091_v24  ;;  %v11590_v21 = vld [vmem:[%s15556_s0 + $0xec] sm:$0xf] }
 0x1b9   :  { %7511 = vmatpush.bf16.msrb.mxu3 %v12099_v5  ;;  %v6958_v4 = vadd.f32 %v13635_v29, %v6944_v60  ;;  %v12109_v5 = vld [vmem:[%s15557_s1 + $0xe20] sm:$0xff]  ;;  %v8341_v60 = vld [vmem:[%s15556_s0 + $0x268] sm:$0xf0] }
 0x1ba   :  { %7470 = vmatpush.bf16.msrb.mxu0 %v12074_v10  ;;  %v12133_v29 = vld [vmem:[%s15557_s1 + $0xee0] sm:$0xff] }
 0x1bb   :  { %7484 = vmatpush.bf16.msrb.mxu1 %v12082_v13  ;;  %v12125_v13 = vld [vmem:[%s15557_s1 + $0xea0] sm:$0xff] }
 0x1bc   :  { %7498 = vmatpush.bf16.msrb.mxu2 %v12090_v14 }
 0x1bd   :  { %7512 = vmatpush.bf16.msrb.mxu3 %v12098_v8  ;;  %v12108_v8 = vld [vmem:[%s15557_s1 + $0xe18] sm:$0xff] }
 0x1be   :  { %7471 = vmatpush.bf16.msrb.mxu0 %v12073_v2  ;;  %v7249_v1 = vpop.f32.mrf.mxu0  ;;  %v12124_v2 = vld [vmem:[%s15557_s1 + $0xe98] sm:$0xff] }
 0x1bf   :  { %7485 = vmatpush.bf16.msrb.mxu1 %v12081_v27  ;;  %v7250_v24 = vadd.f32 %v7249_v1, %v14195_v0  ;;  %v7263_v10 = vpop.f32.mrf.mxu1  ;;  %v6972_v0 = vadd.f32 %v13736_v16, %v6958_v4  ;;  %v12132_v16 = vld [vmem:[%s15557_s1 + $0xed8] sm:$0xff] }
 0x1c0   :  { %7499 = vmatpush.bf16.msrb.mxu2 %v12089_v31 }
 0x1c1   :  { %7513 = vmatpush.bf16.msrb.mxu3 %v12097_v25  ;;  %7472 = vmatmul.bf16.vlgmr.msrb.gmra.mxu0 %v8316_v51  ;;  %v7264_v14 = vadd.f32 %v7263_v10, %v7250_v24  ;;  %v6986_v31 = vadd.f32 %v13738_v22, %v6972_v0  ;;  %v12123_v22 = vld [vmem:[%s15557_s1 + $0xe90] sm:$0xff]  ;;  %v12152_v51 = vld [vmem:[%s15557_s1 + $0xf78] sm:$0xff]  ;;  %v8344_v24 = vor.u32 %v11590_v21, %v8341_v60 }
 0x1c2   :  { %7520 = vmatpush.bf16.msra.mxu0 %v12112_v18  ;;  %7486 = vmatmul.bf16.vlgmr.msrb.gmra.mxu1 %v8320_v12  ;;  %v11637_v12 = vld [vmem:[%s15556_s0 + $0x25c] sm:$0xf0]  ;;  %v12159_v10 = vld [vmem:[%s15557_s1 + $0xfb0] sm:$0xff] }
 0x1c3   :  { %7534 = vmatpush.bf16.msra.mxu1 %v12120_v32  ;;  %7500 = vmatmul.bf16.vlgmr.msrb.gmra.mxu2 %v8324_v52  ;;  %v7000_v32 = vadd.f32 %v13758_v35, %v6986_v31  ;;  %v12131_v35 = vld [vmem:[%s15557_s1 + $0xed0] sm:$0xff]  ;;  %v8331_v52 = vld [vmem:[%s15556_s0 + $0xe0] sm:$0xf] }
 0x1c4   :  { %7548 = vmatpush.bf16.msra.mxu2 %v12128_v48  ;;  %7514 = vmatmul.bf16.vlgmr.msrb.gmra.mxu3 %v8328_v39  ;;  %v12113_v48 = vld [vmem:[%s15557_s1 + $0xe40] sm:$0xff]  ;;  %v8339_v39 = vld [vmem:[%s15556_s0 + $0xe8] sm:$0xf]  ;;  %v8347_v21 = vld [vmem:[%s15556_s0 + $0xf0] sm:$0xf] }
 0x1c5   :  { %7562 = vmatpush.bf16.msra.mxu3 %v12136_v23  ;;  %v7014_v41 = vadd.f32 %v13766_v38, %v7000_v32  ;;  %v12130_v38 = vld [vmem:[%s15557_s1 + $0xec8] sm:$0xff]  ;;  %v12121_v23 = vld [vmem:[%s15557_s1 + $0xe80] sm:$0xff]  ;;  %v11639_v60 = vld [vmem:[%s15556_s0 + $0x26c] sm:$0xf0] }
 0x1c6   :  { %7521 = vmatpush.bf16.msra.mxu0 %v12111_v58  ;;  %v7277_v27 = vpop.f32.mrf.mxu2  ;;  %v11638_v58 = vld [vmem:[%s15556_s0 + $0x264] sm:$0xf0]  ;;  %v14414_v1 = vpop.f32.mrf.mxu0 }
 0x1c7   :  { %7535 = vmatpush.bf16.msra.mxu1 %v12119_v6  ;;  %v7278_v25 = vadd.f32 %v7277_v27, %v7264_v14  ;;  %v7291_v18 = vpop.f32.mrf.mxu3  ;;  %v7028_v45 = vadd.f32 %v13867_v36, %v7014_v41  ;;  %v12144_v36 = vld [vmem:[%s15557_s1 + $0xf38] sm:$0xff]  ;;  %v11589_v6 = vld [vmem:[%s15556_s0 + $0xe4] sm:$0xf]  ;;  %v12142_v14 = vld [vmem:[%s15557_s1 + $0xf28] sm:$0xff] }
 0x1c8   :  { %7549 = vmatpush.bf16.msra.mxu2 %v12127_v54  ;;  %v12156_v41 = vld [vmem:[%s15557_s1 + $0xf98] sm:$0xff] }
 0x1c9   :  { %7563 = vmatpush.bf16.msra.mxu3 %v12135_v59  ;;  %v14336_v33 = vadd.f32 %v7291_v18, %v7278_v25  ;;  %v7042_v54 = vadd.f32 %v13869_v40, %v7028_v45  ;;  %v8333_v59 = vld [vmem:[%s15556_s0 + $0x260] sm:$0xf0]  ;;  %v12168_v40 = vld [vmem:[%s15557_s1 + $0xff8] sm:$0xff] }
 0x1ca   :  { %7522 = vmatpush.bf16.msra.mxu0 %v12110_v61  ;;  %v12160_v61 = vld [vmem:[%s15557_s1 + $0xfb8] sm:$0xff]  ;;  %v8336_v4 = vor.u32 %v11589_v6, %v8333_v59  ;;  %v12141_v25 = vld [vmem:[%s15557_s1 + $0xf20] sm:$0xff] }
 0x1cb   :  { %7536 = vmatpush.bf16.msra.mxu1 %v12118_v15  ;;  %v7056_v15 = vadd.f32 %v13889_v47, %v7042_v54  ;;  %v12151_v47 = vld [vmem:[%s15557_s1 + $0xf70] sm:$0xff]  ;;  %v12149_v18 = vld [vmem:[%s15557_s1 + $0xf60] sm:$0xff]  ;;  %v12184_v59 = vld [vmem:[%s15557_s1 + $0x1078] sm:$0xff] }
 0x1cc   :  { %7550 = vmatpush.bf16.msra.mxu2 %v12126_v11  ;;  %v8332_v11 = vor.u32 %v11637_v12, %v8331_v52  ;;  %v12154_v52 = vld [vmem:[%s15557_s1 + $0xf88] sm:$0xff]  ;;  %v12153_v6 = vld [vmem:[%s15557_s1 + $0xf80] sm:$0xff] }
 0x1cd   :  { %7564 = vmatpush.bf16.msra.mxu3 %v12134_v26  ;;  %v8340_v26 = vor.u32 %v11638_v58, %v8339_v39  ;;  %v12137_v39 = vld [vmem:[%s15557_s1 + $0xf00] sm:$0xff] }
 0x1ce   :  { %7523 = vmatpush.bf16.msra.mxu0 %v12109_v5  ;;  %v14416_v5 = vpop.f32.mrf.mxu1  ;;  %v12145_v58 = vld [vmem:[%s15557_s1 + $0xf40] sm:$0xff] }
 0x1cf   :  { %7537 = vmatpush.bf16.msra.mxu1 %v12117_v7  ;;  %v12143_v7 = vld [vmem:[%s15557_s1 + $0xf30] sm:$0xff]  ;;  %v12161_v54 = vld [vmem:[%s15557_s1 + $0xfc0] sm:$0xff] }
 0x1d0   :  { %7551 = vmatpush.bf16.msra.mxu2 %v12125_v13  ;;  %v12167_v13 = vld [vmem:[%s15557_s1 + $0xff0] sm:$0xff] }
 0x1d1   :  { %7565 = vmatpush.bf16.msra.mxu3 %v12133_v29  ;;  %v7070_v29 = vadd.f32 %v13897_v50, %v7056_v15  ;;  %v12158_v50 = vld [vmem:[%s15557_s1 + $0xfa8] sm:$0xff]  ;;  %v11591_v15 = vld [vmem:[%s15556_s0 + $0xf4] sm:$0xf] }
 0x1d2   :  { %7524 = vmatpush.bf16.msra.mxu0 %v12108_v8  ;;  %v12150_v8 = vld [vmem:[%s15557_s1 + $0xf68] sm:$0xff] }
 0x1d3   :  { %7538 = vmatpush.bf16.msra.mxu1 %v12116_v17  ;;  %v7084_v0 = vadd.f32 %v13998_v53, %v7070_v29  ;;  %v14438_v17 = vpop.f32.mrf.mxu2  ;;  %v12166_v53 = vld [vmem:[%s15557_s1 + $0xfe8] sm:$0xff] }
 0x1d4   :  { %7552 = vmatpush.bf16.msra.mxu2 %v12124_v2  ;;  %v14446_v2 = vpop.f32.mrf.mxu3 }
 0x1d5   :  { %7566 = vmatpush.bf16.msra.mxu3 %v12132_v16  ;;  %v7098_v27 = vadd.f32 %v14000_v57, %v7084_v0  ;;  %v12165_v57 = vld [vmem:[%s15557_s1 + $0xfe0] sm:$0xff] }
 0x1d6   :  { %7525 = vmatpush.bf16.msra.mxu0 %v12107_v34  ;;  %v12157_v34 = vld [vmem:[%s15557_s1 + $0xfa0] sm:$0xff] }
 0x1d7   :  { %7539 = vmatpush.bf16.msra.mxu1 %v12115_v37 }
 0x1d8   :  { %7553 = vmatpush.bf16.msra.mxu2 %v12123_v22  ;;  %v12140_v22 = vld [vmem:[%s15557_s1 + $0xf18] sm:$0xff] }
 0x1d9   :  { %7567 = vmatpush.bf16.msra.mxu3 %v12131_v35  ;;  %v12148_v35 = vld [vmem:[%s15557_s1 + $0xf58] sm:$0xff] }
 0x1da   :  { %7526 = vmatpush.bf16.msra.mxu0 %v12106_v42 }
 0x1db   :  { %7540 = vmatpush.bf16.msra.mxu1 %v12114_v30 }
 0x1dc   :  { %7554 = vmatpush.bf16.msra.mxu2 %v12122_v9 }
 0x1dd   :  { %7568 = vmatpush.bf16.msra.mxu3 %v12130_v38 }
 0x1de   :  { %7527 = vmatpush.bf16.msra.mxu0 %v12105_v46  ;;  %v7305_v16 = vpop.f32.mrf.mxu0 }
 0x1df   :  { %7541 = vmatpush.bf16.msra.mxu1 %v12113_v48  ;;  %v7306_v31 = vadd.f32 %v7305_v16, %v14336_v33  ;;  %v7319_v32 = vpop.f32.mrf.mxu1  ;;  %v7112_v33 = vadd.f32 %v14020_v63, %v7098_v27  ;;  %v12164_v63 = vld [vmem:[%s15557_s1 + $0xfd8] sm:$0xff]  ;;  %v12139_v48 = vld [vmem:[%s15557_s1 + $0xf10] sm:$0xff] }
 0x1e0   :  { %7555 = vmatpush.bf16.msra.mxu2 %v12121_v23  ;;  %v12147_v23 = vld [vmem:[%s15557_s1 + $0xf50] sm:$0xff] }
 0x1e1   :  { %7569 = vmatpush.bf16.msra.mxu3 %v12129_v49  ;;  %7528 = vmatmul.bf16.vlgmr.msra.gmra.mxu0 %v8332_v11  ;;  %v7320_v37 = vadd.f32 %v7319_v32, %v7306_v31  ;;  %v7126_v30 = vadd.f32 %v14028_v3, %v7112_v33  ;;  %v12155_v3 = vld [vmem:[%s15557_s1 + $0xf90] sm:$0xff] }
 0x1e2   :  { %7576 = vmatpush.bf16.msrb.mxu0 %v12144_v36  ;;  %7542 = vmatmul.bf16.vlgmr.msra.gmra.mxu1 %v8336_v4  ;;  %v12138_v36 = vld [vmem:[%s15557_s1 + $0xf08] sm:$0xff]  ;;  %v11592_v4 = vld [vmem:[%s15556_s0 + $0xfc] sm:$0xf]  ;;  %v12199_v16 = vld [vmem:[%s15557_s1 + $0x10f0] sm:$0xff] }
 0x1e3   :  { %7590 = vmatpush.bf16.msrb.mxu1 %v12152_v51  ;;  %7556 = vmatmul.bf16.vlgmr.msra.gmra.mxu2 %v8340_v26  ;;  %v7140_v45 = vadd.f32 %v14132_v19, %v7126_v30  ;;  %v12163_v19 = vld [vmem:[%s15557_s1 + $0xfd0] sm:$0xff]  ;;  %v12146_v51 = vld [vmem:[%s15557_s1 + $0xf48] sm:$0xff] }
 0x1e4   :  { %7604 = vmatpush.bf16.msrb.mxu2 %v12160_v61  ;;  %7570 = vmatmul.bf16.vlgmr.msra.gmra.mxu3 %v8344_v24  ;;  %v8355_v61 = vld [vmem:[%s15556_s0 + $0xf8] sm:$0xf]  ;;  %v8349_v26 = vld [vmem:[%s15556_s0 + $0x270] sm:$0xf0]  ;;  %v8357_v24 = vld [vmem:[%s15556_s0 + $0x278] sm:$0xf0] }
 0x1e5   :  { %7618 = vmatpush.bf16.msrb.mxu3 %v12168_v40  ;;  %v7154_v49 = vadd.f32 %v14134_v28, %v7140_v45  ;;  %v12162_v28 = vld [vmem:[%s15557_s1 + $0xfc8] sm:$0xff]  ;;  %v11640_v40 = vld [vmem:[%s15556_s0 + $0x274] sm:$0xf0]  ;;  %v8352_v0 = vor.u32 %v11591_v15, %v8349_v26  ;;  %v11593_v26 = vld [vmem:[%s15556_s0 + $0x104] sm:$0xf] }
 0x1e6   :  { %7577 = vmatpush.bf16.msrb.mxu0 %v12143_v7  ;;  %v7333_v42 = vpop.f32.mrf.mxu2  ;;  %v12192_v7 = vld [vmem:[%s15557_s1 + $0x10b8] sm:$0xff]  ;;  %v14555_v29 = vpop.f32.mrf.mxu0  ;;  %v8371_v15 = vld [vmem:[%s15556_s0 + $0x108] sm:$0xf] }
 0x1e7   :  { %7591 = vmatpush.bf16.msrb.mxu1 %v12151_v47  ;;  %v7334_v9 = vadd.f32 %v7333_v42, %v7320_v37  ;;  %v7347_v38 = vpop.f32.mrf.mxu3  ;;  %v7168_v12 = vadd.f32 %v14156_v43, %v7154_v49  ;;  %v12176_v43 = vld [vmem:[%s15557_s1 + $0x1038] sm:$0xff] }
 0x1e8   :  { %7605 = vmatpush.bf16.msrb.mxu2 %v12159_v10  ;;  %v8348_v10 = vor.u32 %v11639_v60, %v8347_v21  ;;  %v12188_v45 = vld [vmem:[%s15557_s1 + $0x1098] sm:$0xff] }
 0x1e9   :  { %7619 = vmatpush.bf16.msrb.mxu3 %v12167_v13  ;;  %v14477_v46 = vadd.f32 %v7347_v38, %v7334_v9  ;;  %v7182_v11 = vadd.f32 %v14164_v44, %v7168_v12  ;;  %v12200_v44 = vld [vmem:[%s15557_s1 + $0x10f8] sm:$0xff]  ;;  %v8356_v13 = vor.u32 %v11640_v40, %v8355_v61  ;;  %v12178_v12 = vld [vmem:[%s15557_s1 + $0x1048] sm:$0xff]  ;;  %v8363_v61 = vld [vmem:[%s15556_s0 + $0x100] sm:$0xf] }
 0x1ea   :  { %7578 = vmatpush.bf16.msrb.mxu0 %v12142_v14  ;;  %v8360_v14 = vor.u32 %v11592_v4, %v8357_v24  ;;  %v12172_v9 = vld [vmem:[%s15557_s1 + $0x1018] sm:$0xff]  ;;  %v11641_v40 = vld [vmem:[%s15556_s0 + $0x27c] sm:$0xf0]  ;;  %v8365_v24 = vld [vmem:[%s15556_s0 + $0x280] sm:$0xf0] }
 0x1eb   :  { %7592 = vmatpush.bf16.msrb.mxu1 %v12150_v8  ;;  %v7196_v47 = vadd.f32 %v14273_v55, %v7182_v11  ;;  %v14557_v8 = vpop.f32.mrf.mxu1  ;;  %v12183_v55 = vld [vmem:[%s15557_s1 + $0x1070] sm:$0xff]  ;;  %v12180_v38 = vld [vmem:[%s15557_s1 + $0x1058] sm:$0xff]  ;;  %v11642_v11 = vld [vmem:[%s15556_s0 + $0x284] sm:$0xf0] }
 0x1ec   :  { %7606 = vmatpush.bf16.msrb.mxu2 %v12158_v50  ;;  %v12175_v50 = vld [vmem:[%s15557_s1 + $0x1030] sm:$0xff]  ;;  %v12208_v21 = vld [vmem:[%s15557_s1 + $0x1138] sm:$0xff] }
 0x1ed   :  { %7620 = vmatpush.bf16.msrb.mxu3 %v12166_v53  ;;  %v12191_v53 = vld [vmem:[%s15557_s1 + $0x10b0] sm:$0xff]  ;;  %v7210_v27 = vadd.f32 %v14275_v56, %v7196_v47  ;;  %v12190_v56 = vld [vmem:[%s15557_s1 + $0x10a8] sm:$0xff]  ;;  %v12216_v60 = vld [vmem:[%s15557_s1 + $0x1178] sm:$0xff] }
 0x1ee   :  { %7579 = vmatpush.bf16.msrb.mxu0 %v12141_v25  ;;  %v12174_v25 = vld [vmem:[%s15557_s1 + $0x1028] sm:$0xff]  ;;  %v14579_v32 = vpop.f32.mrf.mxu2  ;;  %v12224_v47 = vld [vmem:[%s15557_s1 + $0x11b8] sm:$0xff] }
 0x1ef   :  { %7593 = vmatpush.bf16.msrb.mxu1 %v12149_v18  ;;  %v7224_v31 = vadd.f32 %v14297_v20, %v7210_v27  ;;  %v12182_v18 = vld [vmem:[%s15557_s1 + $0x1068] sm:$0xff]  ;;  %v12223_v27 = vld [vmem:[%s15557_s1 + $0x11b0] sm:$0xff] }
 0x1f0   :  { %7607 = vmatpush.bf16.msrb.mxu2 %v12157_v34  ;;  %v12198_v20 = vld [vmem:[%s15557_s1 + $0x10e8] sm:$0xff]  ;;  %v14587_v34 = vpop.f32.mrf.mxu3 }
 0x1f1   :  { %7621 = vmatpush.bf16.msrb.mxu3 %v12165_v57  ;;  %v7238_v33 = vadd.f32 %v14305_v62, %v7224_v31  ;;  %v12197_v62 = vld [vmem:[%s15557_s1 + $0x10e0] sm:$0xff]  ;;  %v12231_v31 = vld [vmem:[%s15557_s1 + $0x11f0] sm:$0xff] }
 0x1f2   :  { %7580 = vmatpush.bf16.msrb.mxu0 %v12140_v22  ;;  %v12173_v22 = vld [vmem:[%s15557_s1 + $0x1020] sm:$0xff] }
 0x1f3   :  { %7594 = vmatpush.bf16.msrb.mxu1 %v12148_v35  ;;  %v12181_v35 = vld [vmem:[%s15557_s1 + $0x1060] sm:$0xff]  ;;  %v7252_v42 = vadd.f32 %v14414_v1, %v7238_v33  ;;  %v12196_v1 = vld [vmem:[%s15557_s1 + $0x10d8] sm:$0xff] }
 0x1f4   :  { %7608 = vmatpush.bf16.msrb.mxu2 %v12156_v41 }
 0x1f5   :  { %7622 = vmatpush.bf16.msrb.mxu3 %v12164_v63  ;;  %v12189_v63 = vld [vmem:[%s15557_s1 + $0x10a0] sm:$0xff] }
 0x1f6   :  { %7581 = vmatpush.bf16.msrb.mxu0 %v12139_v48  ;;  %v7266_v48 = vadd.f32 %v14416_v5, %v7252_v42  ;;  %v12187_v5 = vld [vmem:[%s15557_s1 + $0x1090] sm:$0xff]  ;;  %v12221_v42 = vld [vmem:[%s15557_s1 + $0x11a0] sm:$0xff] }
 0x1f7   :  { %7595 = vmatpush.bf16.msrb.mxu1 %v12147_v23 }
 0x1f8   :  { %7609 = vmatpush.bf16.msrb.mxu2 %v12155_v3 }
 0x1f9   :  { %7623 = vmatpush.bf16.msrb.mxu3 %v12163_v19  ;;  %v7280_v19 = vadd.f32 %v14438_v17, %v7266_v48  ;;  %v12195_v17 = vld [vmem:[%s15557_s1 + $0x10d0] sm:$0xff]  ;;  %v12228_v48 = vld [vmem:[%s15557_s1 + $0x11d8] sm:$0xff] }
 0x1fa   :  { %7582 = vmatpush.bf16.msrb.mxu0 %v12138_v36  ;;  %v12171_v36 = vld [vmem:[%s15557_s1 + $0x1010] sm:$0xff] }
 0x1fb   :  { %7596 = vmatpush.bf16.msrb.mxu1 %v12146_v51  ;;  %v12179_v51 = vld [vmem:[%s15557_s1 + $0x1050] sm:$0xff] }
 0x1fc   :  { %7610 = vmatpush.bf16.msrb.mxu2 %v12154_v52  ;;  %v7294_v52 = vadd.f32 %v14446_v2, %v7280_v19  ;;  %v12194_v2 = vld [vmem:[%s15557_s1 + $0x10c8] sm:$0xff] }
 0x1fd   :  { %7624 = vmatpush.bf16.msrb.mxu3 %v12162_v28  ;;  %v12170_v28 = vld [vmem:[%s15557_s1 + $0x1008] sm:$0xff] }
 0x1fe   :  { %7583 = vmatpush.bf16.msrb.mxu0 %v12137_v39  ;;  %v7361_v57 = vpop.f32.mrf.mxu0  ;;  %v12186_v39 = vld [vmem:[%s15557_s1 + $0x1088] sm:$0xff] }
 0x1ff   :  { %7597 = vmatpush.bf16.msrb.mxu1 %v12145_v58  ;;  %v7362_v37 = vadd.f32 %v7361_v57, %v14477_v46  ;;  %v7375_v41 = vpop.f32.mrf.mxu1  ;;  %v7308_v58 = vadd.f32 %v14555_v29, %v7294_v52  ;;  %v8364_v29 = vor.u32 %v11641_v40, %v8363_v61  ;;  %v12230_v57 = vld [vmem:[%s15557_s1 + $0x11e8] sm:$0xff]  ;;  %v12211_v52 = vld [vmem:[%s15557_s1 + $0x1150] sm:$0xff]  ;;  %v12201_v61 = vld [vmem:[%s15557_s1 + $0x1100] sm:$0xff] }
 0x200   :  { %7611 = vmatpush.bf16.msrb.mxu2 %v12153_v6  ;;  %v12169_v6 = vld [vmem:[%s15557_s1 + $0x1000] sm:$0xff] }
 0x201   :  { %7625 = vmatpush.bf16.msrb.mxu3 %v12161_v54  ;;  %7584 = vmatmul.bf16.vlgmr.msrb.gmra.mxu0 %v8348_v10  ;;  %v7376_v30 = vadd.f32 %v7375_v41, %v7362_v37  ;;  %v12177_v54 = vld [vmem:[%s15557_s1 + $0x1040] sm:$0xff]  ;;  %v7322_v4 = vadd.f32 %v14557_v8, %v7308_v58  ;;  %v12232_v10 = vld [vmem:[%s15557_s1 + $0x11f8] sm:$0xff]  ;;  %v8368_v8 = vor.u32 %v11593_v26, %v8365_v24  ;;  %v12202_v58 = vld [vmem:[%s15557_s1 + $0x1108] sm:$0xff] }
 0x202   :  { %7632 = vmatpush.bf16.msra.mxu0 %v12176_v43  ;;  %7598 = vmatmul.bf16.vlgmr.msrb.gmra.mxu1 %v8352_v0  ;;  %v12185_v43 = vld [vmem:[%s15557_s1 + $0x1080] sm:$0xff]  ;;  %v8372_v0 = vor.u32 %v11642_v11, %v8371_v15  ;;  %v12248_v24 = vld [vmem:[%s15557_s1 + $0x1278] sm:$0xff] }
 0x203   :  { %7646 = vmatpush.bf16.msra.mxu1 %v12184_v59  ;;  %7612 = vmatmul.bf16.vlgmr.msrb.gmra.mxu2 %v8356_v13  ;;  %v12193_v59 = vld [vmem:[%s15557_s1 + $0x10c0] sm:$0xff]  ;;  %v7336_v13 = vadd.f32 %v14579_v32, %v7322_v4  ;;  %v12206_v32 = vld [vmem:[%s15557_s1 + $0x1128] sm:$0xff]  ;;  %v12240_v4 = vld [vmem:[%s15557_s1 + $0x1238] sm:$0xff] }
 0x204   :  { %7660 = vmatpush.bf16.msra.mxu2 %v12192_v7  ;;  %7626 = vmatmul.bf16.vlgmr.msrb.gmra.mxu3 %v8360_v14  ;;  %v11594_v7 = vld [vmem:[%s15556_s0 + $0x10c] sm:$0xf]  ;;  %v12205_v41 = vld [vmem:[%s15557_s1 + $0x1120] sm:$0xff] }
 0x205   :  { %7674 = vmatpush.bf16.msra.mxu3 %v12200_v44  ;;  %v8373_v44 = vld [vmem:[%s15556_s0 + $0x288] sm:$0xf0]  ;;  %v12209_v40 = vld [vmem:[%s15557_s1 + $0x1140] sm:$0xff] }
 0x206   :  { %7633 = vmatpush.bf16.msra.mxu0 %v12175_v50  ;;  %v7389_v46 = vpop.f32.mrf.mxu2  ;;  %v7363_v14 = vpop.f32.mrf.mxu0  ;;  %v8376_v50 = vor.u32 %v11594_v7, %v8373_v44  ;;  %v12217_v15 = vld [vmem:[%s15557_s1 + $0x1180] sm:$0xff]  ;;  %v8379_v7 = vld [vmem:[%s15556_s0 + $0x110] sm:$0xf] }
 0x207   :  { %7647 = vmatpush.bf16.msra.mxu1 %v12183_v55  ;;  %v7390_v23 = vadd.f32 %v7389_v46, %v7376_v30  ;;  %v7403_v3 = vpop.f32.mrf.mxu3  ;;  %v7377_v55 = vpop.f32.mrf.mxu1  ;;  %v12229_v30 = vld [vmem:[%s15557_s1 + $0x11e0] sm:$0xff]  ;;  %v12220_v46 = vld [vmem:[%s15557_s1 + $0x1198] sm:$0xff]  ;;  %v11643_v44 = vld [vmem:[%s15556_s0 + $0x28c] sm:$0xf0] }
 0x208   :  { %7661 = vmatpush.bf16.msra.mxu2 %v12191_v53  ;;  %v12207_v53 = vld [vmem:[%s15557_s1 + $0x1130] sm:$0xff]  ;;  %v12225_v11 = vld [vmem:[%s15557_s1 + $0x11c0] sm:$0xff] }
 0x209   :  { %7675 = vmatpush.bf16.msra.mxu3 %v12199_v16  ;;  %v14618_v49 = vadd.f32 %v7403_v3, %v7390_v23  ;;  %v12215_v16 = vld [vmem:[%s15557_s1 + $0x1170] sm:$0xff] }
 0x20a   :  { %7634 = vmatpush.bf16.msra.mxu0 %v12174_v25  ;;  %v7350_v25 = vadd.f32 %v14587_v34, %v7336_v13  ;;  %v12222_v34 = vld [vmem:[%s15557_s1 + $0x11a8] sm:$0xff]  ;;  %v11595_v13 = vld [vmem:[%s15556_s0 + $0x114] sm:$0xf] }
 0x20b   :  { %7648 = vmatpush.bf16.msra.mxu1 %v12182_v18 }
 0x20c   :  { %7662 = vmatpush.bf16.msra.mxu2 %v12190_v56  ;;  %v7364_v18 = vadd.f32 %v7363_v14, %v7350_v25  ;;  %v12214_v56 = vld [vmem:[%s15557_s1 + $0x1168] sm:$0xff]  ;;  %v8389_v14 = vld [vmem:[%s15556_s0 + $0x298] sm:$0xf0]  ;;  %v12247_v25 = vld [vmem:[%s15557_s1 + $0x1270] sm:$0xff] }
 0x20d   :  { %7676 = vmatpush.bf16.msra.mxu3 %v12198_v20 }
 0x20e   :  { %7635 = vmatpush.bf16.msra.mxu0 %v12173_v22  ;;  %v7391_v20 = vpop.f32.mrf.mxu2  ;;  %v7378_v22 = vadd.f32 %v7377_v55, %v7364_v18  ;;  %v8380_v55 = vor.u32 %v11643_v44, %v8379_v7  ;;  %v12255_v18 = vld [vmem:[%s15557_s1 + $0x12b0] sm:$0xff]  ;;  %v11597_v7 = vld [vmem:[%s15556_s0 + $0x124] sm:$0xf] }
 0x20f   :  { %7649 = vmatpush.bf16.msra.mxu1 %v12181_v35  ;;  %v7405_v33 = vpop.f32.mrf.mxu3  ;;  %v8397_v44 = vld [vmem:[%s15556_s0 + $0x2a0] sm:$0xf0] }
 0x210   :  { %7663 = vmatpush.bf16.msra.mxu2 %v12189_v63  ;;  %v12213_v63 = vld [vmem:[%s15557_s1 + $0x1160] sm:$0xff] }
 0x211   :  { %7677 = vmatpush.bf16.msra.mxu3 %v12197_v62 }
 0x212   :  { %7636 = vmatpush.bf16.msra.mxu0 %v12172_v9  ;;  %v7392_v9 = vadd.f32 %v7391_v20, %v7378_v22  ;;  %v12246_v20 = vld [vmem:[%s15557_s1 + $0x1268] sm:$0xff]  ;;  %v12237_v22 = vld [vmem:[%s15557_s1 + $0x1220] sm:$0xff] }
 0x213   :  { %7650 = vmatpush.bf16.msra.mxu1 %v12180_v38 }
 0x214   :  { %7664 = vmatpush.bf16.msra.mxu2 %v12188_v45  ;;  %v12204_v45 = vld [vmem:[%s15557_s1 + $0x1118] sm:$0xff]  ;;  %v7406_v3 = vadd.f32 %v7405_v33, %v7392_v9 }
 0x215   :  { %7678 = vmatpush.bf16.msra.mxu3 %v12196_v1  ;;  %v12212_v1 = vld [vmem:[%s15557_s1 + $0x1158] sm:$0xff] }
 0x216   :  { %7637 = vmatpush.bf16.msra.mxu0 %v12171_v36  ;;  %v12244_v9 = vld [vmem:[%s15557_s1 + $0x1258] sm:$0xff] }
 0x217   :  { %7651 = vmatpush.bf16.msra.mxu1 %v12179_v51 }
 0x218   :  { %7665 = vmatpush.bf16.msra.mxu2 %v12187_v5 }
 0x219   :  { %7679 = vmatpush.bf16.msra.mxu3 %v12195_v17  ;;  %v12203_v17 = vld [vmem:[%s15557_s1 + $0x1110] sm:$0xff] }
 0x21a   :  { %7638 = vmatpush.bf16.msra.mxu0 %v12170_v28 }
 0x21b   :  { %7652 = vmatpush.bf16.msra.mxu1 %v12178_v12  ;;  %v12219_v12 = vld [vmem:[%s15557_s1 + $0x1190] sm:$0xff] }
 0x21c   :  { %7666 = vmatpush.bf16.msra.mxu2 %v12186_v39  ;;  %v12227_v39 = vld [vmem:[%s15557_s1 + $0x11d0] sm:$0xff] }
 0x21d   :  { %7680 = vmatpush.bf16.msra.mxu3 %v12194_v2 }
 0x21e   :  { %7639 = vmatpush.bf16.msra.mxu0 %v12169_v6  ;;  %v7417_v37 = vpop.f32.mrf.mxu0  ;;  %v12210_v6 = vld [vmem:[%s15557_s1 + $0x1148] sm:$0xff] }
 0x21f   :  { %7653 = vmatpush.bf16.msra.mxu1 %v12177_v54  ;;  %v7418_v35 = vadd.f32 %v7417_v37, %v14618_v49  ;;  %v7431_v62 = vpop.f32.mrf.mxu1  ;;  %v12218_v54 = vld [vmem:[%s15557_s1 + $0x1188] sm:$0xff] }
 0x220   :  { %7667 = vmatpush.bf16.msra.mxu2 %v12185_v43  ;;  %v12226_v43 = vld [vmem:[%s15557_s1 + $0x11c8] sm:$0xff] }
 0x221   :  { %7681 = vmatpush.bf16.msra.mxu3 %v12193_v59  ;;  %7640 = vmatmul.bf16.vlgmr.msra.gmra.mxu0 %v8364_v29  ;;  %v7432_v38 = vadd.f32 %v7431_v62, %v7418_v35  ;;  %v8381_v29 = vld [vmem:[%s15556_s0 + $0x290] sm:$0xf0]  ;;  %v12245_v35 = vld [vmem:[%s15557_s1 + $0x1260] sm:$0xff] }
 0x222   :  { %7688 = vmatpush.bf16.msrb.mxu0 %v12208_v21  ;;  %7654 = vmatmul.bf16.vlgmr.msra.gmra.mxu1 %v8368_v8  ;;  %v12256_v8 = vld [vmem:[%s15557_s1 + $0x12b8] sm:$0xff]  ;;  %v12261_v62 = vld [vmem:[%s15557_s1 + $0x12e0] sm:$0xff] }
 0x223   :  { %7702 = vmatpush.bf16.msrb.mxu1 %v12216_v60  ;;  %7668 = vmatmul.bf16.vlgmr.msra.gmra.mxu2 %v8372_v0  ;;  %v11596_v0 = vld [vmem:[%s15556_s0 + $0x11c] sm:$0xf] }
 0x224   :  { %7716 = vmatpush.bf16.msrb.mxu2 %v12224_v47  ;;  %7682 = vmatmul.bf16.vlgmr.msra.gmra.mxu3 %v8376_v50  ;;  %v8387_v47 = vld [vmem:[%s15556_s0 + $0x118] sm:$0xf] }
 0x225   :  { %7730 = vmatpush.bf16.msrb.mxu3 %v12232_v10  ;;  %v11644_v10 = vld [vmem:[%s15556_s0 + $0x294] sm:$0xf0] }
 0x226   :  { %7689 = vmatpush.bf16.msrb.mxu0 %v12207_v53  ;;  %v7445_v23 = vpop.f32.mrf.mxu2  ;;  %v7419_v36 = vpop.f32.mrf.mxu0  ;;  %v12264_v50 = vld [vmem:[%s15557_s1 + $0x12f8] sm:$0xff]  ;;  %v8388_v53 = vor.u32 %v11644_v10, %v8387_v47  ;;  %v11598_v47 = vld [vmem:[%s15556_s0 + $0x12c] sm:$0xf] }
 0x227   :  { %7703 = vmatpush.bf16.msrb.mxu1 %v12215_v16  ;;  %v7446_v19 = vadd.f32 %v7445_v23, %v7432_v38  ;;  %v7459_v49 = vpop.f32.mrf.mxu3  ;;  %v7420_v51 = vadd.f32 %v7419_v36, %v7406_v3  ;;  %v7433_v28 = vpop.f32.mrf.mxu1  ;;  %v8384_v16 = vor.u32 %v11595_v13, %v8381_v29  ;;  %v12252_v38 = vld [vmem:[%s15557_s1 + $0x1298] sm:$0xff]  ;;  %v12243_v36 = vld [vmem:[%s15557_s1 + $0x1250] sm:$0xff]  ;;  %v8405_v10 = vld [vmem:[%s15556_s0 + $0x2a8] sm:$0xf0] }
 0x228   :  { %7717 = vmatpush.bf16.msrb.mxu2 %v12223_v27  ;;  %v8392_v27 = vor.u32 %v11596_v0, %v8389_v14  ;;  %v12288_v13 = vld [vmem:[%s15557_s1 + $0x13b8] sm:$0xff] }
 0x229   :  { %7731 = vmatpush.bf16.msrb.mxu3 %v12231_v31  ;;  %v14746_v5 = vadd.f32 %v7459_v49, %v7446_v19  ;;  %v7434_v2 = vadd.f32 %v7433_v28, %v7420_v51  ;;  %v12239_v31 = vld [vmem:[%s15557_s1 + $0x1230] sm:$0xff]  ;;  %v12234_v28 = vld [vmem:[%s15557_s1 + $0x1208] sm:$0xff]  ;;  %v12296_v29 = vld [vmem:[%s15557_s1 + $0x13f8] sm:$0xff] }
 0x22a   :  { %7690 = vmatpush.bf16.msrb.mxu0 %v12206_v32  ;;  %v12263_v32 = vld [vmem:[%s15557_s1 + $0x12f0] sm:$0xff] }
 0x22b   :  { %7704 = vmatpush.bf16.msrb.mxu1 %v12214_v56  ;;  %v12238_v56 = vld [vmem:[%s15557_s1 + $0x1228] sm:$0xff]  ;;  %v12235_v49 = vld [vmem:[%s15557_s1 + $0x1210] sm:$0xff] }
 0x22c   :  { %7718 = vmatpush.bf16.msrb.mxu2 %v12222_v34  ;;  %v12254_v34 = vld [vmem:[%s15557_s1 + $0x12a8] sm:$0xff] }
 0x22d   :  { %7732 = vmatpush.bf16.msrb.mxu3 %v12230_v57  ;;  %v12262_v57 = vld [vmem:[%s15557_s1 + $0x12e8] sm:$0xff] }
 0x22e   :  { %7691 = vmatpush.bf16.msrb.mxu0 %v12205_v41  ;;  %v7447_v59 = vpop.f32.mrf.mxu2 }
 0x22f   :  { %7705 = vmatpush.bf16.msrb.mxu1 %v12213_v63  ;;  %v7448_v21 = vadd.f32 %v7447_v59, %v7434_v2  ;;  %v7461_v60 = vpop.f32.mrf.mxu3  ;;  %v12253_v63 = vld [vmem:[%s15557_s1 + $0x12a0] sm:$0xff]  ;;  %v12258_v2 = vld [vmem:[%s15557_s1 + $0x12c8] sm:$0xff] }
 0x230   :  { %7719 = vmatpush.bf16.msrb.mxu2 %v12221_v42  ;;  %v12241_v59 = vld [vmem:[%s15557_s1 + $0x1240] sm:$0xff] }
 0x231   :  { %7733 = vmatpush.bf16.msrb.mxu3 %v12229_v30  ;;  %v14784_v26 = vadd.f32 %v7461_v60, %v7448_v21  ;;  %v12236_v30 = vld [vmem:[%s15557_s1 + $0x1218] sm:$0xff]  ;;  %v12249_v21 = vld [vmem:[%s15557_s1 + $0x1280] sm:$0xff] }
 0x232   :  { %7692 = vmatpush.bf16.msrb.mxu0 %v12204_v45  ;;  %v12260_v45 = vld [vmem:[%s15557_s1 + $0x12d8] sm:$0xff]  ;;  %v12257_v60 = vld [vmem:[%s15557_s1 + $0x12c0] sm:$0xff] }
 0x233   :  { %7706 = vmatpush.bf16.msrb.mxu1 %v12212_v1 }
 0x234   :  { %7720 = vmatpush.bf16.msrb.mxu2 %v12220_v46 }
 0x235   :  { %7734 = vmatpush.bf16.msrb.mxu3 %v12228_v48 }
 0x236   :  { %7693 = vmatpush.bf16.msrb.mxu0 %v12203_v17  ;;  %v12259_v17 = vld [vmem:[%s15557_s1 + $0x12d0] sm:$0xff] }
 0x237   :  { %7707 = vmatpush.bf16.msrb.mxu1 %v12211_v52 }
 0x238   :  { %7721 = vmatpush.bf16.msrb.mxu2 %v12219_v12  ;;  %v12242_v12 = vld [vmem:[%s15557_s1 + $0x1248] sm:$0xff] }
 0x239   :  { %7735 = vmatpush.bf16.msrb.mxu3 %v12227_v39  ;;  %v12250_v39 = vld [vmem:[%s15557_s1 + $0x1288] sm:$0xff] }
 0x23a   :  { %7694 = vmatpush.bf16.msrb.mxu0 %v12202_v58 }
 0x23b   :  { %7708 = vmatpush.bf16.msrb.mxu1 %v12210_v6 }
 0x23c   :  { %7722 = vmatpush.bf16.msrb.mxu2 %v12218_v54 }
 0x23d   :  { %7736 = vmatpush.bf16.msrb.mxu3 %v12226_v43  ;;  %v12233_v43 = vld [vmem:[%s15557_s1 + $0x1200] sm:$0xff] }
 0x23e   :  { %7695 = vmatpush.bf16.msrb.mxu0 %v12201_v61  ;;  %v7473_v33 = vpop.f32.mrf.mxu0 }
 0x23f   :  { %7709 = vmatpush.bf16.msrb.mxu1 %v12209_v40  ;;  %v7474_v37 = vadd.f32 %v7473_v33, %v14746_v5  ;;  %v7487_v41 = vpop.f32.mrf.mxu1  ;;  %v12251_v5 = vld [vmem:[%s15557_s1 + $0x1290] sm:$0xff]  ;;  %v12272_v40 = vld [vmem:[%s15557_s1 + $0x1338] sm:$0xff] }
 0x240   :  { %7723 = vmatpush.bf16.msrb.mxu2 %v12217_v15  ;;  %v12280_v15 = vld [vmem:[%s15557_s1 + $0x1378] sm:$0xff] }
 0x241   :  { %7737 = vmatpush.bf16.msrb.mxu3 %v12225_v11  ;;  %7696 = vmatmul.bf16.vlgmr.msrb.gmra.mxu0 %v8380_v55  ;;  %v7488_v42 = vadd.f32 %v7487_v41, %v7474_v37  ;;  %v8395_v11 = vld [vmem:[%s15556_s0 + $0x120] sm:$0xf]  ;;  %v12271_v55 = vld [vmem:[%s15557_s1 + $0x1330] sm:$0xff]  ;;  %v12268_v41 = vld [vmem:[%s15557_s1 + $0x1318] sm:$0xff] }
 0x242   :  { %7744 = vmatpush.bf16.msra.mxu0 %v12240_v4  ;;  %7710 = vmatmul.bf16.vlgmr.msrb.gmra.mxu1 %v8384_v16  ;;  %v8403_v4 = vld [vmem:[%s15556_s0 + $0x128] sm:$0xf]  ;;  %v12287_v16 = vld [vmem:[%s15557_s1 + $0x13b0] sm:$0xff]  ;;  %v12285_v37 = vld [vmem:[%s15557_s1 + $0x13a0] sm:$0xff] }
 0x243   :  { %7758 = vmatpush.bf16.msra.mxu1 %v12248_v24  ;;  %7724 = vmatmul.bf16.vlgmr.msrb.gmra.mxu2 %v8388_v53  ;;  %v11646_v24 = vld [vmem:[%s15556_s0 + $0x2a4] sm:$0xf0]  ;;  %v12279_v53 = vld [vmem:[%s15557_s1 + $0x1370] sm:$0xff] }
 0x244   :  { %7772 = vmatpush.bf16.msra.mxu2 %v12256_v8  ;;  %7738 = vmatmul.bf16.vlgmr.msrb.gmra.mxu3 %v8392_v27  ;;  %v8404_v14 = vor.u32 %v11646_v24, %v8403_v4  ;;  %v8400_v8 = vor.u32 %v11597_v7, %v8397_v44  ;;  %v12295_v27 = vld [vmem:[%s15557_s1 + $0x13f0] sm:$0xff]  ;;  %v11600_v4 = vld [vmem:[%s15556_s0 + $0x13c] sm:$0xf] }
 0x245   :  { %7786 = vmatpush.bf16.msra.mxu3 %v12264_v50  ;;  %v8408_v50 = vor.u32 %v11598_v47, %v8405_v10  ;;  %v8421_v24 = vld [vmem:[%s15556_s0 + $0x2b8] sm:$0xf0] }
 0x246   :  { %7745 = vmatpush.bf16.msra.mxu0 %v12239_v31  ;;  %v7501_v1 = vpop.f32.mrf.mxu2  ;;  %v7475_v23 = vpop.f32.mrf.mxu0  ;;  %v12270_v31 = vld [vmem:[%s15557_s1 + $0x1328] sm:$0xff]  ;;  %v12320_v7 = vld [vmem:[%s15557_s1 + $0x14b8] sm:$0xff] }
 0x247   :  { %7759 = vmatpush.bf16.msra.mxu1 %v12247_v25  ;;  %v7502_v46 = vadd.f32 %v7501_v1, %v7488_v42  ;;  %v7515_v48 = vpop.f32.mrf.mxu3  ;;  %v7476_v3 = vadd.f32 %v7475_v23, %v14784_v26  ;;  %v7489_v51 = vpop.f32.mrf.mxu1  ;;  %v11645_v26 = vld [vmem:[%s15556_s0 + $0x29c] sm:$0xf0]  ;;  %v12278_v25 = vld [vmem:[%s15557_s1 + $0x1368] sm:$0xff]  ;;  %v12292_v42 = vld [vmem:[%s15557_s1 + $0x13d8] sm:$0xff] }
 0x248   :  { %7773 = vmatpush.bf16.msra.mxu2 %v12255_v18  ;;  %v8396_v0 = vor.u32 %v11645_v26, %v8395_v11  ;;  %v12286_v18 = vld [vmem:[%s15557_s1 + $0x13a8] sm:$0xff]  ;;  %v12275_v23 = vld [vmem:[%s15557_s1 + $0x1350] sm:$0xff]  ;;  %v12328_v44 = vld [vmem:[%s15557_s1 + $0x14f8] sm:$0xff] }
 0x249   :  { %7787 = vmatpush.bf16.msra.mxu3 %v12263_v32  ;;  %v14872_v19 = vadd.f32 %v7515_v48, %v7502_v46  ;;  %v7490_v52 = vadd.f32 %v7489_v51, %v7476_v3  ;;  %v12294_v32 = vld [vmem:[%s15557_s1 + $0x13e8] sm:$0xff]  ;;  %v12267_v48 = vld [vmem:[%s15557_s1 + $0x1310] sm:$0xff] }
 0x24a   :  { %7746 = vmatpush.bf16.msra.mxu0 %v12238_v56  ;;  %v12266_v51 = vld [vmem:[%s15557_s1 + $0x1308] sm:$0xff]  ;;  %v11599_v11 = vld [vmem:[%s15556_s0 + $0x134] sm:$0xf] }
 0x24b   :  { %7760 = vmatpush.bf16.msra.mxu1 %v12246_v20  ;;  %v8413_v26 = vld [vmem:[%s15556_s0 + $0x2b0] sm:$0xf0] }
 0x24c   :  { %7774 = vmatpush.bf16.msra.mxu2 %v12254_v34  ;;  %v12269_v34 = vld [vmem:[%s15557_s1 + $0x1320] sm:$0xff] }
 0x24d   :  { %7788 = vmatpush.bf16.msra.mxu3 %v12262_v57  ;;  %v12277_v57 = vld [vmem:[%s15557_s1 + $0x1360] sm:$0xff] }
 0x24e   :  { %7747 = vmatpush.bf16.msra.mxu0 %v12237_v22  ;;  %v7503_v58 = vpop.f32.mrf.mxu2  ;;  %v12293_v22 = vld [vmem:[%s15557_s1 + $0x13e0] sm:$0xff] }
 0x24f   :  { %7761 = vmatpush.bf16.msra.mxu1 %v12245_v35  ;;  %v7504_v6 = vadd.f32 %v7503_v58, %v7490_v52  ;;  %v7517_v54 = vpop.f32.mrf.mxu3  ;;  %v12290_v52 = vld [vmem:[%s15557_s1 + $0x13c8] sm:$0xff]  ;;  %v12273_v58 = vld [vmem:[%s15557_s1 + $0x1340] sm:$0xff] }
 0x250   :  { %7775 = vmatpush.bf16.msra.mxu2 %v12253_v63  ;;  %v12276_v63 = vld [vmem:[%s15557_s1 + $0x1358] sm:$0xff] }
 0x251   :  { %7789 = vmatpush.bf16.msra.mxu3 %v12261_v62  ;;  %v14910_v61 = vadd.f32 %v7517_v54, %v7504_v6  ;;  %v12284_v62 = vld [vmem:[%s15557_s1 + $0x1398] sm:$0xff]  ;;  %v12281_v6 = vld [vmem:[%s15557_s1 + $0x1380] sm:$0xff] }
 0x252   :  { %7748 = vmatpush.bf16.msra.mxu0 %v12236_v30  ;;  %v12289_v54 = vld [vmem:[%s15557_s1 + $0x13c0] sm:$0xff] }
 0x253   :  { %7762 = vmatpush.bf16.msra.mxu1 %v12244_v9 }
 0x254   :  { %7776 = vmatpush.bf16.msra.mxu2 %v12252_v38 }
 0x255   :  { %7790 = vmatpush.bf16.msra.mxu3 %v12260_v45 }
 0x256   :  { %7749 = vmatpush.bf16.msra.mxu0 %v12235_v49  ;;  %v12291_v49 = vld [vmem:[%s15557_s1 + $0x13d0] sm:$0xff] }
 0x257   :  { %7763 = vmatpush.bf16.msra.mxu1 %v12243_v36 }
 0x258   :  { %7777 = vmatpush.bf16.msra.mxu2 %v12251_v5  ;;  %v12274_v5 = vld [vmem:[%s15557_s1 + $0x1348] sm:$0xff] }
 0x259   :  { %7791 = vmatpush.bf16.msra.mxu3 %v12259_v17  ;;  %v12282_v17 = vld [vmem:[%s15557_s1 + $0x1388] sm:$0xff] }
 0x25a   :  { %7750 = vmatpush.bf16.msra.mxu0 %v12234_v28 }
 0x25b   :  { %7764 = vmatpush.bf16.msra.mxu1 %v12242_v12 }
 0x25c   :  { %7778 = vmatpush.bf16.msra.mxu2 %v12250_v39 }
 0x25d   :  { %7792 = vmatpush.bf16.msra.mxu3 %v12258_v2  ;;  %v12265_v2 = vld [vmem:[%s15557_s1 + $0x1300] sm:$0xff] }
 0x25e   :  { %7751 = vmatpush.bf16.msra.mxu0 %v12233_v43  ;;  %v7529_v56 = vpop.f32.mrf.mxu0 }
 0x25f   :  { %7765 = vmatpush.bf16.msra.mxu1 %v12241_v59  ;;  %v7530_v20 = vadd.f32 %v7529_v56, %v14872_v19  ;;  %v7543_v33 = vpop.f32.mrf.mxu1  ;;  %v12283_v19 = vld [vmem:[%s15557_s1 + $0x1390] sm:$0xff]  ;;  %v12304_v59 = vld [vmem:[%s15557_s1 + $0x1438] sm:$0xff] }
 0x260   :  { %7779 = vmatpush.bf16.msra.mxu2 %v12249_v21  ;;  %v12312_v21 = vld [vmem:[%s15557_s1 + $0x1478] sm:$0xff] }
 0x261   :  { %7793 = vmatpush.bf16.msra.mxu3 %v12257_v60  ;;  %7752 = vmatmul.bf16.vlgmr.msra.gmra.mxu0 %v8396_v0  ;;  %v7544_v35 = vadd.f32 %v7543_v33, %v7530_v20  ;;  %v8411_v60 = vld [vmem:[%s15556_s0 + $0x130] sm:$0xf]  ;;  %v12317_v20 = vld [vmem:[%s15557_s1 + $0x14a0] sm:$0xff]  ;;  %v12300_v33 = vld [vmem:[%s15557_s1 + $0x1418] sm:$0xff] }
 0x262   :  { %7800 = vmatpush.bf16.msrb.mxu0 %v12272_v40  ;;  %7766 = vmatmul.bf16.vlgmr.msra.gmra.mxu1 %v8400_v8  ;;  %v8419_v40 = vld [vmem:[%s15556_s0 + $0x138] sm:$0xf]  ;;  %v12303_v0 = vld [vmem:[%s15557_s1 + $0x1430] sm:$0xff] }
 0x263   :  { %7814 = vmatpush.bf16.msrb.mxu1 %v12280_v15  ;;  %7780 = vmatmul.bf16.vlgmr.msra.gmra.mxu2 %v8404_v14  ;;  %v11648_v15 = vld [vmem:[%s15556_s0 + $0x2b4] sm:$0xf0]  ;;  %v12311_v14 = vld [vmem:[%s15557_s1 + $0x1470] sm:$0xff] }
 0x264   :  { %7828 = vmatpush.bf16.msrb.mxu2 %v12288_v13  ;;  %7794 = vmatmul.bf16.vlgmr.msra.gmra.mxu3 %v8408_v50  ;;  %v8420_v10 = vor.u32 %v11648_v15, %v8419_v40  ;;  %v8416_v13 = vor.u32 %v11599_v11, %v8413_v26  ;;  %v12319_v8 = vld [vmem:[%s15557_s1 + $0x14b0] sm:$0xff]  ;;  %v11602_v40 = vld [vmem:[%s15556_s0 + $0x14c] sm:$0xf]  ;;  %v12352_v11 = vld [vmem:[%s15557_s1 + $0x15b8] sm:$0xff] }
 0x265   :  { %7842 = vmatpush.bf16.msrb.mxu3 %v12296_v29  ;;  %v8424_v29 = vor.u32 %v11600_v4, %v8421_v24  ;;  %v12327_v50 = vld [vmem:[%s15557_s1 + $0x14f0] sm:$0xff]  ;;  %v8437_v15 = vld [vmem:[%s15556_s0 + $0x2c8] sm:$0xf0]  ;;  %v12360_v26 = vld [vmem:[%s15557_s1 + $0x15f8] sm:$0xff] }
 0x266   :  { %7801 = vmatpush.bf16.msrb.mxu0 %v12271_v55  ;;  %v7557_v30 = vpop.f32.mrf.mxu2  ;;  %v7531_v45 = vpop.f32.mrf.mxu0  ;;  %v12302_v55 = vld [vmem:[%s15557_s1 + $0x1428] sm:$0xff] }
 0x267   :  { %7815 = vmatpush.bf16.msrb.mxu1 %v12279_v53  ;;  %v7558_v9 = vadd.f32 %v7557_v30, %v7544_v35  ;;  %v7571_v38 = vpop.f32.mrf.mxu3  ;;  %v7532_v1 = vadd.f32 %v7531_v45, %v14910_v61  ;;  %v7545_v3 = vpop.f32.mrf.mxu1  ;;  %v11647_v61 = vld [vmem:[%s15556_s0 + $0x2ac] sm:$0xf0]  ;;  %v12310_v53 = vld [vmem:[%s15557_s1 + $0x1468] sm:$0xff]  ;;  %v12324_v35 = vld [vmem:[%s15557_s1 + $0x14d8] sm:$0xff] }
 0x268   :  { %7829 = vmatpush.bf16.msrb.mxu2 %v12287_v16  ;;  %v8412_v47 = vor.u32 %v11647_v61, %v8411_v60  ;;  %v12318_v16 = vld [vmem:[%s15557_s1 + $0x14a8] sm:$0xff]  ;;  %v12307_v45 = vld [vmem:[%s15557_s1 + $0x1450] sm:$0xff]  ;;  %v11601_v60 = vld [vmem:[%s15556_s0 + $0x144] sm:$0xf] }
 0x269   :  { %7843 = vmatpush.bf16.msrb.mxu3 %v12295_v27  ;;  %v14998_v46 = vadd.f32 %v7571_v38, %v7558_v9  ;;  %v7546_v36 = vadd.f32 %v7545_v3, %v7532_v1  ;;  %v12326_v27 = vld [vmem:[%s15557_s1 + $0x14e8] sm:$0xff]  ;;  %v12299_v38 = vld [vmem:[%s15557_s1 + $0x1410] sm:$0xff]  ;;  %v8429_v61 = vld [vmem:[%s15556_s0 + $0x2c0] sm:$0xf0] }
 0x26a   :  { %7802 = vmatpush.bf16.msrb.mxu0 %v12270_v31  ;;  %v12298_v3 = vld [vmem:[%s15557_s1 + $0x1408] sm:$0xff] }
 0x26b   :  { %7816 = vmatpush.bf16.msrb.mxu1 %v12278_v25 }
 0x26c   :  { %7830 = vmatpush.bf16.msrb.mxu2 %v12286_v18  ;;  %v12301_v18 = vld [vmem:[%s15557_s1 + $0x1420] sm:$0xff] }
 0x26d   :  { %7844 = vmatpush.bf16.msrb.mxu3 %v12294_v32  ;;  %v12309_v32 = vld [vmem:[%s15557_s1 + $0x1460] sm:$0xff] }
 0x26e   :  { %7803 = vmatpush.bf16.msrb.mxu0 %v12269_v34  ;;  %v7559_v28 = vpop.f32.mrf.mxu2  ;;  %v12325_v34 = vld [vmem:[%s15557_s1 + $0x14e0] sm:$0xff] }
 0x26f   :  { %7817 = vmatpush.bf16.msrb.mxu1 %v12277_v57  ;;  %v7560_v12 = vadd.f32 %v7559_v28, %v7546_v36  ;;  %v7573_v39 = vpop.f32.mrf.mxu3  ;;  %v12322_v36 = vld [vmem:[%s15557_s1 + $0x14c8] sm:$0xff]  ;;  %v12305_v28 = vld [vmem:[%s15557_s1 + $0x1440] sm:$0xff] }
 0x270   :  { %7831 = vmatpush.bf16.msrb.mxu2 %v12285_v37  ;;  %v12308_v37 = vld [vmem:[%s15557_s1 + $0x1458] sm:$0xff] }
 0x271   :  { %7845 = vmatpush.bf16.msrb.mxu3 %v12293_v22  ;;  %v15036_v43 = vadd.f32 %v7573_v39, %v7560_v12  ;;  %v12316_v22 = vld [vmem:[%s15557_s1 + $0x1498] sm:$0xff]  ;;  %v12313_v12 = vld [vmem:[%s15557_s1 + $0x1480] sm:$0xff] }
 0x272   :  { %7804 = vmatpush.bf16.msrb.mxu0 %v12268_v41  ;;  %v12321_v39 = vld [vmem:[%s15557_s1 + $0x14c0] sm:$0xff] }
 0x273   :  { %7818 = vmatpush.bf16.msrb.mxu1 %v12276_v63 }
 0x274   :  { %7832 = vmatpush.bf16.msrb.mxu2 %v12284_v62 }
 0x275   :  { %7846 = vmatpush.bf16.msrb.mxu3 %v12292_v42 }
 0x276   :  { %7805 = vmatpush.bf16.msrb.mxu0 %v12267_v48  ;;  %v12323_v48 = vld [vmem:[%s15557_s1 + $0x14d0] sm:$0xff] }
 0x277   :  { %7819 = vmatpush.bf16.msrb.mxu1 %v12275_v23 }
 0x278   :  { %7833 = vmatpush.bf16.msrb.mxu2 %v12283_v19  ;;  %v12306_v19 = vld [vmem:[%s15557_s1 + $0x1448] sm:$0xff] }
 0x279   :  { %7847 = vmatpush.bf16.msrb.mxu3 %v12291_v49  ;;  %v12314_v49 = vld [vmem:[%s15557_s1 + $0x1488] sm:$0xff] }
 0x27a   :  { %7806 = vmatpush.bf16.msrb.mxu0 %v12266_v51 }
 0x27b   :  { %7820 = vmatpush.bf16.msrb.mxu1 %v12274_v5 }
 0x27c   :  { %7834 = vmatpush.bf16.msrb.mxu2 %v12282_v17 }
 0x27d   :  { %7848 = vmatpush.bf16.msrb.mxu3 %v12290_v52  ;;  %v12297_v52 = vld [vmem:[%s15557_s1 + $0x1400] sm:$0xff] }
 0x27e   :  { %7807 = vmatpush.bf16.msrb.mxu0 %v12265_v2  ;;  %v7585_v31 = vpop.f32.mrf.mxu0 }
 0x27f   :  { %7821 = vmatpush.bf16.msrb.mxu1 %v12273_v58  ;;  %v7586_v25 = vadd.f32 %v7585_v31, %v14998_v46  ;;  %v7599_v56 = vpop.f32.mrf.mxu1  ;;  %v12315_v46 = vld [vmem:[%s15557_s1 + $0x1490] sm:$0xff]  ;;  %v12336_v58 = vld [vmem:[%s15557_s1 + $0x1538] sm:$0xff] }
 0x280   :  { %7835 = vmatpush.bf16.msrb.mxu2 %v12281_v6  ;;  %v12344_v6 = vld [vmem:[%s15557_s1 + $0x1578] sm:$0xff] }
 0x281   :  { %7849 = vmatpush.bf16.msrb.mxu3 %v12289_v54  ;;  %7808 = vmatmul.bf16.vlgmr.msrb.gmra.mxu0 %v8412_v47  ;;  %v7600_v57 = vadd.f32 %v7599_v56, %v7586_v25  ;;  %v8427_v54 = vld [vmem:[%s15556_s0 + $0x140] sm:$0xf]  ;;  %v12335_v47 = vld [vmem:[%s15557_s1 + $0x1530] sm:$0xff]  ;;  %v12332_v31 = vld [vmem:[%s15557_s1 + $0x1518] sm:$0xff] }
 0x282   :  { %7856 = vmatpush.bf16.msra.mxu0 %v12304_v59  ;;  %7822 = vmatmul.bf16.vlgmr.msrb.gmra.mxu1 %v8416_v13  ;;  %v8435_v59 = vld [vmem:[%s15556_s0 + $0x148] sm:$0xf]  ;;  %v12351_v13 = vld [vmem:[%s15557_s1 + $0x15b0] sm:$0xff]  ;;  %v12340_v25 = vld [vmem:[%s15557_s1 + $0x1558] sm:$0xff] }
 0x283   :  { %7870 = vmatpush.bf16.msra.mxu1 %v12312_v21  ;;  %7836 = vmatmul.bf16.vlgmr.msrb.gmra.mxu2 %v8420_v10  ;;  %v11650_v21 = vld [vmem:[%s15556_s0 + $0x2c4] sm:$0xf0]  ;;  %v12343_v10 = vld [vmem:[%s15557_s1 + $0x1570] sm:$0xff] }
 0x284   :  { %7884 = vmatpush.bf16.msra.mxu2 %v12320_v7  ;;  %7850 = vmatmul.bf16.vlgmr.msrb.gmra.mxu3 %v8424_v29  ;;  %v8436_v24 = vor.u32 %v11650_v21, %v8435_v59  ;;  %v8432_v7 = vor.u32 %v11601_v60, %v8429_v61  ;;  %v12359_v29 = vld [vmem:[%s15557_s1 + $0x15f0] sm:$0xff]  ;;  %v12382_v59 = vld [vmem:[%s15557_s1 + $0x16a8] sm:$0xff]  ;;  %v12365_v60 = vld [vmem:[%s15557_s1 + $0x1620] sm:$0xff] }
 0x285   :  { %7898 = vmatpush.bf16.msra.mxu3 %v12328_v44  ;;  %v8440_v44 = vor.u32 %v11602_v40, %v8437_v15  ;;  %v12331_v56 = vld [vmem:[%s15557_s1 + $0x1510] sm:$0xff]  ;;  %v12390_v21 = vld [vmem:[%s15557_s1 + $0x16e8] sm:$0xff]  ;;  %v12373_v61 = vld [vmem:[%s15557_s1 + $0x1660] sm:$0xff] }
 0x286   :  { %7857 = vmatpush.bf16.msra.mxu0 %v12303_v0  ;;  %v7613_v41 = vpop.f32.mrf.mxu2  ;;  %v7587_v42 = vpop.f32.mrf.mxu0  ;;  %v12334_v0 = vld [vmem:[%s15557_s1 + $0x1528] sm:$0xff]  ;;  %v12381_v40 = vld [vmem:[%s15557_s1 + $0x16a0] sm:$0xff] }
 0x287   :  { %7871 = vmatpush.bf16.msra.mxu1 %v12311_v14  ;;  %v7614_v63 = vadd.f32 %v7613_v41, %v7600_v57  ;;  %v7627_v62 = vpop.f32.mrf.mxu3  ;;  %v7588_v30 = vadd.f32 %v7587_v42, %v15036_v43  ;;  %v7601_v1 = vpop.f32.mrf.mxu1  ;;  %v11649_v43 = vld [vmem:[%s15556_s0 + $0x2bc] sm:$0xf0]  ;;  %v12342_v14 = vld [vmem:[%s15557_s1 + $0x1568] sm:$0xff]  ;;  %v12355_v57 = vld [vmem:[%s15557_s1 + $0x15d0] sm:$0xff] }
 0x288   :  { %7885 = vmatpush.bf16.msra.mxu2 %v12319_v8  ;;  %v8428_v4 = vor.u32 %v11649_v43, %v8427_v54  ;;  %v12350_v8 = vld [vmem:[%s15557_s1 + $0x15a8] sm:$0xff]  ;;  %v12329_v41 = vld [vmem:[%s15557_s1 + $0x1500] sm:$0xff] }
 0x289   :  { %7899 = vmatpush.bf16.msra.mxu3 %v12327_v50  ;;  %v15124_v9 = vadd.f32 %v7627_v62, %v7614_v63  ;;  %v7602_v23 = vadd.f32 %v7601_v1, %v7588_v30  ;;  %v12358_v50 = vld [vmem:[%s15557_s1 + $0x15e8] sm:$0xff]  ;;  %v12337_v63 = vld [vmem:[%s15557_s1 + $0x1540] sm:$0xff]  ;;  %v12368_v30 = vld [vmem:[%s15557_s1 + $0x1638] sm:$0xff] }
 0x28a   :  { %7858 = vmatpush.bf16.msra.mxu0 %v12302_v55  ;;  %v12333_v55 = vld [vmem:[%s15557_s1 + $0x1520] sm:$0xff]  ;;  %v11651_v1 = vld [vmem:[%s15556_s0 + $0x2cc] sm:$0xf0]  ;;  %v12366_v54 = vld [vmem:[%s15557_s1 + $0x1628] sm:$0xff] }
 0x28b   :  { %7872 = vmatpush.bf16.msra.mxu1 %v12310_v53  ;;  %v12341_v53 = vld [vmem:[%s15557_s1 + $0x1560] sm:$0xff]  ;;  %v12374_v43 = vld [vmem:[%s15557_s1 + $0x1668] sm:$0xff] }
 0x28c   :  { %7886 = vmatpush.bf16.msra.mxu2 %v12318_v16  ;;  %v12349_v16 = vld [vmem:[%s15557_s1 + $0x15a0] sm:$0xff] }
 0x28d   :  { %7900 = vmatpush.bf16.msra.mxu3 %v12326_v27  ;;  %v12357_v27 = vld [vmem:[%s15557_s1 + $0x15e0] sm:$0xff] }
 0x28e   :  { %7859 = vmatpush.bf16.msra.mxu0 %v12301_v18  ;;  %v7615_v51 = vpop.f32.mrf.mxu2  ;;  %v12348_v18 = vld [vmem:[%s15557_s1 + $0x1598] sm:$0xff]  ;;  %v12345_v62 = vld [vmem:[%s15557_s1 + $0x1580] sm:$0xff] }
 0x28f   :  { %7873 = vmatpush.bf16.msra.mxu1 %v12309_v32  ;;  %v7616_v5 = vadd.f32 %v7615_v51, %v7602_v23  ;;  %v7629_v17 = vpop.f32.mrf.mxu3  ;;  %v12356_v32 = vld [vmem:[%s15557_s1 + $0x15d8] sm:$0xff]  ;;  %v12353_v42 = vld [vmem:[%s15557_s1 + $0x15c0] sm:$0xff]  ;;  %v11603_v23 = vld [vmem:[%s15556_s0 + $0x154] sm:$0xf] }
 0x290   :  { %7887 = vmatpush.bf16.msra.mxu2 %v12317_v20  ;;  %v12339_v20 = vld [vmem:[%s15557_s1 + $0x1550] sm:$0xff]  ;;  %v12392_v51 = vld [vmem:[%s15557_s1 + $0x16f8] sm:$0xff]  ;;  %v12389_v15 = vld [vmem:[%s15557_s1 + $0x16e0] sm:$0xff] }
 0x291   :  { %7901 = vmatpush.bf16.msra.mxu3 %v12325_v34  ;;  %v15162_v2 = vadd.f32 %v7629_v17, %v7616_v5  ;;  %v12347_v34 = vld [vmem:[%s15557_s1 + $0x1590] sm:$0xff] }
 0x292   :  { %7860 = vmatpush.bf16.msra.mxu0 %v12300_v33  ;;  %v12330_v33 = vld [vmem:[%s15557_s1 + $0x1508] sm:$0xff] }
 0x293   :  { %7874 = vmatpush.bf16.msra.mxu1 %v12308_v37  ;;  %v12338_v37 = vld [vmem:[%s15557_s1 + $0x1548] sm:$0xff] }
 0x294   :  { %7888 = vmatpush.bf16.msra.mxu2 %v12316_v22  ;;  %v12346_v22 = vld [vmem:[%s15557_s1 + $0x1588] sm:$0xff] }
 0x295   :  { %7902 = vmatpush.bf16.msra.mxu3 %v12324_v35  ;;  %v12354_v35 = vld [vmem:[%s15557_s1 + $0x15c8] sm:$0xff] }
 0x296   :  { %7861 = vmatpush.bf16.msra.mxu0 %v12299_v38  ;;  %v12376_v38 = vld [vmem:[%s15557_s1 + $0x1678] sm:$0xff] }
 0x297   :  { %7875 = vmatpush.bf16.msra.mxu1 %v12307_v45  ;;  %v8443_v45 = vld [vmem:[%s15556_s0 + $0x150] sm:$0xf] }
 0x298   :  { %7889 = vmatpush.bf16.msra.mxu2 %v12315_v46  ;;  %v8451_v46 = vld [vmem:[%s15556_s0 + $0x158] sm:$0xf]  ;;  %v8444_v5 = vor.u32 %v11651_v1, %v8443_v45  ;;  %v12398_v45 = vld [vmem:[%s15557_s1 + $0x1728] sm:$0xff] }
 0x299   :  { %7903 = vmatpush.bf16.msra.mxu3 %v12323_v48  ;;  %v11652_v48 = vld [vmem:[%s15556_s0 + $0x2d4] sm:$0xf0]  ;;  %v12406_v1 = vld [vmem:[%s15557_s1 + $0x1768] sm:$0xff] }
 0x29a   :  { %7862 = vmatpush.bf16.msra.mxu0 %v12298_v3  ;;  %v8445_v3 = vld [vmem:[%s15556_s0 + $0x2d0] sm:$0xf0]  ;;  %v8452_v17 = vor.u32 %v11652_v48, %v8451_v46  ;;  %v12414_v46 = vld [vmem:[%s15557_s1 + $0x17a8] sm:$0xff] }
 0x29b   :  { %7876 = vmatpush.bf16.msra.mxu1 %v12306_v19  ;;  %v11604_v19 = vld [vmem:[%s15556_s0 + $0x15c] sm:$0xf]  ;;  %v12422_v48 = vld [vmem:[%s15557_s1 + $0x17e8] sm:$0xff] }
 0x29c   :  { %7890 = vmatpush.bf16.msra.mxu2 %v12314_v49  ;;  %v8453_v49 = vld [vmem:[%s15556_s0 + $0x2d8] sm:$0xf0] }
 0x29d   :  { %7904 = vmatpush.bf16.msra.mxu3 %v12322_v36  ;;  %v12384_v36 = vld [vmem:[%s15557_s1 + $0x16b8] sm:$0xff] }
 0x29e   :  { %7863 = vmatpush.bf16.msra.mxu0 %v12297_v52  ;;  %v8448_v52 = vor.u32 %v11603_v23, %v8445_v3  ;;  %v12397_v23 = vld [vmem:[%s15557_s1 + $0x1720] sm:$0xff] }
 0x29f   :  { %7877 = vmatpush.bf16.msra.mxu1 %v12305_v28  ;;  %v8456_v28 = vor.u32 %v11604_v19, %v8453_v49  ;;  %v12405_v3 = vld [vmem:[%s15557_s1 + $0x1760] sm:$0xff] }
 0x2a0   :  { %7891 = vmatpush.bf16.msra.mxu2 %v12313_v12  ;;  %v12367_v12 = vld [vmem:[%s15557_s1 + $0x1630] sm:$0xff]  ;;  %v12413_v19 = vld [vmem:[%s15557_s1 + $0x17a0] sm:$0xff] }
 0x2a1   :  { %7905 = vmatpush.bf16.msra.mxu3 %v12321_v39  ;;  %7864 = vmatmul.bf16.vlgmr.msra.gmra.mxu0 %v8428_v4  ;;  %v12375_v39 = vld [vmem:[%s15557_s1 + $0x1670] sm:$0xff]  ;;  %v12380_v4 = vld [vmem:[%s15557_s1 + $0x1698] sm:$0xff]  ;;  %v12421_v49 = vld [vmem:[%s15557_s1 + $0x17e0] sm:$0xff] }
 0x2a2   :  { %7912 = vmatpush.bf16.msrb.mxu0 %v12336_v58  ;;  %7878 = vmatmul.bf16.vlgmr.msra.gmra.mxu1 %v8432_v7  ;;  %v12383_v58 = vld [vmem:[%s15557_s1 + $0x16b0] sm:$0xff] }
 0x2a3   :  { %7926 = vmatpush.bf16.msrb.mxu1 %v12344_v6  ;;  %7892 = vmatmul.bf16.vlgmr.msra.gmra.mxu2 %v8436_v24  ;;  %v12391_v6 = vld [vmem:[%s15557_s1 + $0x16f0] sm:$0xff]  ;;  %v12388_v24 = vld [vmem:[%s15557_s1 + $0x16d8] sm:$0xff] }
 0x2a4   :  { %7940 = vmatpush.bf16.msrb.mxu2 %v12352_v11  ;;  %7906 = vmatmul.bf16.vlgmr.msra.gmra.mxu3 %v8440_v44  ;;  %v12364_v11 = vld [vmem:[%s15557_s1 + $0x1618] sm:$0xff]  ;;  %v12363_v7 = vld [vmem:[%s15557_s1 + $0x1610] sm:$0xff] }
 0x2a5   :  { %7954 = vmatpush.bf16.msrb.mxu3 %v12360_v26  ;;  %v12372_v26 = vld [vmem:[%s15557_s1 + $0x1658] sm:$0xff]  ;;  %v12371_v44 = vld [vmem:[%s15557_s1 + $0x1650] sm:$0xff] }
 0x2a6   :  { %7913 = vmatpush.bf16.msrb.mxu0 %v12335_v47  ;;  %v12379_v47 = vld [vmem:[%s15557_s1 + $0x1690] sm:$0xff] }
 0x2a7   :  { %7927 = vmatpush.bf16.msrb.mxu1 %v12343_v10  ;;  %v12387_v10 = vld [vmem:[%s15557_s1 + $0x16d0] sm:$0xff] }
 0x2a8   :  { %7941 = vmatpush.bf16.msrb.mxu2 %v12351_v13  ;;  %v12362_v13 = vld [vmem:[%s15557_s1 + $0x1608] sm:$0xff] }
 0x2a9   :  { %7955 = vmatpush.bf16.msrb.mxu3 %v12359_v29  ;;  %v12370_v29 = vld [vmem:[%s15557_s1 + $0x1648] sm:$0xff] }
 0x2aa   :  { %7914 = vmatpush.bf16.msrb.mxu0 %v12334_v0  ;;  %v12378_v0 = vld [vmem:[%s15557_s1 + $0x1688] sm:$0xff] }
 0x2ab   :  { %7928 = vmatpush.bf16.msrb.mxu1 %v12342_v14  ;;  %v12386_v14 = vld [vmem:[%s15557_s1 + $0x16c8] sm:$0xff] }
 0x2ac   :  { %7942 = vmatpush.bf16.msrb.mxu2 %v12350_v8  ;;  %v12361_v8 = vld [vmem:[%s15557_s1 + $0x1600] sm:$0xff] }
 0x2ad   :  { %7956 = vmatpush.bf16.msrb.mxu3 %v12358_v50  ;;  %v12369_v50 = vld [vmem:[%s15557_s1 + $0x1640] sm:$0xff] }
 0x2ae   :  { %7915 = vmatpush.bf16.msrb.mxu0 %v12333_v55  ;;  %v12377_v55 = vld [vmem:[%s15557_s1 + $0x1680] sm:$0xff] }
 0x2af   :  { %7929 = vmatpush.bf16.msrb.mxu1 %v12341_v53  ;;  %v12385_v53 = vld [vmem:[%s15557_s1 + $0x16c0] sm:$0xff] }
 0x2b0   :  { %7943 = vmatpush.bf16.msrb.mxu2 %v12349_v16  ;;  %v12400_v16 = vld [vmem:[%s15557_s1 + $0x1738] sm:$0xff] }
 0x2b1   :  { %7957 = vmatpush.bf16.msrb.mxu3 %v12357_v27  ;;  %v12408_v27 = vld [vmem:[%s15557_s1 + $0x1778] sm:$0xff] }
 0x2b2   :  { %7916 = vmatpush.bf16.msrb.mxu0 %v12332_v31  ;;  %v8459_v31 = vld [vmem:[%s15556_s0 + $0x160] sm:$0xf] }
 0x2b3   :  { %7930 = vmatpush.bf16.msrb.mxu1 %v12340_v25  ;;  %v11653_v25 = vld [vmem:[%s15556_s0 + $0x2dc] sm:$0xf0] }
 0x2b4   :  { %7944 = vmatpush.bf16.msrb.mxu2 %v12348_v18  ;;  %v8467_v18 = vld [vmem:[%s15556_s0 + $0x168] sm:$0xf] }
 0x2b5   :  { %7958 = vmatpush.bf16.msrb.mxu3 %v12356_v32  ;;  %v11654_v32 = vld [vmem:[%s15556_s0 + $0x2e4] sm:$0xf0] }
 0x2b6   :  { %7917 = vmatpush.bf16.msrb.mxu0 %v12331_v56  ;;  %v11605_v56 = vld [vmem:[%s15556_s0 + $0x164] sm:$0xf] }
 0x2b7   :  { %7931 = vmatpush.bf16.msrb.mxu1 %v12339_v20  ;;  %v8461_v20 = vld [vmem:[%s15556_s0 + $0x2e0] sm:$0xf0] }
 0x2b8   :  { %7945 = vmatpush.bf16.msrb.mxu2 %v12347_v34  ;;  %v11606_v34 = vld [vmem:[%s15556_s0 + $0x16c] sm:$0xf] }
 0x2b9   :  { %7959 = vmatpush.bf16.msrb.mxu3 %v12355_v57  ;;  %v8469_v57 = vld [vmem:[%s15556_s0 + $0x2e8] sm:$0xf0] }
 0x2ba   :  { %7918 = vmatpush.bf16.msrb.mxu0 %v12330_v33  ;;  %v12416_v33 = vld [vmem:[%s15557_s1 + $0x17b8] sm:$0xff] }
 0x2bb   :  { %7932 = vmatpush.bf16.msrb.mxu1 %v12338_v37  ;;  %v12424_v37 = vld [vmem:[%s15557_s1 + $0x17f8] sm:$0xff] }
 0x2bc   :  { %7946 = vmatpush.bf16.msrb.mxu2 %v12346_v22  ;;  %v8460_v22 = vor.u32 %v11653_v25, %v8459_v31 }
 0x2bd   :  { %7960 = vmatpush.bf16.msrb.mxu3 %v12354_v35  ;;  %v8468_v35 = vor.u32 %v11654_v32, %v8467_v18 }
 0x2be   :  { %7919 = vmatpush.bf16.msrb.mxu0 %v12329_v41  ;;  %v8464_v41 = vor.u32 %v11605_v56, %v8461_v20 }
 0x2bf   :  { %7933 = vmatpush.bf16.msrb.mxu1 %v12337_v63  ;;  %v8472_v63 = vor.u32 %v11606_v34, %v8469_v57 }
 0x2c0   :  { %7947 = vmatpush.bf16.msrb.mxu2 %v12345_v62  ;;  %v12399_v62 = vld [vmem:[%s15557_s1 + $0x1730] sm:$0xff] }
 0x2c1   :  { %7961 = vmatpush.bf16.msrb.mxu3 %v12353_v42  ;;  %7920 = vmatmul.bf16.vlgmr.msrb.gmra.mxu0 %v8444_v5  ;;  %v12407_v42 = vld [vmem:[%s15557_s1 + $0x1770] sm:$0xff]  ;;  %v12412_v5 = vld [vmem:[%s15557_s1 + $0x1798] sm:$0xff] }
 0x2c2   :  { %7968 = vmatpush.bf16.msra.mxu0 %v12368_v30  ;;  %7934 = vmatmul.bf16.vlgmr.msrb.gmra.mxu1 %v8448_v52  ;;  %v12415_v30 = vld [vmem:[%s15557_s1 + $0x17b0] sm:$0xff] }
 0x2c3   :  { %7982 = vmatpush.bf16.msra.mxu1 %v12376_v38  ;;  %7948 = vmatmul.bf16.vlgmr.msrb.gmra.mxu2 %v8452_v17  ;;  %v12423_v38 = vld [vmem:[%s15557_s1 + $0x17f0] sm:$0xff]  ;;  %v12420_v17 = vld [vmem:[%s15557_s1 + $0x17d8] sm:$0xff] }
 0x2c4   :  { %7996 = vmatpush.bf16.msra.mxu2 %v12384_v36  ;;  %7962 = vmatmul.bf16.vlgmr.msrb.gmra.mxu3 %v8456_v28  ;;  %v12396_v36 = vld [vmem:[%s15557_s1 + $0x1718] sm:$0xff]  ;;  %v12395_v52 = vld [vmem:[%s15557_s1 + $0x1710] sm:$0xff] }
 0x2c5   :  { %8010 = vmatpush.bf16.msra.mxu3 %v12392_v51  ;;  %v12404_v51 = vld [vmem:[%s15557_s1 + $0x1758] sm:$0xff]  ;;  %v12403_v28 = vld [vmem:[%s15557_s1 + $0x1750] sm:$0xff] }
 0x2c6   :  { %7969 = vmatpush.bf16.msra.mxu0 %v12367_v12  ;;  %v12411_v12 = vld [vmem:[%s15557_s1 + $0x1790] sm:$0xff] }
 0x2c7   :  { %7983 = vmatpush.bf16.msra.mxu1 %v12375_v39  ;;  %v12419_v39 = vld [vmem:[%s15557_s1 + $0x17d0] sm:$0xff] }
 0x2c8   :  { %7997 = vmatpush.bf16.msra.mxu2 %v12383_v58  ;;  %v12394_v58 = vld [vmem:[%s15557_s1 + $0x1708] sm:$0xff] }
 0x2c9   :  { %8011 = vmatpush.bf16.msra.mxu3 %v12391_v6  ;;  %v12402_v6 = vld [vmem:[%s15557_s1 + $0x1748] sm:$0xff] }
 0x2ca   :  { %7970 = vmatpush.bf16.msra.mxu0 %v12366_v54  ;;  %v12410_v54 = vld [vmem:[%s15557_s1 + $0x1788] sm:$0xff] }
 0x2cb   :  { %7984 = vmatpush.bf16.msra.mxu1 %v12374_v43  ;;  %v12418_v43 = vld [vmem:[%s15557_s1 + $0x17c8] sm:$0xff] }
 0x2cc   :  { %7998 = vmatpush.bf16.msra.mxu2 %v12382_v59  ;;  %v12393_v59 = vld [vmem:[%s15557_s1 + $0x1700] sm:$0xff] }
 0x2cd   :  { %8012 = vmatpush.bf16.msra.mxu3 %v12390_v21  ;;  %v12401_v21 = vld [vmem:[%s15557_s1 + $0x1740] sm:$0xff] }
 0x2ce   :  { %7971 = vmatpush.bf16.msra.mxu0 %v12365_v60  ;;  %v12409_v60 = vld [vmem:[%s15557_s1 + $0x1780] sm:$0xff] }
 0x2cf   :  { %7985 = vmatpush.bf16.msra.mxu1 %v12373_v61  ;;  %v12417_v61 = vld [vmem:[%s15557_s1 + $0x17c0] sm:$0xff] }
 0x2d0   :  { %7999 = vmatpush.bf16.msra.mxu2 %v12381_v40  ;;  %v8475_v40 = vld [vmem:[%s15556_s0 + $0x170] sm:$0xf] }
 0x2d1   :  { %8013 = vmatpush.bf16.msra.mxu3 %v12389_v15  ;;  %v11655_v15 = vld [vmem:[%s15556_s0 + $0x2ec] sm:$0xf0] }
 0x2d2   :  { %7972 = vmatpush.bf16.msra.mxu0 %v12364_v11  ;;  %v11607_v11 = vld [vmem:[%s15556_s0 + $0x174] sm:$0xf] }
 0x2d3   :  { %7986 = vmatpush.bf16.msra.mxu1 %v12372_v26  ;;  %v8477_v26 = vld [vmem:[%s15556_s0 + $0x2f0] sm:$0xf0] }
 0x2d4   :  { %8000 = vmatpush.bf16.msra.mxu2 %v12380_v4  ;;  %v8483_v4 = vld [vmem:[%s15556_s0 + $0x178] sm:$0xf] }
 0x2d5   :  { %8014 = vmatpush.bf16.msra.mxu3 %v12388_v24  ;;  %v11656_v24 = vld [vmem:[%s15556_s0 + $0x2f4] sm:$0xf0] }
 0x2d6   :  { %7973 = vmatpush.bf16.msra.mxu0 %v12363_v7  ;;  %v11608_v7 = vld [vmem:[%s15556_s0 + $0x17c] sm:$0xf] }
 0x2d7   :  { %7987 = vmatpush.bf16.msra.mxu1 %v12371_v44  ;;  %v8485_v44 = vld [vmem:[%s15556_s0 + $0x2f8] sm:$0xf0] }
 0x2d8   :  { %8001 = vmatpush.bf16.msra.mxu2 %v12379_v47  ;;  %v8476_v47 = vor.u32 %v11655_v15, %v8475_v40 }
 0x2d9   :  { %8015 = vmatpush.bf16.msra.mxu3 %v12387_v10  ;;  %v8480_v10 = vor.u32 %v11607_v11, %v8477_v26 }
 0x2da   :  { %7974 = vmatpush.bf16.msra.mxu0 %v12362_v13  ;;  %v8484_v13 = vor.u32 %v11656_v24, %v8483_v4 }
 0x2db   :  { %7988 = vmatpush.bf16.msra.mxu1 %v12370_v29  ;;  %v8488_v29 = vor.u32 %v11608_v7, %v8485_v44 }
 0x2dc   :  { %8002 = vmatpush.bf16.msra.mxu2 %v12378_v0  ;;  %v7641_v0 = vpop.f32.mrf.mxu0 }
 0x2dd   :  { %8016 = vmatpush.bf16.msra.mxu3 %v12386_v14  ;;  %v7655_v14 = vpop.f32.mrf.mxu1 }
 0x2de   :  { %7975 = vmatpush.bf16.msra.mxu0 %v12361_v8  ;;  %v7669_v8 = vpop.f32.mrf.mxu2 }
 0x2df   :  { %7989 = vmatpush.bf16.msra.mxu1 %v12369_v50  ;;  %v7683_v50 = vpop.f32.mrf.mxu3 }
 0x2e0   :  { %8003 = vmatpush.bf16.msra.mxu2 %v12377_v55 }
 0x2e1   :  { %8017 = vmatpush.bf16.msra.mxu3 %v12385_v53  ;;  %7976 = vmatmul.bf16.vlgmr.msra.gmra.mxu0 %v8460_v22 }
 0x2e2   :  { %8024 = vmatpush.bf16.msrb.mxu0 %v12400_v16  ;;  %7990 = vmatmul.bf16.vlgmr.msra.gmra.mxu1 %v8464_v41  ;;  %v7642_v41 = vadd.f32 %v7641_v0, %v15124_v9 }
 0x2e3   :  { %8038 = vmatpush.bf16.msrb.mxu1 %v12408_v27  ;;  %8004 = vmatmul.bf16.vlgmr.msra.gmra.mxu2 %v8468_v35 }
 0x2e4   :  { %8052 = vmatpush.bf16.msrb.mxu2 %v12416_v33  ;;  %8018 = vmatmul.bf16.vlgmr.msra.gmra.mxu3 %v8472_v63  ;;  %v7643_v55 = vpop.f32.mrf.mxu0 }
 0x2e5   :  { %8066 = vmatpush.bf16.msrb.mxu3 %v12424_v37  ;;  %v7657_v53 = vpop.f32.mrf.mxu1 }
 0x2e6   :  { %8025 = vmatpush.bf16.msrb.mxu0 %v12399_v62  ;;  %v7671_v16 = vpop.f32.mrf.mxu2  ;;  %v7656_v62 = vadd.f32 %v7655_v14, %v7642_v41 }
 0x2e7   :  { %8039 = vmatpush.bf16.msrb.mxu1 %v12407_v42  ;;  %v7685_v27 = vpop.f32.mrf.mxu3 }
 0x2e8   :  { %8053 = vmatpush.bf16.msrb.mxu2 %v12415_v30  ;;  %v7670_v30 = vadd.f32 %v7669_v8, %v7656_v62 }
 0x2e9   :  { %8067 = vmatpush.bf16.msrb.mxu3 %v12423_v38  ;;  %v7644_v38 = vadd.f32 %v7643_v55, %v15162_v2 }
 0x2ea   :  { %8026 = vmatpush.bf16.msrb.mxu0 %v12398_v45 }
 0x2eb   :  { %8040 = vmatpush.bf16.msrb.mxu1 %v12406_v1 }
 0x2ec   :  { %8054 = vmatpush.bf16.msrb.mxu2 %v12414_v46  ;;  %v7697_v31 = vpop.f32.mrf.mxu0  ;;  %v7684_v46 = vadd.f32 %v7683_v50, %v7670_v30 }
 0x2ed   :  { %8068 = vmatpush.bf16.msrb.mxu3 %v12422_v48  ;;  %v7711_v25 = vpop.f32.mrf.mxu1 }
 0x2ee   :  { %8027 = vmatpush.bf16.msrb.mxu0 %v12397_v23  ;;  %v7725_v18 = vpop.f32.mrf.mxu2  ;;  %v7658_v23 = vadd.f32 %v7657_v53, %v7644_v38 }
 0x2ef   :  { %8041 = vmatpush.bf16.msrb.mxu1 %v12405_v3  ;;  %v7739_v32 = vpop.f32.mrf.mxu3  ;;  %v7698_v3 = vadd.f32 %v7697_v31, %v7684_v46 }
 0x2f0   :  { %8055 = vmatpush.bf16.msrb.mxu2 %v12413_v19 }
 0x2f1   :  { %8069 = vmatpush.bf16.msrb.mxu3 %v12421_v49  ;;  %v7672_v49 = vadd.f32 %v7671_v16, %v7658_v23 }
 0x2f2   :  { %8028 = vmatpush.bf16.msrb.mxu0 %v12396_v36  ;;  %v7712_v36 = vadd.f32 %v7711_v25, %v7698_v3 }
 0x2f3   :  { %8042 = vmatpush.bf16.msrb.mxu1 %v12404_v51 }
 0x2f4   :  { %8056 = vmatpush.bf16.msrb.mxu2 %v12412_v5  ;;  %v7699_v56 = vpop.f32.mrf.mxu0 }
 0x2f5   :  { %8070 = vmatpush.bf16.msrb.mxu3 %v12420_v17  ;;  %v7713_v20 = vpop.f32.mrf.mxu1  ;;  %v7686_v17 = vadd.f32 %v7685_v27, %v7672_v49 }
 0x2f6   :  { %8029 = vmatpush.bf16.msrb.mxu0 %v12395_v52  ;;  %v7727_v34 = vpop.f32.mrf.mxu2  ;;  %v7726_v52 = vadd.f32 %v7725_v18, %v7712_v36 }
 0x2f7   :  { %8043 = vmatpush.bf16.msrb.mxu1 %v12403_v28  ;;  %v7741_v57 = vpop.f32.mrf.mxu3  ;;  %v7700_v9 = vadd.f32 %v7699_v56, %v7686_v17 }
 0x2f8   :  { %8057 = vmatpush.bf16.msrb.mxu2 %v12411_v12  ;;  %v7740_v12 = vadd.f32 %v7739_v32, %v7726_v52 }
 0x2f9   :  { %8071 = vmatpush.bf16.msrb.mxu3 %v12419_v39 }
 0x2fa   :  { %8030 = vmatpush.bf16.msrb.mxu0 %v12394_v58  ;;  %v7714_v58 = vadd.f32 %v7713_v20, %v7700_v9 }
 0x2fb   :  { %8044 = vmatpush.bf16.msrb.mxu1 %v12402_v6 }
 0x2fc   :  { %8058 = vmatpush.bf16.msrb.mxu2 %v12410_v54  ;;  %v7753_v33 = vpop.f32.mrf.mxu0  ;;  %v7728_v2 = vadd.f32 %v7727_v34, %v7714_v58 }
 0x2fd   :  { %8072 = vmatpush.bf16.msrb.mxu3 %v12418_v43  ;;  %v7767_v37 = vpop.f32.mrf.mxu1  ;;  %v7754_v6 = vadd.f32 %v7753_v33, %v7740_v12 }
 0x2fe   :  { %8031 = vmatpush.bf16.msrb.mxu0 %v12393_v59  ;;  %v7781_v22 = vpop.f32.mrf.mxu2 }
 0x2ff   :  { %8045 = vmatpush.bf16.msrb.mxu1 %v12401_v21  ;;  %v7795_v35 = vpop.f32.mrf.mxu3  ;;  %v7768_v59 = vadd.f32 %v7767_v37, %v7754_v6 }
 0x300   :  { %8059 = vmatpush.bf16.msrb.mxu2 %v12409_v60  ;;  %v7742_v60 = vadd.f32 %v7741_v57, %v7728_v2 }
 0x301   :  { %8073 = vmatpush.bf16.msrb.mxu3 %v12417_v61  ;;  %8032 = vmatmul.bf16.vlgmr.msrb.gmra.mxu0 %v8476_v47  ;;  %v7782_v61 = vadd.f32 %v7781_v22, %v7768_v59 }
 0x302   :  { %8046 = vmatmul.bf16.vlgmr.msrb.gmra.mxu1 %v8480_v10 }
 0x303   :  { %8060 = vmatmul.bf16.vlgmr.msrb.gmra.mxu2 %v8484_v13  ;;  %v7796_v11 = vadd.f32 %v7795_v35, %v7782_v61 }
 0x304   :  { %8074 = vmatmul.bf16.vlgmr.msrb.gmra.mxu3 %v8488_v29  ;;  %v7755_v63 = vpop.f32.mrf.mxu0 }
 0x305   :  { %v7769_v42 = vpop.f32.mrf.mxu1  ;;  %v7756_v15 = vadd.f32 %v7755_v63, %v7742_v60 }
 0x306   :  { %v7783_v45 = vpop.f32.mrf.mxu2 }
 0x307   :  { %v7797_v1 = vpop.f32.mrf.mxu3  ;;  %v7770_v24 = vadd.f32 %v7769_v42, %v7756_v15 }
 0x309   :  { %v7784_v44 = vadd.f32 %v7783_v45, %v7770_v24 }
 0x30b   :  { %v7798_v29 = vadd.f32 %v7797_v1, %v7784_v44 }
 0x30c   :  { %v7809_v48 = vpop.f32.mrf.mxu0 }
 0x30d   :  { %v7823_v19 = vpop.f32.mrf.mxu1  ;;  %v7810_v7 = vadd.f32 %v7809_v48, %v7796_v11 }
 0x30e   :  { %v7837_v51 = vpop.f32.mrf.mxu2 }
 0x30f   :  { %v7851_v5 = vpop.f32.mrf.mxu3  ;;  %v7824_v10 = vadd.f32 %v7823_v19, %v7810_v7 }
 0x311   :  { %v7838_v0 = vadd.f32 %v7837_v51, %v7824_v10 }
 0x313   :  { %v7852_v55 = vadd.f32 %v7851_v5, %v7838_v0 }
 0x314   :  { %v7811_v28 = vpop.f32.mrf.mxu0 }
 0x315   :  { %v7825_v39 = vpop.f32.mrf.mxu1  ;;  %v7812_v14 = vadd.f32 %v7811_v28, %v7798_v29 }
 0x316   :  { %v7839_v54 = vpop.f32.mrf.mxu2 }
 0x317   :  { %v7853_v43 = vpop.f32.mrf.mxu3  ;;  %v7826_v16 = vadd.f32 %v7825_v39, %v7812_v14 }
 0x319   :  { %v7840_v25 = vadd.f32 %v7839_v54, %v7826_v16 }
 0x31b   :  { %v7854_v20 = vadd.f32 %v7853_v43, %v7840_v25 }
 0x31e   :  { %v7865_v21 = vpop.f32.mrf.mxu0 }
 0x31f   :  { %v7879_v40 = vpop.f32.mrf.mxu1  ;;  %v7866_v27 = vadd.f32 %v7865_v21, %v7852_v55 }
 0x321   :  { %v7880_v18 = vadd.f32 %v7879_v40, %v7866_v27 }
 0x326   :  { %v7893_v26 = vpop.f32.mrf.mxu2  ;;  %v7867_v47 = vpop.f32.mrf.mxu0 }
 0x327   :  { %v7907_v4 = vpop.f32.mrf.mxu3  ;;  %v7881_v13 = vpop.f32.mrf.mxu1  ;;  %v7894_v34 = vadd.f32 %v7893_v26, %v7880_v18  ;;  %v7868_v57 = vadd.f32 %v7867_v47, %v7854_v20  ;;  %v12428_v26 = vld [vmem:[%s15558_s2] ss:$0 sm:$0xff]  ;;  %s12456_s2 = smov 128  }
 0x329   :  { %v7908_v37 = vadd.f32 %v7907_v4, %v7894_v34  ;;  %v7882_v35 = vadd.f32 %v7881_v13, %v7868_v57 }
 0x32e   :  { %v7895_v8 = vpop.f32.mrf.mxu2 }
 0x32f   :  { %v7909_v50 = vpop.f32.mrf.mxu3  ;;  %v7896_v63 = vadd.f32 %v7895_v8, %v7882_v35 }
 0x331   :  { %v7910_v45 = vadd.f32 %v7909_v50, %v7896_v63 }
 0x33e   :  { %v7921_v53 = vpop.f32.mrf.mxu0 }
 0x33f   :  { %v7935_v31 = vpop.f32.mrf.mxu1  ;;  %v7922_v41 = vadd.f32 %v7921_v53, %v7908_v37 }
 0x341   :  { %v7936_v30 = vadd.f32 %v7935_v31, %v7922_v41 }
 0x346   :  { %v7949_v32 = vpop.f32.mrf.mxu2  ;;  %v7923_v33 = vpop.f32.mrf.mxu0 }
 0x347   :  { %v7963_v56 = vpop.f32.mrf.mxu3  ;;  %v7937_v22 = vpop.f32.mrf.mxu1  ;;  %v7950_v1 = vadd.f32 %v7949_v32, %v7936_v30  ;;  %v7924_v48 = vadd.f32 %v7923_v33, %v7910_v45 }
 0x349   :  { %v7964_v23 = vadd.f32 %v7963_v56, %v7950_v1  ;;  %v7938_v49 = vadd.f32 %v7937_v22, %v7924_v48 }
 0x34e   :  { %v7951_v62 = vpop.f32.mrf.mxu2 }
 0x34f   :  { %v7965_v42 = vpop.f32.mrf.mxu3  ;;  %v7952_v51 = vadd.f32 %v7951_v62, %v7938_v49 }
 0x351   :  { %v7966_v9 = vadd.f32 %v7965_v42, %v7952_v51 }
 0x35e   :  { %v7977_v38 = vpop.f32.mrf.mxu0 }
 0x35f   :  { %v7991_v46 = vpop.f32.mrf.mxu1  ;;  %v7978_v36 = vadd.f32 %v7977_v38, %v7964_v23 }
 0x361   :  { %v7992_v17 = vadd.f32 %v7991_v46, %v7978_v36 }
 0x366   :  { %v8005_v3 = vpop.f32.mrf.mxu2  ;;  %v7979_v5 = vpop.f32.mrf.mxu0 }
 0x367   :  { %v8019_v19 = vpop.f32.mrf.mxu3  ;;  %v7993_v52 = vpop.f32.mrf.mxu1  ;;  %v8006_v28 = vadd.f32 %v8005_v3, %v7992_v17  ;;  %v7980_v12 = vadd.f32 %v7979_v5, %v7966_v9 }
 0x369   :  { %v8020_v6 = vadd.f32 %v8019_v19, %v8006_v28  ;;  %v7994_v54 = vadd.f32 %v7993_v52, %v7980_v12 }
 0x36e   :  { %v8007_v39 = vpop.f32.mrf.mxu2 }
 0x36f   :  { %v8021_v58 = vpop.f32.mrf.mxu3  ;;  %v8008_v21 = vadd.f32 %v8007_v39, %v7994_v54 }
 0x371   :  { %v8022_v15 = vadd.f32 %v8021_v58, %v8008_v21 }
 0x37e   :  { %v8033_v2 = vpop.f32.mrf.mxu0 }
 0x37f   :  { %v8034_v43 = vadd.f32 %v8033_v2, %v8020_v6  ;;  %v8047_v59 = vpop.f32.mrf.mxu1 }
 0x381   :  { %v8048_v60 = vadd.f32 %v8047_v59, %v8034_v43 }
 0x386   :  { %v8061_v61 = vpop.f32.mrf.mxu2  ;;  %v8035_v4 = vpop.f32.mrf.mxu0 }
 0x387   :  { %v8075_v40 = vpop.f32.mrf.mxu3  ;;  %v8062_v11 = vadd.f32 %v8061_v61, %v8048_v60  ;;  %v8036_v7 = vadd.f32 %v8035_v4, %v8022_v15  ;;  %v8049_v47 = vpop.f32.mrf.mxu1 }
 0x389   :  { %v8076_v24 = vadd.f32 %v8075_v40, %v8062_v11  ;;  %v8050_v10 = vadd.f32 %v8049_v47, %v8036_v7 }
 0x38b   :  { %v8083_v44 = vadd.f32 %v12428_v26, %v8076_v24 }
 0x38d   :  { %8085 = vst [vmem:[#allocation2] sm:$0xff] %v8083_v44 }
 0x38e   :  { %v8063_v13 = vpop.f32.mrf.mxu2 }
 0x38f   :  { %v8064_v29 = vadd.f32 %v8063_v13, %v8050_v10  ;;  %v8077_v0 = vpop.f32.mrf.mxu3 }
 0x391   :  { %v8078_v14 = vadd.f32 %v8077_v0, %v8064_v29 }
 0x393   :  { %v8084_v8 = vadd.f32 %v12428_v26, %v8078_v14 }
 0x395   :  { %8086 = vst [vmem:[#allocation2 + $0x8] sm:$0xff] %v8084_v8 }
 0x396   :  { %8099 = dma.vmem_to_hbm [thread:$0]  %s8092_s16, 256, %s8094_s19, [#allocation3], %s12456_s2, %s12456_s2, %s12457_s20  }
 0x397   :  { %12453 = dma.done.wait [#allocation3], 256  }
 0x398   :  { %12454 = vsyncadd [#allocation3], 4294967040 }
 0x399   :  { %8104 = vsyncpa [#allocation3], 1 }

</bundles_post_ra>
